<compile_context>
chip_gen: v7x
topology: tpu7x:2x2x1
jax: 0.10.0
libtpu: 0.0.40
codegen_flags: <defaults>
</compile_context>

<pallas_src>
import functools
import inspect
import math

import jax
import jax.numpy as jnp
from jax.experimental import pallas as pl
from jax.experimental.pallas import tpu as pltpu


# Does this jax expose BlockSpec(pipeline_mode=...)?  Used for Buffered(1).
try:
    _HAS_PIPELINE_MODE = ("pipeline_mode" in inspect.signature(pl.BlockSpec).parameters
                          and hasattr(pl, "Buffered"))
except (TypeError, ValueError):
    _HAS_PIPELINE_MODE = hasattr(pl, "Buffered")


def _layer_norm(x, w, b, eps=1e-5):
    # x: (T, E) f32, w/b: (1, E) f32 -- matches F.layer_norm over the last dim.
    mu = jnp.mean(x, axis=-1, keepdims=True)
    xc = x - mu
    var = jnp.mean(xc * xc, axis=-1, keepdims=True)
    inv = jax.lax.rsqrt(var + eps)
    return xc * inv * w + b


def _gelu_exact(x):
    # nn.GELU default (exact erf form), kept in f32.
    return 0.5 * x * (1.0 + jax.lax.erf(x * (1.0 / math.sqrt(2.0))))


def _block_kernel(x_ref,
                  ln1w_ref, ln1b_ref, wq_ref, bq_ref, wkv_ref, bkv_ref,
                  wo_ref, bo_ref, ln2w_ref, ln2b_ref,
                  wfc_ref, bfc_ref, wpj_ref, bpj_ref,
                  o_ref,
                  ln1_sc, k_sc, v_sc,
                  *, n_head, tl, kvt, mt):
    li = pl.program_id(1)
    H = n_head
    _, L, E = x_ref.shape
    dh = E // H
    Mw = wfc_ref.shape[1]
    n_build = L // tl
    n_kv = L // kvt
    n_mw = Mw // mt

    # ---- once per batch element: LN1 cache + head-major K/V (bf16) ---------
    @pl.when(li == 0)
    def _():
        def build(c):
            r0 = pl.multiple_of(c * tl, tl)
            xs = x_ref[:, pl.ds(r0, tl), :][0].astype(jnp.float32)        # (tl, E)
            hs = _layer_norm(xs, ln1w_ref[...], ln1b_ref[...]).astype(jnp.bfloat16)
            ln1_sc[pl.ds(r0, tl), :] = hs
            kv = jnp.dot(hs, wkv_ref[...],
                         preferred_element_type=jnp.float32) + bkv_ref[...]  # (tl, 2E)
            kv = kv.astype(jnp.bfloat16)
            # TODO(synk): this relayout splits the lane dim and leaves dh(<128)
            # lanes sparse; a lane-dense packed-head layout would feed the
            # 256-deep MXU better on v6e/v7x.
            k_sc[:, pl.ds(r0, tl), :] = jnp.transpose(
                kv[:, :E].reshape(tl, H, dh), (1, 0, 2))
            v_sc[:, pl.ds(r0, tl), :] = jnp.transpose(
                kv[:, E:].reshape(tl, H, dh), (1, 0, 2))

        if n_build == 1:
            build(0)
        else:
            def body(c, carry):
                build(c)
                return carry
            jax.lax.fori_loop(0, n_build, body, 0)

    # ---- attention branch for this query tile: x + attn(ln_1(x)) -----------
    q0 = pl.multiple_of(li * tl, tl)
    x = x_ref[:, pl.ds(q0, tl), :][0].astype(jnp.float32)                 # residual in
    h1 = ln1_sc[pl.ds(q0, tl), :]                                         # cached LN1, bf16

    # 1/sqrt(dh) is pre-folded into wq/bq at prepare time.
    q = jnp.dot(h1, wq_ref[...], preferred_element_type=jnp.float32) + bq_ref[...]
    qh = jnp.transpose(q.astype(jnp.bfloat16).reshape(tl, H, dh), (1, 0, 2))  # (H, tl, dh)

    if n_kv == 1:
        s = jax.lax.dot_general(qh, k_sc[...], (((2,), (2,)), ((0,), (0,))),
                                preferred_element_type=jnp.float32)       # (H, tl, L)
        s = s - jnp.max(s, axis=-1, keepdims=True)
        p = jnp.exp(s)
        denom = jnp.sum(p, axis=-1, keepdims=True)
        ctx = jax.lax.dot_general(p.astype(jnp.bfloat16), v_sc[...],
                                  (((2,), (1,)), ((0,), (0,))),
                                  preferred_element_type=jnp.float32)     # (H, tl, dh)
    else:
        # Flash-style online softmax over KV chunks: score temp is (H, tl, kvt).
        def kv_step(c, carry):
            m_prev, l_prev, acc_prev = carry
            r0 = pl.multiple_of(c * kvt, kvt)
            kc = k_sc[:, pl.ds(r0, kvt), :]
            vc = v_sc[:, pl.ds(r0, kvt), :]
            s = jax.lax.dot_general(qh, kc, (((2,), (2,)), ((0,), (0,))),
                                    preferred_element_type=jnp.float32)   # (H, tl, kvt)
            m_new = jnp.maximum(m_prev, jnp.max(s, axis=-1, keepdims=True))
            alpha = jnp.exp(m_prev - m_new)
            p = jnp.exp(s - m_new)
            l_new = alpha * l_prev + jnp.sum(p, axis=-1, keepdims=True)
            c_new = jax.lax.dot_general(p.astype(jnp.bfloat16), vc,
                                        (((2,), (1,)), ((0,), (0,))),
                                        preferred_element_type=jnp.float32)
            return m_new, l_new, alpha * acc_prev + c_new

        init = (jnp.full((H, tl, 1), -jnp.inf, jnp.float32),
                jnp.zeros((H, tl, 1), jnp.float32),
                jnp.zeros((H, tl, dh), jnp.float32))
        _, denom, ctx = jax.lax.fori_loop(0, n_kv, kv_step, init)

    # approx reciprocal (EUP slot): ~1e-3 relative error, documented + inside
    # the test tolerance; set approx=False for training-exact softmax.
    ctx = ctx * pl.reciprocal(denom, approx=True)
    attn = jnp.transpose(ctx, (1, 0, 2)).reshape(tl, E)                   # (tl, E)
    attn = jnp.dot(attn.astype(jnp.bfloat16), wo_ref[...],
                   preferred_element_type=jnp.float32) + bo_ref[...]

    x1 = x + attn                                                         # residual 1

    # ---- MLP branch (hidden dim chunked): x1 + c_proj(gelu(c_fc(ln_2(x1)))) -
    h2 = _layer_norm(x1, ln2w_ref[...], ln2b_ref[...]).astype(jnp.bfloat16)
    acc = jnp.zeros((tl, E), jnp.float32)
    for c in range(n_mw):                       # static unrolled; n_mw is small
        c0 = c * mt
        f = jnp.dot(h2, wfc_ref[:, c0:c0 + mt],
                    preferred_element_type=jnp.float32) + bfc_ref[:, c0:c0 + mt]
        f = _gelu_exact(f)
        acc = acc + jnp.dot(f.astype(jnp.bfloat16), wpj_ref[c0:c0 + mt, :],
                            preferred_element_type=jnp.float32)
    mlp_out = acc + bpj_ref[...]

    o_ref[0] = (x1 + mlp_out).astype(o_ref.dtype)


# --------------------------------------------------------------------------- #
# Host-side helpers
# --------------------------------------------------------------------------- #

def _round_up(v, m):
    return (v + m - 1) // m * m


def _padded_nbytes(shape, dtype):
    """VMEM footprint with (sublane, 128-lane) padding of the last two dims."""
    itemsize = jnp.dtype(dtype).itemsize
    dims = list(shape)
    if dims:
        dims[-1] = _round_up(dims[-1], 128)
    if len(dims) >= 2:
        dims[-2] = _round_up(dims[-2], max(8, 32 // max(itemsize, 1)))
    n = 1
    for d in dims:
        n *= int(d)
    return n * itemsize


def _vmem_capacity_bytes(default=64 << 20):
    try:
        info = pltpu.get_tpu_info()
        cap = int(getattr(info, "vmem_capacity_bytes", 0) or 0)
        if cap > 0:
            return cap
    except Exception:
        pass
    return default


def _pick_tile(total, target, mult):
    """Largest divisor of `total` that is a multiple of `mult` and <= target.

    Falls back to `total` (single tile) only when no such divisor exists, so an
    awkward length never silently blows up the pipeline with tiny tiles.
    """
    best = None
    cand = mult
    limit = min(total, target)
    while cand <= limit:
        if total % cand == 0:
            best = cand
        cand += mult
    return best if best is not None else total


def _make_spec(shape, index_map, single_buffer):
    if single_buffer and _HAS_PIPELINE_MODE:
        return pl.BlockSpec(shape, index_map, pipeline_mode=pl.Buffered(1))
    return pl.BlockSpec(shape, index_map)


def prepare_params(p, n_head, compute_dtype=jnp.bfloat16):
    """One-time weight relayout: transpose, fuse K/V, fold attn scale, cast bf16.

    Do this once per model (cache the result); it must NOT be paid per forward.
    """
    E = p["ln1_w"].shape[0]
    assert E % n_head == 0
    dh = E // n_head
    scale = 1.0 / math.sqrt(dh)

    def row(v):
        return v.reshape(1, -1).astype(jnp.float32)

    def wt(w):
        return w.T.astype(compute_dtype)

    wq_raw = p["in_proj_w"][:E]
    wk_raw = p["in_proj_w"][E:2 * E]
    wv_raw = p["in_proj_w"][2 * E:]
    bq_raw = p["in_proj_b"][:E]
    bk_raw = p["in_proj_b"][E:2 * E]
    bv_raw = p["in_proj_b"][2 * E:]

    return {
        "ln1_w": row(p["ln1_w"]), "ln1_b": row(p["ln1_b"]),
        "wq": (wq_raw * scale).T.astype(compute_dtype), "bq": row(bq_raw * scale),
        # fused K/V projection: (E, 2E)
        "wkv": jnp.concatenate([wk_raw, wv_raw], axis=0).T.astype(compute_dtype),
        "bkv": jnp.concatenate([bk_raw, bv_raw]).reshape(1, -1).astype(jnp.float32),
        "wo": wt(p["out_proj_w"]), "bo": row(p["out_proj_b"]),
        "ln2_w": row(p["ln2_w"]), "ln2_b": row(p["ln2_b"]),
        "wfc": wt(p["fc_w"]), "bfc": row(p["fc_b"]),       # (E, Mw)
        "wpj": wt(p["proj_w"]), "bpj": row(p["proj_b"]),   # (Mw, E)
    }


def residual_attention_block_nle(x, prep, n_head, *, block_l=None,
                                 kv_block=512, mlp_block=1024):
    """Batch-major entry point. x: (N, L, E) (f32 or bf16). Returns (N, L, E)."""
    N, L, E = x.shape
    assert E % n_head == 0
    dh = E // n_head
    Mw = prep["wfc"].shape[1]

    vmem_cap = _vmem_capacity_bytes()
    if block_l is None:
        # 128-MiB parts (v5e/v6e): larger query tiles approach the HBM roofline;
        # 64-MiB parts (v7x): stay at 128 and keep headroom.
        block_l = 256 if vmem_cap >= (96 << 20) else 128

    tl = _pick_tile(L, block_l, 16)     # multiple of 16 -> bf16-aligned offsets
    kvt = _pick_tile(L, kv_block, 16)
    mt = _pick_tile(Mw, mlp_block, 128)
    n_lt = L // tl

    weights = (prep["ln1_w"], prep["ln1_b"], prep["wq"], prep["bq"],
               prep["wkv"], prep["bkv"], prep["wo"], prep["bo"],
               prep["ln2_w"], prep["ln2_b"], prep["wfc"], prep["bfc"],
               prep["wpj"], prep["bpj"])

    # ---- honest VMEM budget (buffer-count + padding aware) ----
    weight_bytes_pad = sum(_padded_nbytes(w.shape, w.dtype) for w in weights)
    x_block_pad = _padded_nbytes((1, L, E), x.dtype)
    out_block_pad = _padded_nbytes((1, tl, E), x.dtype)
    scratch_pad = (_padded_nbytes((L, E), jnp.bfloat16)
                   + 2 * _padded_nbytes((n_head, L, dh), jnp.bfloat16))
    score_cols = L if (L // kvt) == 1 else kvt
    temp_pad = (n_head * tl * _round_up(score_cols, 128) * 4      # score chunk
                + 3 * n_head * tl * _round_up(dh, 128) * 4        # ctx/acc/p
                + 6 * tl * _round_up(E, 128) * 4                  # x/x1/q/attn/h2/out
                + 2 * tl * _round_up(mt, 128) * 4)                # MLP chunk temps

    # ---- advisory cost estimate ----
    flops = int(N * (2 * L * E * (3 * E)      # q/k/v projections
                     + 4 * L * L * E          # scores + context (all heads)
                     + 2 * L * E * E          # out projection
                     + 4 * L * E * Mw))       # c_fc + c_proj
    transcendentals = int(N * (n_head * L * L + L * Mw + 4 * L))
    bytes_accessed = int(2 * N * L * E * jnp.dtype(x.dtype).itemsize
                         + sum(int(w.size) * jnp.dtype(w.dtype).itemsize
                               for w in weights))

    kernel = functools.partial(_block_kernel, n_head=n_head, tl=tl, kvt=kvt, mt=mt)

    def run(single_buffer):
        def const_spec(a):
            nd = a.ndim
            return _make_spec(a.shape, lambda b, l, _nd=nd: (0,) * _nd, single_buffer)

        in_specs = [_make_spec((1, L, E), lambda b, l: (b, 0, 0), single_buffer)]
        in_specs += [const_spec(w) for w in weights]
        out_spec = pl.BlockSpec((1, tl, E), lambda b, l: (b, l, 0))

        nbuf = 1 if (single_buffer and _HAS_PIPELINE_MODE) else 2
        est = (nbuf * (weight_bytes_pad + x_block_pad)
               + 2 * out_block_pad + scratch_pad + temp_pad)
        vmem_limit = int(min(int(0.9 * vmem_cap), max(est + (4 << 20), 32 << 20)))

        return pl.pallas_call(
            kernel,
            out_shape=jax.ShapeDtypeStruct((N, L, E), x.dtype),
            grid_spec=pltpu.PrefetchScalarGridSpec(
                num_scalar_prefetch=0,
                grid=(N, n_lt),
                in_specs=in_specs,
                out_specs=out_spec,
                scratch_shapes=[pltpu.VMEM((L, E), jnp.bfloat16),          # LN1 cache
                                pltpu.VMEM((n_head, L, dh), jnp.bfloat16),  # K
                                pltpu.VMEM((n_head, L, dh), jnp.bfloat16)],  # V
            ),
            compiler_params=pltpu.CompilerParams(
                # TODO(synk): add a second "parallel" axis (head groups) so v7x
                # megacore has work when N == 1.
                dimension_semantics=("parallel", "arbitrary"),
                vmem_limit_bytes=vmem_limit,
            ),
            cost_estimate=pl.CostEstimate(flops=flops,
                                          transcendentals=transcendentals,
                                          bytes_accessed=bytes_accessed),
        )(x, *weights)

    if _HAS_PIPELINE_MODE:
        try:
            return run(True)
        except Exception:
            # Fallback if Buffered(1) is rejected by this jax/Mosaic version.
            return run(False)
    return run(False)


def residual_attention_block(q_x, prep, n_head, **tile_kwargs):
    """Spec-compatible entry: q_x (L, N, E), like nn.MultiheadAttention (batch_first=False).

    For a stack of blocks, prefer residual_attention_block_nle and keep the
    activations batch-major (and optionally bf16) end-to-end to avoid these two
    HBM transposes.
    """
    out = residual_attention_block_nle(jnp.transpose(q_x, (1, 0, 2)),
                                       prep, n_head, **tile_kwargs)
    return jnp.transpose(out, (1, 0, 2))


# --------------------------------------------------------------------------- #
# Reference + test
# --------------------------------------------------------------------------- #

def make_params(key, d_model, n_head, mlp_ratio=4.0):
    mlp_width = int(d_model * mlp_ratio)
    ks = jax.random.split(key, 8)
    s = 0.02
    return {
        "ln1_w": jnp.ones((d_model,), jnp.float32) + 0.01 * jax.random.normal(ks[0], (d_model,)),
        "ln1_b": 0.01 * jax.random.normal(ks[1], (d_model,)),
        "in_proj_w": s * jax.random.normal(ks[2], (3 * d_model, d_model)),
        "in_proj_b": 0.01 * jax.random.normal(ks[3], (3 * d_model,)),
        "out_proj_w": s * jax.random.normal(ks[4], (d_model, d_model)),
        "out_proj_b": 0.01 * jax.random.normal(ks[5], (d_model,)),
        "ln2_w": jnp.ones((d_model,), jnp.float32) + 0.01 * jax.random.normal(ks[6], (d_model,)),
        "ln2_b": 0.01 * jax.random.normal(ks[7], (d_model,)),
        "fc_w": s * jax.random.normal(jax.random.fold_in(key, 10), (mlp_width, d_model)),
        "fc_b": 0.01 * jax.random.normal(jax.random.fold_in(key, 11), (mlp_width,)),
        "proj_w": s * jax.random.normal(jax.random.fold_in(key, 12), (d_model, mlp_width)),
        "proj_b": 0.01 * jax.random.normal(jax.random.fold_in(key, 13), (d_model,)),
    }


def ref_forward(q_x, p, n_head):
    """Pure-JAX f32 reference mirroring the PyTorch forward (self-attn, no mask)."""
    L, N, E = q_x.shape
    dh = E // n_head

    def ln(x, w, b, eps=1e-5):
        mu = jnp.mean(x, axis=-1, keepdims=True)
        xc = x - mu
        var = jnp.mean(xc * xc, axis=-1, keepdims=True)
        return xc * jax.lax.rsqrt(var + eps) * w + b

    x = q_x.astype(jnp.float32)
    h = ln(x, p["ln1_w"], p["ln1_b"])
    qkv = h @ p["in_proj_w"].T + p["in_proj_b"]
    q, k, v = jnp.split(qkv, 3, axis=-1)

    def split_heads(t):  # (L, N, E) -> (N, H, L, dh)
        return jnp.transpose(t.reshape(L, N, n_head, dh), (1, 2, 0, 3))

    qh, kh, vh = split_heads(q), split_heads(k), split_heads(v)
    s = jnp.einsum("nhld,nhmd->nhlm", qh, kh) / math.sqrt(dh)
    a = jax.nn.softmax(s, axis=-1)
    o = jnp.einsum("nhlm,nhmd->nhld", a, vh)
    o = jnp.transpose(o, (2, 0, 1, 3)).reshape(L, N, E)
    o = o @ p["out_proj_w"].T + p["out_proj_b"]
    x = x + o
    h2 = ln(x, p["ln2_w"], p["ln2_b"])
    f = h2 @ p["fc_w"].T + p["fc_b"]
    f = 0.5 * f * (1.0 + jax.lax.erf(f / math.sqrt(2.0)))
    m = f @ p["proj_w"].T + p["proj_b"]
    return x + m


if __name__ == "__main__":
    # seq=32, batch=2, d_model=64, heads=4 (dh=16), mlp_width=256.
    L, N, E, H = 32, 2, 64, 4
    key = jax.random.PRNGKey(0)
    k_x, k_p = jax.random.split(key)
    q_x = jax.random.normal(k_x, (L, N, E), dtype=jnp.float32)

    raw_params = make_params(k_p, E, H)
    prep = prepare_params(raw_params, H)       # one-time weight relayout / bf16 cast
    ref = ref_forward(q_x, raw_params, H)

    # (a) multi-chunk path: 2 query tiles, 2 KV chunks (online softmax), 2 MLP chunks.
    out_a = jax.block_until_ready(
        residual_attention_block(q_x, prep, H, block_l=16, kv_block=16, mlp_block=128))
    # (b) default tiles: single-tile / single-chunk path.
    out_b = jax.block_until_ready(residual_attention_block(q_x, prep, H))

    for out in (out_a, out_b):
        assert out.shape == (L, N, E)
        # bf16 MXU inputs + approx reciprocal -> looser tolerance than pure f32.
        err = float(jnp.max(jnp.abs(out.astype(jnp.float32) - ref)))
        assert err < 2e-2, err
    print("KERNEL_OK")
</pallas_src>

<mosaic_0001>
module attributes {stable_mosaic.version = 11 : i64} {
  func.func @_block_kernel(%arg0: i32, %arg1: i32, %arg2: memref<1x32x64xf32, #tpu.memory_space<vmem>>, %arg3: memref<1x64xf32, #tpu.memory_space<vmem>>, %arg4: memref<1x64xf32, #tpu.memory_space<vmem>>, %arg5: memref<64x64xbf16, #tpu.memory_space<vmem>>, %arg6: memref<1x64xf32, #tpu.memory_space<vmem>>, %arg7: memref<64x128xbf16, #tpu.memory_space<vmem>>, %arg8: memref<1x128xf32, #tpu.memory_space<vmem>>, %arg9: memref<64x64xbf16, #tpu.memory_space<vmem>>, %arg10: memref<1x64xf32, #tpu.memory_space<vmem>>, %arg11: memref<1x64xf32, #tpu.memory_space<vmem>>, %arg12: memref<1x64xf32, #tpu.memory_space<vmem>>, %arg13: memref<64x256xbf16, #tpu.memory_space<vmem>>, %arg14: memref<1x256xf32, #tpu.memory_space<vmem>>, %arg15: memref<256x64xbf16, #tpu.memory_space<vmem>>, %arg16: memref<1x64xf32, #tpu.memory_space<vmem>>, %arg17: memref<1x16x64xf32, #tpu.memory_space<vmem>>, %arg18: memref<32x64xbf16, #tpu.memory_space<vmem>>, %arg19: memref<4x32x16xbf16, #tpu.memory_space<vmem>>, %arg20: memref<4x32x16xbf16, #tpu.memory_space<vmem>>) attributes {dimension_semantics = [#tpu.dimension_semantics<parallel>, #tpu.dimension_semantics<arbitrary>], iteration_bounds = array<i64: 2, 2>, scalar_prefetch = 0 : i64, scratch_operands = 3 : i64, tpu.core_type = #tpu.core_type<tc>, window_params = [{pipeline_mode = #tpu.pipeline_mode<synchronous>, transform_indices = @transform_0, window_bounds = array<i64: 1, 32, 64>}, {pipeline_mode = #tpu.pipeline_mode<synchronous>, transform_indices = @transform_1, window_bounds = array<i64: 1, 64>}, {pipeline_mode = #tpu.pipeline_mode<synchronous>, transform_indices = @transform_2, window_bounds = array<i64: 1, 64>}, {pipeline_mode = #tpu.pipeline_mode<synchronous>, transform_indices = @transform_3, window_bounds = array<i64: 64, 64>}, {pipeline_mode = #tpu.pipeline_mode<synchronous>, transform_indices = @transform_4, window_bounds = array<i64: 1, 64>}, {pipeline_mode = #tpu.pipeline_mode<synchronous>, transform_indices = @transform_5, window_bounds = array<i64: 64, 128>}, {pipeline_mode = #tpu.pipeline_mode<synchronous>, transform_indices = @transform_6, window_bounds = array<i64: 1, 128>}, {pipeline_mode = #tpu.pipeline_mode<synchronous>, transform_indices = @transform_7, window_bounds = array<i64: 64, 64>}, {pipeline_mode = #tpu.pipeline_mode<synchronous>, transform_indices = @transform_8, window_bounds = array<i64: 1, 64>}, {pipeline_mode = #tpu.pipeline_mode<synchronous>, transform_indices = @transform_9, window_bounds = array<i64: 1, 64>}, {pipeline_mode = #tpu.pipeline_mode<synchronous>, transform_indices = @transform_10, window_bounds = array<i64: 1, 64>}, {pipeline_mode = #tpu.pipeline_mode<synchronous>, transform_indices = @transform_11, window_bounds = array<i64: 64, 256>}, {pipeline_mode = #tpu.pipeline_mode<synchronous>, transform_indices = @transform_12, window_bounds = array<i64: 1, 256>}, {pipeline_mode = #tpu.pipeline_mode<synchronous>, transform_indices = @transform_13, window_bounds = array<i64: 256, 64>}, {pipeline_mode = #tpu.pipeline_mode<synchronous>, transform_indices = @transform_14, window_bounds = array<i64: 1, 64>}, {transform_indices = @transform_15, window_bounds = array<i64: 1, 16, 64>}]} {
    %c0_i32 = arith.constant 0 : i32
    %0 = arith.cmpi eq, %arg1, %c0_i32 : i32
    %1 = arith.extui %0 : i1 to i32
    %c0_i32_0 = arith.constant 0 : i32
    %2 = arith.cmpi ne, %1, %c0_i32_0 : i32
    scf.if %2 {
      %c0_i32_53 = arith.constant 0 : i32
      %c2_i32_54 = arith.constant 2 : i32
      %100 = arith.addi %c0_i32_53, %c2_i32_54 : i32
      %c1_i32_55 = arith.constant 1 : i32
      scf.for %arg21 = %c0_i32_53 to %100 step %c1_i32_55  : i32 {
        %c16_i32_57 = arith.constant 16 : i32
        %101 = arith.muli %arg21, %c16_i32_57 : i32
        %102 = tpu.assume_multiple %101, 16 : i32
        %c0_58 = arith.constant 0 : index
        %103 = arith.index_cast %102 : i32 to index
        %c0_59 = arith.constant 0 : index
        %104 = vector.load %arg2[%c0_58, %103, %c0_59] : memref<1x32x64xf32, #tpu.memory_space<vmem>>, vector<1x16x64xf32>
        %105 = vector.shape_cast %104 : vector<1x16x64xf32> to vector<16x64xf32>
        %c0_60 = arith.constant 0 : index
        %c0_61 = arith.constant 0 : index
        %106 = vector.load %arg3[%c0_60, %c0_61] : memref<1x64xf32, #tpu.memory_space<vmem>>, vector<1x64xf32>
        %c0_62 = arith.constant 0 : index
        %c0_63 = arith.constant 0 : index
        %107 = vector.load %arg4[%c0_62, %c0_63] : memref<1x64xf32, #tpu.memory_space<vmem>>, vector<1x64xf32>
        %cst_64 = arith.constant dense<0.000000e+00> : vector<16xf32>
        %108 = vector.multi_reduction <add>, %105, %cst_64 [1] : vector<16x64xf32> to vector<16xf32>
        %109 = vector.shape_cast %108 : vector<16xf32> to vector<16x1xf32>
        %cst_65 = arith.constant 6.400000e+01 : f32
        %110 = vector.broadcast %cst_65 : f32 to vector<16x1xf32>
        %111 = arith.divf %109, %110 : vector<16x1xf32>
        %112 = vector.broadcast %111 : vector<16x1xf32> to vector<16x64xf32>
        %113 = arith.subf %105, %112 : vector<16x64xf32>
        %114 = arith.mulf %113, %113 : vector<16x64xf32>
        %cst_66 = arith.constant dense<0.000000e+00> : vector<16xf32>
        %115 = vector.multi_reduction <add>, %114, %cst_66 [1] : vector<16x64xf32> to vector<16xf32>
        %116 = vector.shape_cast %115 : vector<16xf32> to vector<16x1xf32>
        %cst_67 = arith.constant 6.400000e+01 : f32
        %117 = vector.broadcast %cst_67 : f32 to vector<16x1xf32>
        %118 = arith.divf %116, %117 : vector<16x1xf32>
        %cst_68 = arith.constant 9.99999974E-6 : f32
        %119 = vector.broadcast %cst_68 : f32 to vector<16x1xf32>
        %120 = arith.addf %118, %119 : vector<16x1xf32>
        %121 = math.rsqrt %120 : vector<16x1xf32>
        %122 = vector.broadcast %121 : vector<16x1xf32> to vector<16x64xf32>
        %123 = arith.mulf %113, %122 : vector<16x64xf32>
        %124 = vector.broadcast %106 : vector<1x64xf32> to vector<16x64xf32>
        %125 = arith.mulf %123, %124 : vector<16x64xf32>
        %126 = vector.broadcast %107 : vector<1x64xf32> to vector<16x64xf32>
        %127 = arith.addf %125, %126 : vector<16x64xf32>
        %128 = arith.truncf %127 : vector<16x64xf32> to vector<16x64xbf16>
        %129 = arith.index_cast %102 : i32 to index
        %c0_69 = arith.constant 0 : index
        %130 = vector.load %arg18[%129, %c0_69] : memref<32x64xbf16, #tpu.memory_space<vmem>>, vector<16x64xbf16>
        tpu.vector_store %arg18[%129, %c0_69], %128 {strides = array<i32>} : memref<32x64xbf16, #tpu.memory_space<vmem>>, vector<16x64xbf16>,
        %c0_70 = arith.constant 0 : index
        %c0_71 = arith.constant 0 : index
        %131 = vector.load %arg7[%c0_70, %c0_71] : memref<64x128xbf16, #tpu.memory_space<vmem>>, vector<64x128xbf16>
        %cst_72 = arith.constant dense<0.000000e+00> : vector<16x128xf32>
        %132 = tpu.matmul %128, %131, %cst_72 {dimension_numbers = #tpu.dot_dimension_numbers<[1], [0], [0], [1], [0, 0, 1, 1], [], []>} : vector<16x64xbf16>, vector<64x128xbf16>, vector<16x128xf32> -> vector<16x128xf32>
        %c0_73 = arith.constant 0 : index
        %c0_74 = arith.constant 0 : index
        %133 = vector.load %arg8[%c0_73, %c0_74] : memref<1x128xf32, #tpu.memory_space<vmem>>, vector<1x128xf32>
        %134 = vector.broadcast %133 : vector<1x128xf32> to vector<16x128xf32>
        %135 = arith.addf %132, %134 : vector<16x128xf32>
        %136 = arith.truncf %135 : vector<16x128xf32> to vector<16x128xbf16>
        %137 = vector.extract_strided_slice %136 {offsets = [0, 0], sizes = [16, 64], strides = [1, 1]} : vector<16x128xbf16> to vector<16x64xbf16>
        %138 = vector.shape_cast %137 : vector<16x64xbf16> to vector<16x4x16xbf16>
        %139 = tpu.transpose %138, [1, 0, 2] : vector<16x4x16xbf16> -> vector<4x16x16xbf16>
        %c0_75 = arith.constant 0 : index
        %140 = arith.index_cast %102 : i32 to index
        %c0_76 = arith.constant 0 : index
        %141 = vector.load %arg19[%c0_75, %140, %c0_76] : memref<4x32x16xbf16, #tpu.memory_space<vmem>>, vector<4x16x16xbf16>
        tpu.vector_store %arg19[%c0_75, %140, %c0_76], %139 {strides = array<i32>} : memref<4x32x16xbf16, #tpu.memory_space<vmem>>, vector<4x16x16xbf16>,
        %142 = vector.extract_strided_slice %136 {offsets = [0, 64], sizes = [16, 64], strides = [1, 1]} : vector<16x128xbf16> to vector<16x64xbf16>
        %143 = vector.shape_cast %142 : vector<16x64xbf16> to vector<16x4x16xbf16>
        %144 = tpu.transpose %143, [1, 0, 2] : vector<16x4x16xbf16> -> vector<4x16x16xbf16>
        %c0_77 = arith.constant 0 : index
        %145 = arith.index_cast %102 : i32 to index
        %c0_78 = arith.constant 0 : index
        %146 = vector.load %arg20[%c0_77, %145, %c0_78] : memref<4x32x16xbf16, #tpu.memory_space<vmem>>, vector<4x16x16xbf16>
        tpu.vector_store %arg20[%c0_77, %145, %c0_78], %144 {strides = array<i32>} : memref<4x32x16xbf16, #tpu.memory_space<vmem>>, vector<4x16x16xbf16>,
      }
      %c2_i32_56 = arith.constant 2 : i32
    } else {
    }
    %c16_i32 = arith.constant 16 : i32
    %3 = arith.muli %arg1, %c16_i32 : i32
    %4 = tpu.assume_multiple %3, 16 : i32
    %c0 = arith.constant 0 : index
    %5 = arith.index_cast %4 : i32 to index
    %c0_1 = arith.constant 0 : index
    %6 = vector.load %arg2[%c0, %5, %c0_1] : memref<1x32x64xf32, #tpu.memory_space<vmem>>, vector<1x16x64xf32>
    %7 = vector.shape_cast %6 : vector<1x16x64xf32> to vector<16x64xf32>
    %8 = arith.index_cast %4 : i32 to index
    %c0_2 = arith.constant 0 : index
    %9 = vector.load %arg18[%8, %c0_2] : memref<32x64xbf16, #tpu.memory_space<vmem>>, vector<16x64xbf16>
    %c0_3 = arith.constant 0 : index
    %c0_4 = arith.constant 0 : index
    %10 = vector.load %arg5[%c0_3, %c0_4] : memref<64x64xbf16, #tpu.memory_space<vmem>>, vector<64x64xbf16>
    %cst = arith.constant dense<0.000000e+00> : vector<16x64xf32>
    %11 = tpu.matmul %9, %10, %cst {dimension_numbers = #tpu.dot_dimension_numbers<[1], [0], [0], [1], [0, 0, 1, 1], [], []>} : vector<16x64xbf16>, vector<64x64xbf16>, vector<16x64xf32> -> vector<16x64xf32>
    %c0_5 = arith.constant 0 : index
    %c0_6 = arith.constant 0 : index
    %12 = vector.load %arg6[%c0_5, %c0_6] : memref<1x64xf32, #tpu.memory_space<vmem>>, vector<1x64xf32>
    %13 = vector.broadcast %12 : vector<1x64xf32> to vector<16x64xf32>
    %14 = arith.addf %11, %13 : vector<16x64xf32>
    %15 = arith.truncf %14 : vector<16x64xf32> to vector<16x64xbf16>
    %16 = vector.shape_cast %15 : vector<16x64xbf16> to vector<16x4x16xbf16>
    %17 = tpu.transpose %16, [1, 0, 2] : vector<16x4x16xbf16> -> vector<4x16x16xbf16>
    %cst_7 = arith.constant 0xFF800000 : f32
    %18 = vector.broadcast %cst_7 : f32 to vector<4x16x1xf32>
    %cst_8 = arith.constant 0.000000e+00 : f32
    %19 = vector.broadcast %cst_8 : f32 to vector<4x16x1xf32>
    %cst_9 = arith.constant 0.000000e+00 : f32
    %20 = vector.broadcast %cst_9 : f32 to vector<4x16x16xf32>
    %c0_i32_10 = arith.constant 0 : i32
    %c2_i32 = arith.constant 2 : i32
    %21 = arith.addi %c0_i32_10, %c2_i32 : i32
    %c1_i32 = arith.constant 1 : i32
    %22:3 = scf.for %arg21 = %c0_i32_10 to %21 step %c1_i32 iter_args(%arg22 = %18, %arg23 = %19, %arg24 = %20) -> (vector<4x16x1xf32>, vector<4x16x1xf32>, vector<4x16x16xf32>)  : i32 {
      %c16_i32_53 = arith.constant 16 : i32
      %100 = arith.muli %arg21, %c16_i32_53 : i32
      %101 = tpu.assume_multiple %100, 16 : i32
      %c0_54 = arith.constant 0 : index
      %102 = arith.index_cast %101 : i32 to index
      %c0_55 = arith.constant 0 : index
      %103 = vector.load %arg19[%c0_54, %102, %c0_55] : memref<4x32x16xbf16, #tpu.memory_space<vmem>>, vector<4x16x16xbf16>
      %c0_56 = arith.constant 0 : index
      %104 = arith.index_cast %101 : i32 to index
      %c0_57 = arith.constant 0 : index
      %105 = vector.load %arg20[%c0_56, %104, %c0_57] : memref<4x32x16xbf16, #tpu.memory_space<vmem>>, vector<4x16x16xbf16>
      %cst_58 = arith.constant dense<0.000000e+00> : vector<4x16x16xf32>
      %106 = tpu.matmul %17, %103, %cst_58 {dimension_numbers = #tpu.dot_dimension_numbers<[2], [2], [1], [1], [0, 0, 0, 1, 1, 1], [0], [0]>} : vector<4x16x16xbf16>, vector<4x16x16xbf16>, vector<4x16x16xf32> -> vector<4x16x16xf32>
      %cst_59 = arith.constant dense<0xFF800000> : vector<4x16xf32>
      %107 = vector.multi_reduction <maximumf>, %106, %cst_59 [2] : vector<4x16x16xf32> to vector<4x16xf32>
      %108 = vector.shape_cast %107 : vector<4x16xf32> to vector<4x16x1xf32>
      %109 = arith.maximumf %arg22, %108 : vector<4x16x1xf32>
      %110 = arith.subf %arg22, %109 : vector<4x16x1xf32>
      %111 = math.exp %110 : vector<4x16x1xf32>
      %112 = vector.broadcast %109 : vector<4x16x1xf32> to vector<4x16x16xf32>
      %113 = arith.subf %106, %112 : vector<4x16x16xf32>
      %114 = math.exp %113 : vector<4x16x16xf32>
      %115 = arith.mulf %111, %arg23 : vector<4x16x1xf32>
      %cst_60 = arith.constant dense<0.000000e+00> : vector<4x16xf32>
      %116 = vector.multi_reduction <add>, %114, %cst_60 [2] : vector<4x16x16xf32> to vector<4x16xf32>
      %117 = vector.shape_cast %116 : vector<4x16xf32> to vector<4x16x1xf32>
      %118 = arith.addf %115, %117 : vector<4x16x1xf32>
      %119 = arith.truncf %114 : vector<4x16x16xf32> to vector<4x16x16xbf16>
      %cst_61 = arith.constant dense<0.000000e+00> : vector<4x16x16xf32>
      %120 = tpu.matmul %119, %105, %cst_61 {dimension_numbers = #tpu.dot_dimension_numbers<[2], [1], [1], [2], [0, 0, 0, 1, 1, 2], [0], [0]>} : vector<4x16x16xbf16>, vector<4x16x16xbf16>, vector<4x16x16xf32> -> vector<4x16x16xf32>
      %121 = vector.broadcast %111 : vector<4x16x1xf32> to vector<4x16x16xf32>
      %122 = arith.mulf %121, %arg24 : vector<4x16x16xf32>
      %123 = arith.addf %122, %120 : vector<4x16x16xf32>
      scf.yield %109, %118, %123 : vector<4x16x1xf32>, vector<4x16x1xf32>, vector<4x16x16xf32>
    }
    %c2_i32_11 = arith.constant 2 : i32
    %23 = tpu.reciprocal %22#1 {approx = true} : vector<4x16x1xf32> -> vector<4x16x1xf32>
    %24 = vector.broadcast %23 : vector<4x16x1xf32> to vector<4x16x16xf32>
    %25 = arith.mulf %22#2, %24 : vector<4x16x16xf32>
    %26 = tpu.transpose %25, [1, 0, 2] : vector<4x16x16xf32> -> vector<16x4x16xf32>
    %27 = vector.shape_cast %26 : vector<16x4x16xf32> to vector<16x64xf32>
    %28 = arith.truncf %27 : vector<16x64xf32> to vector<16x64xbf16>
    %c0_12 = arith.constant 0 : index
    %c0_13 = arith.constant 0 : index
    %29 = vector.load %arg9[%c0_12, %c0_13] : memref<64x64xbf16, #tpu.memory_space<vmem>>, vector<64x64xbf16>
    %cst_14 = arith.constant dense<0.000000e+00> : vector<16x64xf32>
    %30 = tpu.matmul %28, %29, %cst_14 {dimension_numbers = #tpu.dot_dimension_numbers<[1], [0], [0], [1], [0, 0, 1, 1], [], []>} : vector<16x64xbf16>, vector<64x64xbf16>, vector<16x64xf32> -> vector<16x64xf32>
    %c0_15 = arith.constant 0 : index
    %c0_16 = arith.constant 0 : index
    %31 = vector.load %arg10[%c0_15, %c0_16] : memref<1x64xf32, #tpu.memory_space<vmem>>, vector<1x64xf32>
    %32 = vector.broadcast %31 : vector<1x64xf32> to vector<16x64xf32>
    %33 = arith.addf %30, %32 : vector<16x64xf32>
    %34 = arith.addf %7, %33 : vector<16x64xf32>
    %c0_17 = arith.constant 0 : index
    %c0_18 = arith.constant 0 : index
    %35 = vector.load %arg11[%c0_17, %c0_18] : memref<1x64xf32, #tpu.memory_space<vmem>>, vector<1x64xf32>
    %c0_19 = arith.constant 0 : index
    %c0_20 = arith.constant 0 : index
    %36 = vector.load %arg12[%c0_19, %c0_20] : memref<1x64xf32, #tpu.memory_space<vmem>>, vector<1x64xf32>
    %cst_21 = arith.constant dense<0.000000e+00> : vector<16xf32>
    %37 = vector.multi_reduction <add>, %34, %cst_21 [1] : vector<16x64xf32> to vector<16xf32>
    %38 = vector.shape_cast %37 : vector<16xf32> to vector<16x1xf32>
    %cst_22 = arith.constant 6.400000e+01 : f32
    %39 = vector.broadcast %cst_22 : f32 to vector<16x1xf32>
    %40 = arith.divf %38, %39 : vector<16x1xf32>
    %41 = vector.broadcast %40 : vector<16x1xf32> to vector<16x64xf32>
    %42 = arith.subf %34, %41 : vector<16x64xf32>
    %43 = arith.mulf %42, %42 : vector<16x64xf32>
    %cst_23 = arith.constant dense<0.000000e+00> : vector<16xf32>
    %44 = vector.multi_reduction <add>, %43, %cst_23 [1] : vector<16x64xf32> to vector<16xf32>
    %45 = vector.shape_cast %44 : vector<16xf32> to vector<16x1xf32>
    %cst_24 = arith.constant 6.400000e+01 : f32
    %46 = vector.broadcast %cst_24 : f32 to vector<16x1xf32>
    %47 = arith.divf %45, %46 : vector<16x1xf32>
    %cst_25 = arith.constant 9.99999974E-6 : f32
    %48 = vector.broadcast %cst_25 : f32 to vector<16x1xf32>
    %49 = arith.addf %47, %48 : vector<16x1xf32>
    %50 = math.rsqrt %49 : vector<16x1xf32>
    %51 = vector.broadcast %50 : vector<16x1xf32> to vector<16x64xf32>
    %52 = arith.mulf %42, %51 : vector<16x64xf32>
    %53 = vector.broadcast %35 : vector<1x64xf32> to vector<16x64xf32>
    %54 = arith.mulf %52, %53 : vector<16x64xf32>
    %55 = vector.broadcast %36 : vector<1x64xf32> to vector<16x64xf32>
    %56 = arith.addf %54, %55 : vector<16x64xf32>
    %57 = arith.truncf %56 : vector<16x64xf32> to vector<16x64xbf16>
    %cst_26 = arith.constant 0.000000e+00 : f32
    %58 = vector.broadcast %cst_26 : f32 to vector<16x64xf32>
    %c0_27 = arith.constant 0 : index
    %c0_28 = arith.constant 0 : index
    %59 = vector.load %arg13[%c0_27, %c0_28] : memref<64x256xbf16, #tpu.memory_space<vmem>>, vector<64x128xbf16>
    %cst_29 = arith.constant dense<0.000000e+00> : vector<16x128xf32>
    %60 = tpu.matmul %57, %59, %cst_29 {dimension_numbers = #tpu.dot_dimension_numbers<[1], [0], [0], [1], [0, 0, 1, 1], [], []>} : vector<16x64xbf16>, vector<64x128xbf16>, vector<16x128xf32> -> vector<16x128xf32>
    %c0_30 = arith.constant 0 : index
    %c0_31 = arith.constant 0 : index
    %61 = vector.load %arg14[%c0_30, %c0_31] : memref<1x256xf32, #tpu.memory_space<vmem>>, vector<1x128xf32>
    %62 = vector.broadcast %61 : vector<1x128xf32> to vector<16x128xf32>
    %63 = arith.addf %60, %62 : vector<16x128xf32>
    %cst_32 = arith.constant 5.000000e-01 : f32
    %64 = vector.broadcast %cst_32 : f32 to vector<16x128xf32>
    %65 = arith.mulf %64, %63 : vector<16x128xf32>
    %cst_33 = arith.constant 0.707106769 : f32
    %66 = vector.broadcast %cst_33 : f32 to vector<16x128xf32>
    %67 = arith.mulf %63, %66 : vector<16x128xf32>
    %68 = math.erf %67 : vector<16x128xf32>
    %cst_34 = arith.constant 1.000000e+00 : f32
    %69 = vector.broadcast %cst_34 : f32 to vector<16x128xf32>
    %70 = arith.addf %69, %68 : vector<16x128xf32>
    %71 = arith.mulf %65, %70 : vector<16x128xf32>
    %72 = arith.truncf %71 : vector<16x128xf32> to vector<16x128xbf16>
    %c0_35 = arith.constant 0 : index
    %c0_36 = arith.constant 0 : index
    %73 = vector.load %arg15[%c0_35, %c0_36] : memref<256x64xbf16, #tpu.memory_space<vmem>>, vector<128x64xbf16>
    %cst_37 = arith.constant dense<0.000000e+00> : vector<16x64xf32>
    %74 = tpu.matmul %72, %73, %cst_37 {dimension_numbers = #tpu.dot_dimension_numbers<[1], [0], [0], [1], [0, 0, 1, 1], [], []>} : vector<16x128xbf16>, vector<128x64xbf16>, vector<16x64xf32> -> vector<16x64xf32>
    %75 = arith.addf %58, %74 : vector<16x64xf32>
    %c0_38 = arith.constant 0 : index
    %c128 = arith.constant 128 : index
    %76 = vector.load %arg13[%c0_38, %c128] : memref<64x256xbf16, #tpu.memory_space<vmem>>, vector<64x128xbf16>
    %cst_39 = arith.constant dense<0.000000e+00> : vector<16x128xf32>
    %77 = tpu.matmul %57, %76, %cst_39 {dimension_numbers = #tpu.dot_dimension_numbers<[1], [0], [0], [1], [0, 0, 1, 1], [], []>} : vector<16x64xbf16>, vector<64x128xbf16>, vector<16x128xf32> -> vector<16x128xf32>
    %c0_40 = arith.constant 0 : index
    %c128_41 = arith.constant 128 : index
    %78 = vector.load %arg14[%c0_40, %c128_41] : memref<1x256xf32, #tpu.memory_space<vmem>>, vector<1x128xf32>
    %79 = vector.broadcast %78 : vector<1x128xf32> to vector<16x128xf32>
    %80 = arith.addf %77, %79 : vector<16x128xf32>
    %cst_42 = arith.constant 5.000000e-01 : f32
    %81 = vector.broadcast %cst_42 : f32 to vector<16x128xf32>
    %82 = arith.mulf %81, %80 : vector<16x128xf32>
    %cst_43 = arith.constant 0.707106769 : f32
    %83 = vector.broadcast %cst_43 : f32 to vector<16x128xf32>
    %84 = arith.mulf %80, %83 : vector<16x128xf32>
    %85 = math.erf %84 : vector<16x128xf32>
    %cst_44 = arith.constant 1.000000e+00 : f32
    %86 = vector.broadcast %cst_44 : f32 to vector<16x128xf32>
    %87 = arith.addf %86, %85 : vector<16x128xf32>
    %88 = arith.mulf %82, %87 : vector<16x128xf32>
    %89 = arith.truncf %88 : vector<16x128xf32> to vector<16x128xbf16>
    %c128_45 = arith.constant 128 : index
    %c0_46 = arith.constant 0 : index
    %90 = vector.load %arg15[%c128_45, %c0_46] : memref<256x64xbf16, #tpu.memory_space<vmem>>, vector<128x64xbf16>
    %cst_47 = arith.constant dense<0.000000e+00> : vector<16x64xf32>
    %91 = tpu.matmul %89, %90, %cst_47 {dimension_numbers = #tpu.dot_dimension_numbers<[1], [0], [0], [1], [0, 0, 1, 1], [], []>} : vector<16x128xbf16>, vector<128x64xbf16>, vector<16x64xf32> -> vector<16x64xf32>
    %92 = arith.addf %75, %91 : vector<16x64xf32>
    %c0_48 = arith.constant 0 : index
    %c0_49 = arith.constant 0 : index
    %93 = vector.load %arg16[%c0_48, %c0_49] : memref<1x64xf32, #tpu.memory_space<vmem>>, vector<1x64xf32>
    %94 = vector.broadcast %93 : vector<1x64xf32> to vector<16x64xf32>
    %95 = arith.addf %92, %94 : vector<16x64xf32>
    %96 = arith.addf %34, %95 : vector<16x64xf32>
    %c0_50 = arith.constant 0 : index
    %c0_51 = arith.constant 0 : index
    %c0_52 = arith.constant 0 : index
    %97 = vector.load %arg17[%c0_50, %c0_51, %c0_52] : memref<1x16x64xf32, #tpu.memory_space<vmem>>, vector<1x16x64xf32>
    %98 = vector.shape_cast %97 : vector<1x16x64xf32> to vector<16x64xf32>
    %99 = vector.shape_cast %96 : vector<16x64xf32> to vector<1x16x64xf32>
    tpu.vector_store %arg17[%c0_50, %c0_51, %c0_52], %99 {strides = array<i32>} : memref<1x16x64xf32, #tpu.memory_space<vmem>>, vector<1x16x64xf32>,
    return
  }
  func.func @transform_0(%arg0: i32, %arg1: i32) -> (i32, i32, i32) {
    %c0_i32 = arith.constant 0 : i32
    %c0_i32_0 = arith.constant 0 : i32
    %c0_i32_1 = arith.constant 0 : i32
    return %arg0, %c0_i32, %c0_i32_0 : i32, i32, i32
  }
  func.func @transform_1(%arg0: i32, %arg1: i32) -> (i32, i32) {
    %c0_i32 = arith.constant 0 : i32
    %c0_i32_0 = arith.constant 0 : i32
    %c0_i32_1 = arith.constant 0 : i32
    return %c0_i32, %c0_i32_0 : i32, i32
  }
  func.func @transform_2(%arg0: i32, %arg1: i32) -> (i32, i32) {
    %c0_i32 = arith.constant 0 : i32
    %c0_i32_0 = arith.constant 0 : i32
    %c0_i32_1 = arith.constant 0 : i32
    return %c0_i32, %c0_i32_0 : i32, i32
  }
  func.func @transform_3(%arg0: i32, %arg1: i32) -> (i32, i32) {
    %c0_i32 = arith.constant 0 : i32
    %c0_i32_0 = arith.constant 0 : i32
    %c0_i32_1 = arith.constant 0 : i32
    return %c0_i32, %c0_i32_0 : i32, i32
  }
  func.func @transform_4(%arg0: i32, %arg1: i32) -> (i32, i32) {
    %c0_i32 = arith.constant 0 : i32
    %c0_i32_0 = arith.constant 0 : i32
    %c0_i32_1 = arith.constant 0 : i32
    return %c0_i32, %c0_i32_0 : i32, i32
  }
  func.func @transform_5(%arg0: i32, %arg1: i32) -> (i32, i32) {
    %c0_i32 = arith.constant 0 : i32
    %c0_i32_0 = arith.constant 0 : i32
    %c0_i32_1 = arith.constant 0 : i32
    return %c0_i32, %c0_i32_0 : i32, i32
  }
  func.func @transform_6(%arg0: i32, %arg1: i32) -> (i32, i32) {
    %c0_i32 = arith.constant 0 : i32
    %c0_i32_0 = arith.constant 0 : i32
    %c0_i32_1 = arith.constant 0 : i32
    return %c0_i32, %c0_i32_0 : i32, i32
  }
  func.func @transform_7(%arg0: i32, %arg1: i32) -> (i32, i32) {
    %c0_i32 = arith.constant 0 : i32
    %c0_i32_0 = arith.constant 0 : i32
    %c0_i32_1 = arith.constant 0 : i32
    return %c0_i32, %c0_i32_0 : i32, i32
  }
  func.func @transform_8(%arg0: i32, %arg1: i32) -> (i32, i32) {
    %c0_i32 = arith.constant 0 : i32
    %c0_i32_0 = arith.constant 0 : i32
    %c0_i32_1 = arith.constant 0 : i32
    return %c0_i32, %c0_i32_0 : i32, i32
  }
  func.func @transform_9(%arg0: i32, %arg1: i32) -> (i32, i32) {
    %c0_i32 = arith.constant 0 : i32
    %c0_i32_0 = arith.constant 0 : i32
    %c0_i32_1 = arith.constant 0 : i32
    return %c0_i32, %c0_i32_0 : i32, i32
  }
  func.func @transform_10(%arg0: i32, %arg1: i32) -> (i32, i32) {
    %c0_i32 = arith.constant 0 : i32
    %c0_i32_0 = arith.constant 0 : i32
    %c0_i32_1 = arith.constant 0 : i32
    return %c0_i32, %c0_i32_0 : i32, i32
  }
  func.func @transform_11(%arg0: i32, %arg1: i32) -> (i32, i32) {
    %c0_i32 = arith.constant 0 : i32
    %c0_i32_0 = arith.constant 0 : i32
    %c0_i32_1 = arith.constant 0 : i32
    return %c0_i32, %c0_i32_0 : i32, i32
  }
  func.func @transform_12(%arg0: i32, %arg1: i32) -> (i32, i32) {
    %c0_i32 = arith.constant 0 : i32
    %c0_i32_0 = arith.constant 0 : i32
    %c0_i32_1 = arith.constant 0 : i32
    return %c0_i32, %c0_i32_0 : i32, i32
  }
  func.func @transform_13(%arg0: i32, %arg1: i32) -> (i32, i32) {
    %c0_i32 = arith.constant 0 : i32
    %c0_i32_0 = arith.constant 0 : i32
    %c0_i32_1 = arith.constant 0 : i32
    return %c0_i32, %c0_i32_0 : i32, i32
  }
  func.func @transform_14(%arg0: i32, %arg1: i32) -> (i32, i32) {
    %c0_i32 = arith.constant 0 : i32
    %c0_i32_0 = arith.constant 0 : i32
    %c0_i32_1 = arith.constant 0 : i32
    return %c0_i32, %c0_i32_0 : i32, i32
  }
  func.func @transform_15(%arg0: i32, %arg1: i32) -> (i32, i32, i32) {
    %c0_i32 = arith.constant 0 : i32
    %c0_i32_0 = arith.constant 0 : i32
    return %arg0, %arg1, %c0_i32 : i32, i32, i32
  }
}

module attributes {stable_mosaic.version = 11 : i64} {
  func.func @_block_kernel(%arg0: i32, %arg1: i32, %arg2: memref<1x32x64xf32, #tpu.memory_space<vmem>>, %arg3: memref<1x64xf32, #tpu.memory_space<vmem>>, %arg4: memref<1x64xf32, #tpu.memory_space<vmem>>, %arg5: memref<64x64xbf16, #tpu.memory_space<vmem>>, %arg6: memref<1x64xf32, #tpu.memory_space<vmem>>, %arg7: memref<64x128xbf16, #tpu.memory_space<vmem>>, %arg8: memref<1x128xf32, #tpu.memory_space<vmem>>, %arg9: memref<64x64xbf16, #tpu.memory_space<vmem>>, %arg10: memref<1x64xf32, #tpu.memory_space<vmem>>, %arg11: memref<1x64xf32, #tpu.memory_space<vmem>>, %arg12: memref<1x64xf32, #tpu.memory_space<vmem>>, %arg13: memref<64x256xbf16, #tpu.memory_space<vmem>>, %arg14: memref<1x256xf32, #tpu.memory_space<vmem>>, %arg15: memref<256x64xbf16, #tpu.memory_space<vmem>>, %arg16: memref<1x64xf32, #tpu.memory_space<vmem>>, %arg17: memref<1x16x64xf32, #tpu.memory_space<vmem>>, %arg18: memref<32x64xbf16, #tpu.memory_space<vmem>>, %arg19: memref<4x32x16xbf16, #tpu.memory_space<vmem>>, %arg20: memref<4x32x16xbf16, #tpu.memory_space<vmem>>) attributes {dimension_semantics = [#tpu.dimension_semantics<parallel>, #tpu.dimension_semantics<arbitrary>], iteration_bounds = array<i64: 2, 2>, scalar_prefetch = 0 : i64, scratch_operands = 3 : i64, tpu.core_type = #tpu.core_type<tc>, window_params = [{transform_indices = @transform_0, window_bounds = array<i64: 1, 32, 64>}, {pipeline_mode = #tpu.pipeline_mode<synchronous>, transform_indices = @transform_1, window_bounds = array<i64: 1, 64>}, {pipeline_mode = #tpu.pipeline_mode<synchronous>, transform_indices = @transform_2, window_bounds = array<i64: 1, 64>}, {pipeline_mode = #tpu.pipeline_mode<synchronous>, transform_indices = @transform_3, window_bounds = array<i64: 64, 64>}, {pipeline_mode = #tpu.pipeline_mode<synchronous>, transform_indices = @transform_4, window_bounds = array<i64: 1, 64>}, {pipeline_mode = #tpu.pipeline_mode<synchronous>, transform_indices = @transform_5, window_bounds = array<i64: 64, 128>}, {pipeline_mode = #tpu.pipeline_mode<synchronous>, transform_indices = @transform_6, window_bounds = array<i64: 1, 128>}, {pipeline_mode = #tpu.pipeline_mode<synchronous>, transform_indices = @transform_7, window_bounds = array<i64: 64, 64>}, {pipeline_mode = #tpu.pipeline_mode<synchronous>, transform_indices = @transform_8, window_bounds = array<i64: 1, 64>}, {pipeline_mode = #tpu.pipeline_mode<synchronous>, transform_indices = @transform_9, window_bounds = array<i64: 1, 64>}, {pipeline_mode = #tpu.pipeline_mode<synchronous>, transform_indices = @transform_10, window_bounds = array<i64: 1, 64>}, {pipeline_mode = #tpu.pipeline_mode<synchronous>, transform_indices = @transform_11, window_bounds = array<i64: 64, 256>}, {pipeline_mode = #tpu.pipeline_mode<synchronous>, transform_indices = @transform_12, window_bounds = array<i64: 1, 256>}, {pipeline_mode = #tpu.pipeline_mode<synchronous>, transform_indices = @transform_13, window_bounds = array<i64: 256, 64>}, {pipeline_mode = #tpu.pipeline_mode<synchronous>, transform_indices = @transform_14, window_bounds = array<i64: 1, 64>}, {transform_indices = @transform_15, window_bounds = array<i64: 1, 16, 64>}]} {
    %c0_i32 = arith.constant 0 : i32
    %0 = arith.cmpi eq, %arg1, %c0_i32 : i32
    %1 = arith.extui %0 : i1 to i32
    %c0_i32_0 = arith.constant 0 : i32
    %2 = arith.cmpi ne, %1, %c0_i32_0 : i32
    scf.if %2 {
      %c0_i32_53 = arith.constant 0 : i32
      %c2_i32_54 = arith.constant 2 : i32
      %100 = arith.addi %c0_i32_53, %c2_i32_54 : i32
      %c1_i32_55 = arith.constant 1 : i32
      scf.for %arg21 = %c0_i32_53 to %100 step %c1_i32_55  : i32 {
        %c16_i32_57 = arith.constant 16 : i32
        %101 = arith.muli %arg21, %c16_i32_57 : i32
        %102 = tpu.assume_multiple %101, 16 : i32
        %c0_58 = arith.constant 0 : index
        %103 = arith.index_cast %102 : i32 to index
        %c0_59 = arith.constant 0 : index
        %104 = vector.load %arg2[%c0_58, %103, %c0_59] : memref<1x32x64xf32, #tpu.memory_space<vmem>>, vector<1x16x64xf32>
        %105 = vector.shape_cast %104 : vector<1x16x64xf32> to vector<16x64xf32>
        %c0_60 = arith.constant 0 : index
        %c0_61 = arith.constant 0 : index
        %106 = vector.load %arg3[%c0_60, %c0_61] : memref<1x64xf32, #tpu.memory_space<vmem>>, vector<1x64xf32>
        %c0_62 = arith.constant 0 : index
        %c0_63 = arith.constant 0 : index
        %107 = vector.load %arg4[%c0_62, %c0_63] : memref<1x64xf32, #tpu.memory_space<vmem>>, vector<1x64xf32>
        %cst_64 = arith.constant dense<0.000000e+00> : vector<16xf32>
        %108 = vector.multi_reduction <add>, %105, %cst_64 [1] : vector<16x64xf32> to vector<16xf32>
        %109 = vector.shape_cast %108 : vector<16xf32> to vector<16x1xf32>
        %cst_65 = arith.constant 6.400000e+01 : f32
        %110 = vector.broadcast %cst_65 : f32 to vector<16x1xf32>
        %111 = arith.divf %109, %110 : vector<16x1xf32>
        %112 = vector.broadcast %111 : vector<16x1xf32> to vector<16x64xf32>
        %113 = arith.subf %105, %112 : vector<16x64xf32>
        %114 = arith.mulf %113, %113 : vector<16x64xf32>
        %cst_66 = arith.constant dense<0.000000e+00> : vector<16xf32>
        %115 = vector.multi_reduction <add>, %114, %cst_66 [1] : vector<16x64xf32> to vector<16xf32>
        %116 = vector.shape_cast %115 : vector<16xf32> to vector<16x1xf32>
        %cst_67 = arith.constant 6.400000e+01 : f32
        %117 = vector.broadcast %cst_67 : f32 to vector<16x1xf32>
        %118 = arith.divf %116, %117 : vector<16x1xf32>
        %cst_68 = arith.constant 9.99999974E-6 : f32
        %119 = vector.broadcast %cst_68 : f32 to vector<16x1xf32>
        %120 = arith.addf %118, %119 : vector<16x1xf32>
        %121 = math.rsqrt %120 : vector<16x1xf32>
        %122 = vector.broadcast %121 : vector<16x1xf32> to vector<16x64xf32>
        %123 = arith.mulf %113, %122 : vector<16x64xf32>
        %124 = vector.broadcast %106 : vector<1x64xf32> to vector<16x64xf32>
        %125 = arith.mulf %123, %124 : vector<16x64xf32>
        %126 = vector.broadcast %107 : vector<1x64xf32> to vector<16x64xf32>
        %127 = arith.addf %125, %126 : vector<16x64xf32>
        %128 = arith.truncf %127 : vector<16x64xf32> to vector<16x64xbf16>
        %129 = arith.index_cast %102 : i32 to index
        %c0_69 = arith.constant 0 : index
        %130 = vector.load %arg18[%129, %c0_69] : memref<32x64xbf16, #tpu.memory_space<vmem>>, vector<16x64xbf16>
        tpu.vector_store %arg18[%129, %c0_69], %128 {strides = array<i32>} : memref<32x64xbf16, #tpu.memory_space<vmem>>, vector<16x64xbf16>,
        %c0_70 = arith.constant 0 : index
        %c0_71 = arith.constant 0 : index
        %131 = vector.load %arg7[%c0_70, %c0_71] : memref<64x128xbf16, #tpu.memory_space<vmem>>, vector<64x128xbf16>
        %cst_72 = arith.constant dense<0.000000e+00> : vector<16x128xf32>
        %132 = tpu.matmul %128, %131, %cst_72 {dimension_numbers = #tpu.dot_dimension_numbers<[1], [0], [0], [1], [0, 0, 1, 1], [], []>} : vector<16x64xbf16>, vector<64x128xbf16>, vector<16x128xf32> -> vector<16x128xf32>
        %c0_73 = arith.constant 0 : index
        %c0_74 = arith.constant 0 : index
        %133 = vector.load %arg8[%c0_73, %c0_74] : memref<1x128xf32, #tpu.memory_space<vmem>>, vector<1x128xf32>
        %134 = vector.broadcast %133 : vector<1x128xf32> to vector<16x128xf32>
        %135 = arith.addf %132, %134 : vector<16x128xf32>
        %136 = arith.truncf %135 : vector<16x128xf32> to vector<16x128xbf16>
        %137 = vector.extract_strided_slice %136 {offsets = [0, 0], sizes = [16, 64], strides = [1, 1]} : vector<16x128xbf16> to vector<16x64xbf16>
        %138 = vector.shape_cast %137 : vector<16x64xbf16> to vector<16x4x16xbf16>
        %139 = tpu.transpose %138, [1, 0, 2] : vector<16x4x16xbf16> -> vector<4x16x16xbf16>
        %c0_75 = arith.constant 0 : index
        %140 = arith.index_cast %102 : i32 to index
        %c0_76 = arith.constant 0 : index
        %141 = vector.load %arg19[%c0_75, %140, %c0_76] : memref<4x32x16xbf16, #tpu.memory_space<vmem>>, vector<4x16x16xbf16>
        tpu.vector_store %arg19[%c0_75, %140, %c0_76], %139 {strides = array<i32>} : memref<4x32x16xbf16, #tpu.memory_space<vmem>>, vector<4x16x16xbf16>,
        %142 = vector.extract_strided_slice %136 {offsets = [0, 64], sizes = [16, 64], strides = [1, 1]} : vector<16x128xbf16> to vector<16x64xbf16>
        %143 = vector.shape_cast %142 : vector<16x64xbf16> to vector<16x4x16xbf16>
        %144 = tpu.transpose %143, [1, 0, 2] : vector<16x4x16xbf16> -> vector<4x16x16xbf16>
        %c0_77 = arith.constant 0 : index
        %145 = arith.index_cast %102 : i32 to index
        %c0_78 = arith.constant 0 : index
        %146 = vector.load %arg20[%c0_77, %145, %c0_78] : memref<4x32x16xbf16, #tpu.memory_space<vmem>>, vector<4x16x16xbf16>
        tpu.vector_store %arg20[%c0_77, %145, %c0_78], %144 {strides = array<i32>} : memref<4x32x16xbf16, #tpu.memory_space<vmem>>, vector<4x16x16xbf16>,
      }
      %c2_i32_56 = arith.constant 2 : i32
    } else {
    }
    %c16_i32 = arith.constant 16 : i32
    %3 = arith.muli %arg1, %c16_i32 : i32
    %4 = tpu.assume_multiple %3, 16 : i32
    %c0 = arith.constant 0 : index
    %5 = arith.index_cast %4 : i32 to index
    %c0_1 = arith.constant 0 : index
    %6 = vector.load %arg2[%c0, %5, %c0_1] : memref<1x32x64xf32, #tpu.memory_space<vmem>>, vector<1x16x64xf32>
    %7 = vector.shape_cast %6 : vector<1x16x64xf32> to vector<16x64xf32>
    %8 = arith.index_cast %4 : i32 to index
    %c0_2 = arith.constant 0 : index
    %9 = vector.load %arg18[%8, %c0_2] : memref<32x64xbf16, #tpu.memory_space<vmem>>, vector<16x64xbf16>
    %c0_3 = arith.constant 0 : index
    %c0_4 = arith.constant 0 : index
    %10 = vector.load %arg5[%c0_3, %c0_4] : memref<64x64xbf16, #tpu.memory_space<vmem>>, vector<64x64xbf16>
    %cst = arith.constant dense<0.000000e+00> : vector<16x64xf32>
    %11 = tpu.matmul %9, %10, %cst {dimension_numbers = #tpu.dot_dimension_numbers<[1], [0], [0], [1], [0, 0, 1, 1], [], []>} : vector<16x64xbf16>, vector<64x64xbf16>, vector<16x64xf32> -> vector<16x64xf32>
    %c0_5 = arith.constant 0 : index
    %c0_6 = arith.constant 0 : index
    %12 = vector.load %arg6[%c0_5, %c0_6] : memref<1x64xf32, #tpu.memory_space<vmem>>, vector<1x64xf32>
    %13 = vector.broadcast %12 : vector<1x64xf32> to vector<16x64xf32>
    %14 = arith.addf %11, %13 : vector<16x64xf32>
    %15 = arith.truncf %14 : vector<16x64xf32> to vector<16x64xbf16>
    %16 = vector.shape_cast %15 : vector<16x64xbf16> to vector<16x4x16xbf16>
    %17 = tpu.transpose %16, [1, 0, 2] : vector<16x4x16xbf16> -> vector<4x16x16xbf16>
    %cst_7 = arith.constant 0xFF800000 : f32
    %18 = vector.broadcast %cst_7 : f32 to vector<4x16x1xf32>
    %cst_8 = arith.constant 0.000000e+00 : f32
    %19 = vector.broadcast %cst_8 : f32 to vector<4x16x1xf32>
    %cst_9 = arith.constant 0.000000e+00 : f32
    %20 = vector.broadcast %cst_9 : f32 to vector<4x16x16xf32>
    %c0_i32_10 = arith.constant 0 : i32
    %c2_i32 = arith.constant 2 : i32
    %21 = arith.addi %c0_i32_10, %c2_i32 : i32
    %c1_i32 = arith.constant 1 : i32
    %22:3 = scf.for %arg21 = %c0_i32_10 to %21 step %c1_i32 iter_args(%arg22 = %18, %arg23 = %19, %arg24 = %20) -> (vector<4x16x1xf32>, vector<4x16x1xf32>, vector<4x16x16xf32>)  : i32 {
      %c16_i32_53 = arith.constant 16 : i32
      %100 = arith.muli %arg21, %c16_i32_53 : i32
      %101 = tpu.assume_multiple %100, 16 : i32
      %c0_54 = arith.constant 0 : index
      %102 = arith.index_cast %101 : i32 to index
      %c0_55 = arith.constant 0 : index
      %103 = vector.load %arg19[%c0_54, %102, %c0_55] : memref<4x32x16xbf16, #tpu.memory_space<vmem>>, vector<4x16x16xbf16>
      %c0_56 = arith.constant 0 : index
      %104 = arith.index_cast %101 : i32 to index
      %c0_57 = arith.constant 0 : index
      %105 = vector.load %arg20[%c0_56, %104, %c0_57] : memref<4x32x16xbf16, #tpu.memory_space<vmem>>, vector<4x16x16xbf16>
      %cst_58 = arith.constant dense<0.000000e+00> : vector<4x16x16xf32>
      %106 = tpu.matmul %17, %103, %cst_58 {dimension_numbers = #tpu.dot_dimension_numbers<[2], [2], [1], [1], [0, 0, 0, 1, 1, 1], [0], [0]>} : vector<4x16x16xbf16>, vector<4x16x16xbf16>, vector<4x16x16xf32> -> vector<4x16x16xf32>
      %cst_59 = arith.constant dense<0xFF800000> : vector<4x16xf32>
      %107 = vector.multi_reduction <maximumf>, %106, %cst_59 [2] : vector<4x16x16xf32> to vector<4x16xf32>
      %108 = vector.shape_cast %107 : vector<4x16xf32> to vector<4x16x1xf32>
      %109 = arith.maximumf %arg22, %108 : vector<4x16x1xf32>
      %110 = arith.subf %arg22, %109 : vector<4x16x1xf32>
      %111 = math.exp %110 : vector<4x16x1xf32>
      %112 = vector.broadcast %109 : vector<4x16x1xf32> to vector<4x16x16xf32>
      %113 = arith.subf %106, %112 : vector<4x16x16xf32>
      %114 = math.exp %113 : vector<4x16x16xf32>
      %115 = arith.mulf %111, %arg23 : vector<4x16x1xf32>
      %cst_60 = arith.constant dense<0.000000e+00> : vector<4x16xf32>
      %116 = vector.multi_reduction <add>, %114, %cst_60 [2] : vector<4x16x16xf32> to vector<4x16xf32>
      %117 = vector.shape_cast %116 : vector<4x16xf32> to vector<4x16x1xf32>
      %118 = arith.addf %115, %117 : vector<4x16x1xf32>
      %119 = arith.truncf %114 : vector<4x16x16xf32> to vector<4x16x16xbf16>
      %cst_61 = arith.constant dense<0.000000e+00> : vector<4x16x16xf32>
      %120 = tpu.matmul %119, %105, %cst_61 {dimension_numbers = #tpu.dot_dimension_numbers<[2], [1], [1], [2], [0, 0, 0, 1, 1, 2], [0], [0]>} : vector<4x16x16xbf16>, vector<4x16x16xbf16>, vector<4x16x16xf32> -> vector<4x16x16xf32>
      %121 = vector.broadcast %111 : vector<4x16x1xf32> to vector<4x16x16xf32>
      %122 = arith.mulf %121, %arg24 : vector<4x16x16xf32>
      %123 = arith.addf %122, %120 : vector<4x16x16xf32>
      scf.yield %109, %118, %123 : vector<4x16x1xf32>, vector<4x16x1xf32>, vector<4x16x16xf32>
    }
    %c2_i32_11 = arith.constant 2 : i32
    %23 = tpu.reciprocal %22#1 {approx = true} : vector<4x16x1xf32> -> vector<4x16x1xf32>
    %24 = vector.broadcast %23 : vector<4x16x1xf32> to vector<4x16x16xf32>
    %25 = arith.mulf %22#2, %24 : vector<4x16x16xf32>
    %26 = tpu.transpose %25, [1, 0, 2] : vector<4x16x16xf32> -> vector<16x4x16xf32>
    %27 = vector.shape_cast %26 : vector<16x4x16xf32> to vector<16x64xf32>
    %28 = arith.truncf %27 : vector<16x64xf32> to vector<16x64xbf16>
    %c0_12 = arith.constant 0 : index
    %c0_13 = arith.constant 0 : index
    %29 = vector.load %arg9[%c0_12, %c0_13] : memref<64x64xbf16, #tpu.memory_space<vmem>>, vector<64x64xbf16>
    %cst_14 = arith.constant dense<0.000000e+00> : vector<16x64xf32>
    %30 = tpu.matmul %28, %29, %cst_14 {dimension_numbers = #tpu.dot_dimension_numbers<[1], [0], [0], [1], [0, 0, 1, 1], [], []>} : vector<16x64xbf16>, vector<64x64xbf16>, vector<16x64xf32> -> vector<16x64xf32>
    %c0_15 = arith.constant 0 : index
    %c0_16 = arith.constant 0 : index
    %31 = vector.load %arg10[%c0_15, %c0_16] : memref<1x64xf32, #tpu.memory_space<vmem>>, vector<1x64xf32>
    %32 = vector.broadcast %31 : vector<1x64xf32> to vector<16x64xf32>
    %33 = arith.addf %30, %32 : vector<16x64xf32>
    %34 = arith.addf %7, %33 : vector<16x64xf32>
    %c0_17 = arith.constant 0 : index
    %c0_18 = arith.constant 0 : index
    %35 = vector.load %arg11[%c0_17, %c0_18] : memref<1x64xf32, #tpu.memory_space<vmem>>, vector<1x64xf32>
    %c0_19 = arith.constant 0 : index
    %c0_20 = arith.constant 0 : index
    %36 = vector.load %arg12[%c0_19, %c0_20] : memref<1x64xf32, #tpu.memory_space<vmem>>, vector<1x64xf32>
    %cst_21 = arith.constant dense<0.000000e+00> : vector<16xf32>
    %37 = vector.multi_reduction <add>, %34, %cst_21 [1] : vector<16x64xf32> to vector<16xf32>
    %38 = vector.shape_cast %37 : vector<16xf32> to vector<16x1xf32>
    %cst_22 = arith.constant 6.400000e+01 : f32
    %39 = vector.broadcast %cst_22 : f32 to vector<16x1xf32>
    %40 = arith.divf %38, %39 : vector<16x1xf32>
    %41 = vector.broadcast %40 : vector<16x1xf32> to vector<16x64xf32>
    %42 = arith.subf %34, %41 : vector<16x64xf32>
    %43 = arith.mulf %42, %42 : vector<16x64xf32>
    %cst_23 = arith.constant dense<0.000000e+00> : vector<16xf32>
    %44 = vector.multi_reduction <add>, %43, %cst_23 [1] : vector<16x64xf32> to vector<16xf32>
    %45 = vector.shape_cast %44 : vector<16xf32> to vector<16x1xf32>
    %cst_24 = arith.constant 6.400000e+01 : f32
    %46 = vector.broadcast %cst_24 : f32 to vector<16x1xf32>
    %47 = arith.divf %45, %46 : vector<16x1xf32>
    %cst_25 = arith.constant 9.99999974E-6 : f32
    %48 = vector.broadcast %cst_25 : f32 to vector<16x1xf32>
    %49 = arith.addf %47, %48 : vector<16x1xf32>
    %50 = math.rsqrt %49 : vector<16x1xf32>
    %51 = vector.broadcast %50 : vector<16x1xf32> to vector<16x64xf32>
    %52 = arith.mulf %42, %51 : vector<16x64xf32>
    %53 = vector.broadcast %35 : vector<1x64xf32> to vector<16x64xf32>
    %54 = arith.mulf %52, %53 : vector<16x64xf32>
    %55 = vector.broadcast %36 : vector<1x64xf32> to vector<16x64xf32>
    %56 = arith.addf %54, %55 : vector<16x64xf32>
    %57 = arith.truncf %56 : vector<16x64xf32> to vector<16x64xbf16>
    %cst_26 = arith.constant 0.000000e+00 : f32
    %58 = vector.broadcast %cst_26 : f32 to vector<16x64xf32>
    %c0_27 = arith.constant 0 : index
    %c0_28 = arith.constant 0 : index
    %59 = vector.load %arg13[%c0_27, %c0_28] : memref<64x256xbf16, #tpu.memory_space<vmem>>, vector<64x128xbf16>
    %cst_29 = arith.constant dense<0.000000e+00> : vector<16x128xf32>
    %60 = tpu.matmul %57, %59, %cst_29 {dimension_numbers = #tpu.dot_dimension_numbers<[1], [0], [0], [1], [0, 0, 1, 1], [], []>} : vector<16x64xbf16>, vector<64x128xbf16>, vector<16x128xf32> -> vector<16x128xf32>
    %c0_30 = arith.constant 0 : index
    %c0_31 = arith.constant 0 : index
    %61 = vector.load %arg14[%c0_30, %c0_31] : memref<1x256xf32, #tpu.memory_space<vmem>>, vector<1x128xf32>
    %62 = vector.broadcast %61 : vector<1x128xf32> to vector<16x128xf32>
    %63 = arith.addf %60, %62 : vector<16x128xf32>
    %cst_32 = arith.constant 5.000000e-01 : f32
    %64 = vector.broadcast %cst_32 : f32 to vector<16x128xf32>
    %65 = arith.mulf %64, %63 : vector<16x128xf32>
    %cst_33 = arith.constant 0.707106769 : f32
    %66 = vector.broadcast %cst_33 : f32 to vector<16x128xf32>
    %67 = arith.mulf %63, %66 : vector<16x128xf32>
    %68 = math.erf %67 : vector<16x128xf32>
    %cst_34 = arith.constant 1.000000e+00 : f32
    %69 = vector.broadcast %cst_34 : f32 to vector<16x128xf32>
    %70 = arith.addf %69, %68 : vector<16x128xf32>
    %71 = arith.mulf %65, %70 : vector<16x128xf32>
    %72 = arith.truncf %71 : vector<16x128xf32> to vector<16x128xbf16>
    %c0_35 = arith.constant 0 : index
    %c0_36 = arith.constant 0 : index
    %73 = vector.load %arg15[%c0_35, %c0_36] : memref<256x64xbf16, #tpu.memory_space<vmem>>, vector<128x64xbf16>
    %cst_37 = arith.constant dense<0.000000e+00> : vector<16x64xf32>
    %74 = tpu.matmul %72, %73, %cst_37 {dimension_numbers = #tpu.dot_dimension_numbers<[1], [0], [0], [1], [0, 0, 1, 1], [], []>} : vector<16x128xbf16>, vector<128x64xbf16>, vector<16x64xf32> -> vector<16x64xf32>
    %75 = arith.addf %58, %74 : vector<16x64xf32>
    %c0_38 = arith.constant 0 : index
    %c128 = arith.constant 128 : index
    %76 = vector.load %arg13[%c0_38, %c128] : memref<64x256xbf16, #tpu.memory_space<vmem>>, vector<64x128xbf16>
    %cst_39 = arith.constant dense<0.000000e+00> : vector<16x128xf32>
    %77 = tpu.matmul %57, %76, %cst_39 {dimension_numbers = #tpu.dot_dimension_numbers<[1], [0], [0], [1], [0, 0, 1, 1], [], []>} : vector<16x64xbf16>, vector<64x128xbf16>, vector<16x128xf32> -> vector<16x128xf32>
    %c0_40 = arith.constant 0 : index
    %c128_41 = arith.constant 128 : index
    %78 = vector.load %arg14[%c0_40, %c128_41] : memref<1x256xf32, #tpu.memory_space<vmem>>, vector<1x128xf32>
    %79 = vector.broadcast %78 : vector<1x128xf32> to vector<16x128xf32>
    %80 = arith.addf %77, %79 : vector<16x128xf32>
    %cst_42 = arith.constant 5.000000e-01 : f32
    %81 = vector.broadcast %cst_42 : f32 to vector<16x128xf32>
    %82 = arith.mulf %81, %80 : vector<16x128xf32>
    %cst_43 = arith.constant 0.707106769 : f32
    %83 = vector.broadcast %cst_43 : f32 to vector<16x128xf32>
    %84 = arith.mulf %80, %83 : vector<16x128xf32>
    %85 = math.erf %84 : vector<16x128xf32>
    %cst_44 = arith.constant 1.000000e+00 : f32
    %86 = vector.broadcast %cst_44 : f32 to vector<16x128xf32>
    %87 = arith.addf %86, %85 : vector<16x128xf32>
    %88 = arith.mulf %82, %87 : vector<16x128xf32>
    %89 = arith.truncf %88 : vector<16x128xf32> to vector<16x128xbf16>
    %c128_45 = arith.constant 128 : index
    %c0_46 = arith.constant 0 : index
    %90 = vector.load %arg15[%c128_45, %c0_46] : memref<256x64xbf16, #tpu.memory_space<vmem>>, vector<128x64xbf16>
    %cst_47 = arith.constant dense<0.000000e+00> : vector<16x64xf32>
    %91 = tpu.matmul %89, %90, %cst_47 {dimension_numbers = #tpu.dot_dimension_numbers<[1], [0], [0], [1], [0, 0, 1, 1], [], []>} : vector<16x128xbf16>, vector<128x64xbf16>, vector<16x64xf32> -> vector<16x64xf32>
    %92 = arith.addf %75, %91 : vector<16x64xf32>
    %c0_48 = arith.constant 0 : index
    %c0_49 = arith.constant 0 : index
    %93 = vector.load %arg16[%c0_48, %c0_49] : memref<1x64xf32, #tpu.memory_space<vmem>>, vector<1x64xf32>
    %94 = vector.broadcast %93 : vector<1x64xf32> to vector<16x64xf32>
    %95 = arith.addf %92, %94 : vector<16x64xf32>
    %96 = arith.addf %34, %95 : vector<16x64xf32>
    %c0_50 = arith.constant 0 : index
    %c0_51 = arith.constant 0 : index
    %c0_52 = arith.constant 0 : index
    %97 = vector.load %arg17[%c0_50, %c0_51, %c0_52] : memref<1x16x64xf32, #tpu.memory_space<vmem>>, vector<1x16x64xf32>
    %98 = vector.shape_cast %97 : vector<1x16x64xf32> to vector<16x64xf32>
    %99 = vector.shape_cast %96 : vector<16x64xf32> to vector<1x16x64xf32>
    tpu.vector_store %arg17[%c0_50, %c0_51, %c0_52], %99 {strides = array<i32>} : memref<1x16x64xf32, #tpu.memory_space<vmem>>, vector<1x16x64xf32>,
    return
  }
  func.func @transform_0(%arg0: i32, %arg1: i32) -> (i32, i32, i32) {
    %c0_i32 = arith.constant 0 : i32
    %c0_i32_0 = arith.constant 0 : i32
    %c0_i32_1 = arith.constant 0 : i32
    return %arg0, %c0_i32, %c0_i32_0 : i32, i32, i32
  }
  func.func @transform_1(%arg0: i32, %arg1: i32) -> (i32, i32) {
    %c0_i32 = arith.constant 0 : i32
    %c0_i32_0 = arith.constant 0 : i32
    %c0_i32_1 = arith.constant 0 : i32
    return %c0_i32, %c0_i32_0 : i32, i32
  }
  func.func @transform_2(%arg0: i32, %arg1: i32) -> (i32, i32) {
    %c0_i32 = arith.constant 0 : i32
    %c0_i32_0 = arith.constant 0 : i32
    %c0_i32_1 = arith.constant 0 : i32
    return %c0_i32, %c0_i32_0 : i32, i32
  }
  func.func @transform_3(%arg0: i32, %arg1: i32) -> (i32, i32) {
    %c0_i32 = arith.constant 0 : i32
    %c0_i32_0 = arith.constant 0 : i32
    %c0_i32_1 = arith.constant 0 : i32
    return %c0_i32, %c0_i32_0 : i32, i32
  }
  func.func @transform_4(%arg0: i32, %arg1: i32) -> (i32, i32) {
    %c0_i32 = arith.constant 0 : i32
    %c0_i32_0 = arith.constant 0 : i32
    %c0_i32_1 = arith.constant 0 : i32
    return %c0_i32, %c0_i32_0 : i32, i32
  }
  func.func @transform_5(%arg0: i32, %arg1: i32) -> (i32, i32) {
    %c0_i32 = arith.constant 0 : i32
    %c0_i32_0 = arith.constant 0 : i32
    %c0_i32_1 = arith.constant 0 : i32
    return %c0_i32, %c0_i32_0 : i32, i32
  }
  func.func @transform_6(%arg0: i32, %arg1: i32) -> (i32, i32) {
    %c0_i32 = arith.constant 0 : i32
    %c0_i32_0 = arith.constant 0 : i32
    %c0_i32_1 = arith.constant 0 : i32
    return %c0_i32, %c0_i32_0 : i32, i32
  }
  func.func @transform_7(%arg0: i32, %arg1: i32) -> (i32, i32) {
    %c0_i32 = arith.constant 0 : i32
    %c0_i32_0 = arith.constant 0 : i32
    %c0_i32_1 = arith.constant 0 : i32
    return %c0_i32, %c0_i32_0 : i32, i32
  }
  func.func @transform_8(%arg0: i32, %arg1: i32) -> (i32, i32) {
    %c0_i32 = arith.constant 0 : i32
    %c0_i32_0 = arith.constant 0 : i32
    %c0_i32_1 = arith.constant 0 : i32
    return %c0_i32, %c0_i32_0 : i32, i32
  }
  func.func @transform_9(%arg0: i32, %arg1: i32) -> (i32, i32) {
    %c0_i32 = arith.constant 0 : i32
    %c0_i32_0 = arith.constant 0 : i32
    %c0_i32_1 = arith.constant 0 : i32
    return %c0_i32, %c0_i32_0 : i32, i32
  }
  func.func @transform_10(%arg0: i32, %arg1: i32) -> (i32, i32) {
    %c0_i32 = arith.constant 0 : i32
    %c0_i32_0 = arith.constant 0 : i32
    %c0_i32_1 = arith.constant 0 : i32
    return %c0_i32, %c0_i32_0 : i32, i32
  }
  func.func @transform_11(%arg0: i32, %arg1: i32) -> (i32, i32) {
    %c0_i32 = arith.constant 0 : i32
    %c0_i32_0 = arith.constant 0 : i32
    %c0_i32_1 = arith.constant 0 : i32
    return %c0_i32, %c0_i32_0 : i32, i32
  }
  func.func @transform_12(%arg0: i32, %arg1: i32) -> (i32, i32) {
    %c0_i32 = arith.constant 0 : i32
    %c0_i32_0 = arith.constant 0 : i32
    %c0_i32_1 = arith.constant 0 : i32
    return %c0_i32, %c0_i32_0 : i32, i32
  }
  func.func @transform_13(%arg0: i32, %arg1: i32) -> (i32, i32) {
    %c0_i32 = arith.constant 0 : i32
    %c0_i32_0 = arith.constant 0 : i32
    %c0_i32_1 = arith.constant 0 : i32
    return %c0_i32, %c0_i32_0 : i32, i32
  }
  func.func @transform_14(%arg0: i32, %arg1: i32) -> (i32, i32) {
    %c0_i32 = arith.constant 0 : i32
    %c0_i32_0 = arith.constant 0 : i32
    %c0_i32_1 = arith.constant 0 : i32
    return %c0_i32, %c0_i32_0 : i32, i32
  }
  func.func @transform_15(%arg0: i32, %arg1: i32) -> (i32, i32, i32) {
    %c0_i32 = arith.constant 0 : i32
    %c0_i32_0 = arith.constant 0 : i32
    return %arg0, %arg1, %c0_i32 : i32, i32, i32
  }
}

</mosaic_0001>

<bundles_post_ra>
// kernel: tpu_custom_call.1
= control target key start
LH: loop header
LB: loop body
LE: loop exit
PB: predicated region body
PF: predicated region fallthrough
CT: control target
= control target key end

     0   :  { %s5391_s0 = inlined_call_operand.vmem [shape: f32[2,32,64], index: 0, kind: input, shape index: {}]   ;;  %s5392_s1 = inlined_call_operand.vmem [shape: f32[1,64], index: 1, kind: input, shape index: {}]   ;;  %s5393_s2 = inlined_call_operand.vmem [shape: f32[1,64], index: 2, kind: input, shape index: {}]   ;;  %s5394_s3 = inlined_call_operand.vmem [shape: bf16[64,64], index: 3, kind: input, shape index: {}]   ;;  %s5395_s4 = inlined_call_operand.vmem [shape: f32[1,64], index: 4, kind: input, shape index: {}]   ;;  %s5396_s5 = inlined_call_operand.vmem [shape: bf16[64,128], index: 5, kind: input, shape index: {}]   ;;  %s5397_s6 = inlined_call_operand.vmem [shape: f32[1,128], index: 6, kind: input, shape index: {}]   ;;  %s5398_s7 = inlined_call_operand.hbm [shape: bf16[64,64], index: 7, kind: input, shape index: {}]   ;;  %s5399_s8 = inlined_call_operand.vmem [shape: f32[1,64], index: 8, kind: input, shape index: {}]   ;;  %s5400_s9 = inlined_call_operand.vmem [shape: f32[1,64], index: 9, kind: input, shape index: {}]   ;;  %s5401_s10 = inlined_call_operand.vmem [shape: f32[1,64], index: 10, kind: input, shape index: {}]   ;;  %s5402_s11 = inlined_call_operand.vmem [shape: bf16[64,256], index: 11, kind: input, shape index: {}]   ;;  %s5403_s12 = inlined_call_operand.vmem [shape: f32[1,256], index: 12, kind: input, shape index: {}]   ;;  %s5404_s13 = inlined_call_operand.vmem [shape: bf16[256,64], index: 13, kind: input, shape index: {}]   ;;  %s5405_s14 = inlined_call_operand.vmem [shape: f32[1,64], index: 14, kind: input, shape index: {}]   ;;  %s5406_s15 = inlined_call_operand.hbm [shape: f32[2,32,64], index: 15, kind: output, shape index: {}]  }
   0x1   :  { %5422 = sst [smem:[#allocation18_spill]] %s5403_s12 }
   0x2   :  { %5423 = sst [smem:[#allocation19_spill]] %s5405_s14 }
   0x3   :  { %5424 = sst [smem:[#allocation20_spill]] %s5406_s15 }
   0x4   :  { %20 = vsyncpa [#allocation6], 0 }
   0x5   :  { %21 = vsyncpa [#allocation7], 0 }
   0x6   :  { %23 = vsyncpa [#allocation7 + $0x1], 0  ;;  %s4402_s18 = smov 0   ;;  %s4404_s19 = smov 0  }
   0x7   :  { %s4406_s20 = smov 0   ;;  %s4408_s21 = smov 0  }
   0x8   :  { %s4410_s22 = smov 0   ;;  %s4412_s23 = smov 0  }
   0x9   :  { %s4414_s24 = smov 0   ;;  %s4416_s25 = smov 0  }
   0xa LB: > { %5425 = sst [smem:[#allocation11_spill]] %s4160_s18  ;;  %s3219_s26 = sadd.s32 4294967295, %s4188_s25   ;;  %s4188_s25 = sphi %s4416_s25, %s29_s25   ;;  %s4184_s24 = sphi %s4414_s24, %s5496_s24   ;;  %s4180_s23 = sphi %s4412_s23, %s5495_s23   ;;  %s4176_s22 = sphi %s4410_s22, %s5494_s22   ;;  %s4172_s21 = sphi %s4408_s21, %s5493_s21   ;;  %s4168_s20 = sphi %s4406_s20, %s5499_s20   ;;  %s4164_s19 = sphi %s4404_s19, %s5498_s19   ;;  %s4160_s18 = sphi %s4402_s18, %s5497_s18  }
   0xb   : > { %5426 = sst [smem:[#allocation12_spill]] %s4180_s23  ;;  %s3220_s27 = sadd.s32 4294967294, %s4188_s25  }
   0xc   : > { %5427 = sst [smem:[#allocation13_spill]] %s4184_s24  ;;  %s38_s28 = sadd.s32 1, %s4180_s23 }
   0xd   : > { %s41_s29 = sadd.s32 1, %s4184_s24  ;;  %p39_p0 = scmp.ge.s32.totalorder %s38_s28, 2 }
   0xe   : > { %s370_s30 = sadd.s32 1, %s4168_s20  ;;  %p380_p1 = scmp.ne.s32.totalorder %s4168_s20, %s4164_s19 }
   0xf   : > { %p381_p2 = scmp.eq.s32.totalorder %s3219_s26, 3  ;;  %s5501_s28 = smov (%p39_p0, %s38_s28), 0 }
  0x10   : > { %5428 = sst [smem:[#allocation14_spill]] %s5501_s28  ;;  %s5503_s29 = smov (!%p39_p0, %s41_s29), %s4184_s24 }
  0x11   : > { %s366_s16 = ssub.s32 %s4180_s23, %s5501_s28  ;;  %p4454_p3 = por %p381_p2, %p380_p1 }
  0x12   : > { %p43_p4 = scmp.ge.s32.totalorder %s5503_s29, 2  ;;  %p386_p5 = scmp.ne.s32.totalorder %s4164_s19, %s4160_s18 }
  0x13   : > { %s5429_s17 = scalar_select %p4454_p3, 1, 0 }
  0x14   : > { %p387_p6 = scmp.eq.s32.totalorder %s3220_s27, 3  ;;  %p3221_p7 = scmp.ge.s32.totalorder %s4188_s25, 1 }
  0x15   : > { %s5505_s29 = smov (%p43_p4, %s5503_s29), 0  ;;  %p394_p9 = scmp.lt.s32.totalorder %s4188_s25, 5 }
  0x16   : > { %5430 = sst [smem:[#allocation15_spill]] %s5505_s29  ;;  %p4463_p8 = por %p387_p6, %p386_p5 }
  0x17   : > { %s365_s14 = ssub.s32 %s4184_s24, %s5505_s29  ;;  %p4470_p10 = pnand %p3221_p7, %p394_p9 }
  0x18   : > { %s5431_s15 = scalar_select %p4463_p8, 1, 0 }
  0x19   : > { %s367_s12 = sor.u32 %s366_s16, %s365_s14  ;;  %p4474_p12 = scmp.eq.s32.totalorder %s3219_s26, 0 }
  0x1a   : > { %5432 = sst [smem:[#allocation16_spill]] %s5431_s15  ;;  %p368_p11 = scmp.eq.s32.totalorder %s367_s12, 0 }
  0x1b   : > { %s5433_s28 = scalar_select %p4470_p10, 1, 0 }
  0x1c   : > { %s5434_s23 = scalar_select %p4474_p12, 1, 0 }
  0x1d   : > { %p3533_p13 = pneg %p4470_p10  ;;  %s4294_s18 = smov [#allocation5]  }
  0x1e   : > { %s4481_s27 = scalar_select %p368_p11, %s4168_s20, %s370_s30  }
  0x1f   : > { %s432_s15 = sshll.u32 %s4294_s18, 4  ;;  %p4485_p0 = pnand %p4474_p12, %p3533_p13  ;;  %s433_s15 = int_to_ptr.vmem [resolvable:$true] %s432_s15 }
  0x20   : > { %5435 = sst [smem:[#allocation17_spill]] %s4481_s27  ;;  %s3958_s26 = scalar_lea.hbm %s5398_s7, 512 }
  0x21   : > { %p3959_p1 = scmp.ne.s32.totalorder %s5398_s7, %s3958_s26  ;;  %p3960_p2 = pneg %p4485_p0 }
  0x22   : > { %p3965_p6 = scmp.lt.u32.totalorder %s3958_s26, %s5398_s7 }
  0x23   : > { %p3961_p4 = pnand %p3960_p2, %p3959_p1 }
  0x25   : > { %p3962_p5 = pneg %p3961_p4 }
  0x27   : > { %p3967_p7 = pnand %p3965_p6, %p3962_p5 }
  0x29   : > { %3970 = shalt.err (!%p3967_p7)
}
  0x2a   : > { %s3971_s27 = scalar_lea.vmem %s433_s15, 512  ;;  %p3979_p8 = scmp.lt.s32.totalorder %s433_s15, %s433_s15 }
  0x2b   : > { %p3972_p9 = scmp.ne.s32.totalorder %s433_s15, %s3971_s27  ;;  %p3980_p3 = scmp.lt.s32.totalorder %s3971_s27, %s3971_s27 }
  0x2d   : > { %p3974_p11 = pnand %p3972_p9, %p3960_p2  ;;  %p3981_p12 = por %p3980_p3, %p3979_p8 }
  0x2f   : > { %p3975_p13 = pneg %p3974_p11 }
  0x31   : > { %p3982_p10 = pnand %p3981_p12, %p3975_p13 }
  0x33   : > { %3985 = shalt.err (!%p3982_p10)
}
  0x34   : > { %s4295_s24 = smov 64   ;;  %s4296_s29 = smov 4  }
  0x35   : > { %3536 = dma.hbm_to_vmem [thread:$0]  (!%p4485_p0), %s5398_s7, 512, %s433_s15, [#allocation6], %s4295_s24, %s4295_s24, %s4296_s29  }
  0x36   : > { %p5437_p1 = scmp.ne.s32.totalorder %s5433_s28, 0 }
  0x37   : > { %p5438_p4 = scmp.ne.s32.totalorder (!%p5437_p1), %s5434_s23, 0 }
  0x38   : > { %469 = sbr.rel (%p5437_p1) target bundleno = 3027 (0xbd3), region = 80 }
  0x3f   : > { %4151 = dma.done.wait (%p5438_p4), [#allocation6], 512  }
  0x40   : > { %4153 = vsyncadd (%p5438_p4), [#allocation6], 4294966784  ;;  %s5419_s27 = sand.u32 1, %s4164_s19   ;;  %p517_p3 = scmp.lt.s32.totalorder %s4176_s22, 1 }
  0x41   : > { %s3225_s14 = sshll.u32 %s5419_s27, 4  ;;  %p3228_p8 = scmp.ne.s32.totalorder %s4172_s21, 0 }
  0x42   : > { %s518_s26 = scalar_select %p517_p3, %s4176_s22, 1 }
  0x43   : > { %s4521_s24 = scalar_lea.vmem [#allocation8], %s3225_s14  ;;  %527 = sbr.rel (%p3228_p8) target bundleno = 876 (0x36c), region = 88 }
  0x44   : > { %s3319_s18 = sshll.u32 %s518_s26, 5  ;;  %s4524_s23 = smov (!%p3228_p8), 0  }
  0x45   : > { %s4519_s28 = scalar_lea.vmem %s5391_s0, %s3319_s18 }
  0x4a LB: >> { %s3229_s29 = sshll.u32 %s4192_s23, 4  ;;  %vm540_vm0 = vcmask 523264   ;;  %v3843_v14 = vld [vmem:[%s5396_s5] sm:$0xff]   ;;  %v4297_v15 = vmov 0.0   ;;  %v3844_v16 = vld [vmem:[%s5396_s5 + $0x8] sm:$0xff]   ;;  %v3845_v17 = vld [vmem:[%s5396_s5 + $0x10] sm:$0xff]   ;;  %v707_v46 = vlaneseq  ;;  %s4192_s23 = sphi %s4524_s23, %s533_s23  }
  0x4b   : >> { %s535_s16 = scalar_lea.vmem %s4519_s28, %s3229_s29  ;;  %3379 = vmatprep.subr.bf16.mxu0 %v4297_v15  ;;  %v3846_v18 = vld [vmem:[%s5396_s5 + $0x18] sm:$0xff]   ;;  %vm4298_vm1 = vmmov 0   ;;  %v3230_v27 = vld [vmem:[%s5392_s1] ss:$0 sm:$0xff]  ;;  %s585_s27 = sshra.s32 %s3229_s29, 4  ;;  %v4305_v53 = vmov 0  }
  0x4c   : >> { %v536_v0 = vld [vmem:[%s535_s16] sm:$0xff]  ;;  %v537_v1 = vld [vmem:[%s535_s16 + $0x8] sm:$0xff]  ;;  %3380 = vmatpush3.bf16.msra.mxu0 %v3843_v14  ;;  %3387 = vmatprep.mubr.msk.bf16.mxu0 %vm4298_vm1, %v4297_v15  ;;  %s4557_s15 = sshll.u32 %s585_s27, 3  ;;  %s4299_s12 = smov 96   ;;  %v4303_v44 = vmov 1983009808   ;;  %v4565_v54 = vpack.i.b16 %v4305_v53, %v4305_v53 }
  0x4d   : >> { %v541_v2 = vsel %vm540_vm0, %v536_v0, 0.0  ;;  %v544_v3 = vsel %vm540_vm0, %v537_v1, 0.0  ;;  %3381 = vmatprep.subr.bf16.mxu0 %v4297_v15  ;;  %v3231_v31 = vld [vmem:[%s5393_s2] ss:$0 sm:$0xff]  ;;  %s588_s30 = scalar_lea.vmem [#allocation2], %s4557_s15  ;;  %s4300_s14 = smov 112   ;;  %v705_v45 = vunpack.c.l.s4 %v4303_v44 }
  0x4e   : >> { %542 = vadd.xlane.f32.xlu0 %v541_v2  ;;  %v3233_v36 = vld [vmem:[%s5397_s6] ss:$0 sm:$0xff]  ;;  %s4301_s27 = smov 80   ;;  %s4302_s26 = smov 64   ;;  %v708_v48 = vshrl.u32 %v707_v46, 7  ;;  %vm953_vm2 = vcmask 130048  }
  0x4f   : >> { %v706_v47 = vunpack.c.0.s8 %v705_v45  ;;  %v4304_v49 = vmov 1934713408   ;;  %s952_s18 = scalar_lea.vmem [#allocation3], %s4557_s15  ;;  %s533_s23 = sadd.s32 1, %s4192_s23  }
  0x50   : >> { %3382 = vmatpush3.bf16.msra.mxu0 %v3844_v16  ;;  %v736_v50 = vunpack.c.l.s4 %v4304_v49  ;;  %p530_p10 = scmp.ge.s32.totalorder %s533_s23, 2  }
  0x51   : >> { %3383 = vmatprep.subr.bf16.mxu0 %v4297_v15  ;;  %v4567_v58 = vsub.s32 %v706_v47, %v708_v48 }
  0x52   : >> { %545 = vadd.xlane.f32.xlu0 %v544_v3  ;;  %v737_v59 = vunpack.c.0.s8 %v736_v50 }
  0x54   : >> { %3384 = vmatpush3.bf16.msra.mxu0 %v3845_v17  ;;  %v4571_v3 = vsub.s32 %v737_v59, %v708_v48 }
  0x55   : >> { %3385 = vmatprep.subr.bf16.mxu0 %v4297_v15 }
  0x58   : >> { %3386 = vmatpush3.bf16.msra.mxu0 %v3846_v18 }
  0xdb   : >> { %v543_v4 = vpop.xlane.xlu0 %542 }
  0xdc   : >> { %v548_v5 = vmul.f32 0.015625, %v543_v4 }
  0xde   : >> { %v550_v6 = vsub.f32 %v536_v0, %v548_v5 }
  0xdf   : >> { %v546_v7 = vpop.xlane.xlu0 %545 }
  0xe0   : >> { %v549_v8 = vmul.f32 0.015625, %v546_v7  ;;  %v552_v9 = vmul.f32 %v550_v6, %v550_v6 }
  0xe2   : >> { %v551_v10 = vsub.f32 %v537_v1, %v549_v8  ;;  %v554_v11 = vsel %vm540_vm0, %v552_v9, 0.0 }
  0xe3   : >> { %555 = vadd.xlane.f32.xlu1 %v554_v11 }
  0xe4   : >> { %v553_v12 = vmul.f32 %v551_v10, %v551_v10 }
  0xe6   : >> { %v557_v13 = vsel %vm540_vm0, %v553_v12, 0.0 }
  0xe7   : >> { %558 = vadd.xlane.f32.xlu1 %v557_v13 }
 0x170   : >> { %v556_v19 = vpop.xlane.xlu1 %555 }
 0x171   : >> { %v560_v20 = vmul.f32 0.015625, %v556_v19 }
 0x173   : >> { %v562_v21 = vadd.f32 1e-05, %v560_v20 }
 0x174   : >> { %v559_v22 = vpop.xlane.xlu1 %558 }
 0x175   : >> { %3847 = vrsqrt.f32 %v562_v21  ;;  %v561_v23 = vmul.f32 0.015625, %v559_v22 }
 0x177   : >> { %v563_v24 = vadd.f32 1e-05, %v561_v23 }
 0x179   : >> { %3849 = vrsqrt.f32 %v563_v24 }
 0x17f   : >> { %v3848_v25 = vpop.eup %3847 }
 0x180   : >> { %v566_v26 = vmul.f32 %v3848_v25, %v550_v6 }
 0x182   : >> { %v574_v30 = vmul.f32 %v3230_v27, %v566_v26 }
 0x183   : >> { %v3850_v28 = vpop.eup %3849 }
 0x184   : >> { %v567_v29 = vmul.f32 %v3850_v28, %v551_v10  ;;  %v582_v33 = vadd.f32 %v3231_v31, %v574_v30 }
 0x186   : >> { %v575_v32 = vmul.f32 %v3230_v27, %v567_v29 }
 0x188   : >> { %v583_v34 = vadd.f32 %v3231_v31, %v575_v32 }
 0x18a   : >> { %v584_v35 = vpack.c.bf16 %v583_v34, %v582_v33 }
 0x18c   : >> { %589 = vst.msk [vmem:[%s588_s30] sm:$0xff] %vm540_vm0, %v584_v35  ;;  %3388 = vmatmul.mubr.msk.bf16.vlgmr.msra.gmra.mrb[0].mxu0 %vm540_vm0, %v584_v35  ;;  %s1231_s30 = scalar_lea.vmem [#allocation4], %s4557_s15 }
 0x25f   : >> { %v666_v37 = vpop.f32.mrb[0].mxu0 }
 0x260   : >> { %v3389_v38 = vpop.f32.mrb[1].mxu0  ;;  %v667_v40 = vadd.f32 %v3233_v36, %v666_v37 }
 0x261   : >> { %v669_v39 = vpop.f32.mrb[2].mxu0 }
 0x262   : >> { %v670_v41 = vadd.f32 %v3233_v36, %v669_v39  ;;  %v3390_v42 = vpop.f32.mrb[3].mxu0 }
 0x264   : >> { %v673_v43 = vpack.c.bf16 %v670_v41, %v667_v40 }
 0x266   : >> { %677 = vrot.lane.b32.xlu1 %v673_v43, %s4299_s12  ;;  %675 = vrot.lane.b32.xlu0 %v673_v43, %s4300_s14  ;;  %v685_v57 = vshrl.u32 %v673_v43, 16 }
 0x26a   : >> { %679 = vrot.lane.b32.xlu1 %v673_v43, %s4301_s27 }
 0x26e   : >> { %958 = vrot.lane.b32.xlu1 %v673_v43, %s4302_s26 }
 0x2d8   : >> { %v678_v51 = vpop.permute.xlu1 %677  ;;  %v676_v52 = vpop.permute.xlu0 %675 }
 0x2d9   : >> { %v683_v55 = vpack.i.b16 %v676_v52, %v673_v43  ;;  %v686_v56 = vshrl.u32 %v676_v52, 16  ;;  %962 = vrot.lane.b32.xlu1 %v678_v51, %s4302_s26  ;;  %960 = vrot.lane.b32.xlu0 %v676_v52, %s4302_s26  ;;  %v693_v0 = vshrl.u32 %v678_v51, 16 }
 0x2db   : >> { %v687_v60 = vpack.i.b16 %v686_v56, %v685_v57  ;;  %v703_v62 = vcombine.high %v683_v55, %v4565_v54  ;;  %v710_v2 = vrot.slane %v683_v55, %v4567_v58 }
 0x2dc   : >> { %v680_v61 = vpop.permute.xlu1 %679 }
 0x2dd   : >> { %v691_v63 = vpack.i.b16 %v680_v61, %v678_v51  ;;  %964 = vrot.lane.b32.xlu0 %v680_v61, %s4302_s26  ;;  %v694_v1 = vshrl.u32 %v680_v61, 16  ;;  %v769_v6 = vcombine.high %v687_v60, %v4565_v54  ;;  %v717_v8 = vrot.slane %v703_v62, %v4567_v58 }
 0x2de   : >> { %v776_v12 = vrot.slane %v687_v60, %v4567_v58 }
 0x2df   : >> { %v718_v4 = vcombine.high %v691_v63, %v4565_v54  ;;  %v725_v5 = vrot.slane %v691_v63, %v4567_v58  ;;  %v695_v7 = vpack.i.b16 %v694_v1, %v693_v0  ;;  %v783_v19 = vrot.slane %v769_v6, %v4567_v58 }
 0x2e0   : >> { %v959_v6 = vpop.permute.xlu1 %958 }
 0x2e1   : >> { %v732_v9 = vrot.slane %v718_v4, %v4567_v58  ;;  %v733_v10 = vcombine.low %v710_v2, %v725_v5  ;;  %v734_v11 = vcombine.high %v710_v2, %v725_v5  ;;  %v784_v13 = vcombine.high %v695_v7, %v4565_v54 }
 0x2e2   : >> { %v791_v14 = vrot.slane %v695_v7, %v4567_v58 }
 0x2e3   : >> { %v741_v15 = vrot.slane %v733_v10, %v4571_v3  ;;  %v748_v16 = vrot.slane %v734_v11, %v4571_v3  ;;  %v749_v17 = vcombine.low %v717_v8, %v732_v9  ;;  %v750_v18 = vcombine.high %v717_v8, %v732_v9 }
 0x2e4   : >> { %v798_v20 = vrot.slane %v784_v13, %v4567_v58  ;;  %v799_v21 = vcombine.low %v776_v12, %v791_v14  ;;  %v800_v22 = vcombine.high %v776_v12, %v791_v14  ;;  %v970_v10 = vshrl.u32 %v959_v6, 16 }
 0x2e5   : >> { %v757_v23 = vrot.slane %v749_v17, %v4571_v3  ;;  %v764_v24 = vrot.slane %v750_v18, %v4571_v3  ;;  %v835_v25 = vcombine.low %v741_v15, %v748_v16  ;;  %v3239_v26 = vcombine.high %v741_v15, %v748_v16 }
 0x2e6   : >> { %v807_v27 = vrot.slane %v799_v21, %v4571_v3  ;;  %v814_v28 = vrot.slane %v800_v22, %v4571_v3  ;;  %v815_v29 = vcombine.low %v783_v19, %v798_v20  ;;  %v816_v30 = vcombine.high %v783_v19, %v798_v20 }
 0x2e7   : >> { %v842_v31 = vrot.slane %v835_v25, %v4567_v58  ;;  %v850_v32 = vrot.slane %v3239_v26, %v4567_v58  ;;  %v851_v33 = vcombine.low %v757_v23, %v764_v24  ;;  %v3240_v34 = vcombine.high %v757_v23, %v764_v24 }
 0x2e8   : >> { %v823_v35 = vrot.slane %v815_v29, %v4571_v3  ;;  %v830_v36 = vrot.slane %v816_v30, %v4571_v3  ;;  %v885_v37 = vcombine.low %v807_v27, %v814_v28  ;;  %v3241_v38 = vcombine.high %v807_v27, %v814_v28 }
 0x2e9   : >> { %v858_v39 = vrot.slane %v851_v33, %v4567_v58  ;;  %v866_v40 = vrot.slane %v3240_v34, %v4567_v58  ;;  %v867_v41 = vcombine.low %v842_v31, %v850_v32 }
 0x2ea   : >> { %v892_v42 = vrot.slane %v885_v37, %v4567_v58  ;;  %v900_v43 = vrot.slane %v3241_v38, %v4567_v58  ;;  %v901_v44 = vcombine.low %v823_v35, %v830_v36  ;;  %v3242_v45 = vcombine.high %v823_v35, %v830_v36 }
 0x2eb   : >> { %v875_v46 = vcombine.low %v858_v39, %v866_v40  ;;  %v874_v50 = vrot.slane %v867_v41, %v4571_v3 }
 0x2ec   : >> { %v908_v47 = vrot.slane %v901_v44, %v4567_v58  ;;  %v916_v48 = vrot.slane %v3242_v45, %v4567_v58  ;;  %v917_v49 = vcombine.low %v892_v42, %v900_v43 }
 0x2ed   : >> { %v882_v51 = vrot.slane %v875_v46, %v4571_v3 }
 0x2ee   : >> { %v925_v52 = vcombine.low %v908_v47, %v916_v48  ;;  %v924_v56 = vrot.slane %v917_v49, %v4571_v3 }
 0x2ef   : >> { %v883_v53 = vcombine.low %v874_v50, %v882_v51  ;;  %v884_v55 = vcombine.high %v874_v50, %v882_v51 }
 0x2f0   : >> { %v932_v57 = vrot.slane %v925_v52, %v4571_v3 }
 0x2f1   : >> { %v939_v61 = vshrl.u32 %v883_v53, 16  ;;  %v947_v62 = vshrl.u32 %v884_v55, 16 }
 0x2f2   : >> { %v933_v59 = vcombine.low %v924_v56, %v932_v57  ;;  %v934_v60 = vcombine.high %v924_v56, %v932_v57 }
 0x2f4   : >> { %v937_v63 = vpack.i.b16 %v933_v59, %v883_v53  ;;  %v940_v0 = vshrl.u32 %v933_v59, 16  ;;  %v945_v1 = vpack.i.b16 %v934_v60, %v884_v55  ;;  %v948_v2 = vshrl.u32 %v934_v60, 16 }
 0x2f6   : >> { %v941_v4 = vpack.i.b16 %v940_v0, %v939_v61  ;;  %v949_v5 = vpack.i.b16 %v948_v2, %v947_v62  ;;  %954 = vst.msk [vmem:[%s952_s18] sm:$0xff] %vm953_vm2, %v937_v63  ;;  %956 = vst.msk [vmem:[%s952_s18 + $0x20] sm:$0xff] %vm953_vm2, %v945_v1 }
 0x2f8   : >> { %955 = vst.msk [vmem:[%s952_s18 + $0x10] sm:$0xff] %vm953_vm2, %v941_v4  ;;  %957 = vst.msk [vmem:[%s952_s18 + $0x30] sm:$0xff] %vm953_vm2, %v949_v5 }
 0x34b   : >> { %v961_v7 = vpop.permute.xlu0 %960  ;;  %v963_v11 = vpop.permute.xlu1 %962 }
 0x34c   : >> { %v968_v8 = vpack.i.b16 %v961_v7, %v959_v6  ;;  %v971_v9 = vshrl.u32 %v961_v7, 16  ;;  %v978_v16 = vshrl.u32 %v963_v11, 16 }
 0x34e   : >> { %v972_v12 = vpack.i.b16 %v971_v9, %v970_v10  ;;  %v982_v14 = vcombine.high %v968_v8, %v4565_v54  ;;  %v989_v18 = vrot.slane %v968_v8, %v4567_v58 }
 0x34f   : >> { %v965_v13 = vpop.permute.xlu0 %964 }
 0x350   : >> { %v976_v15 = vpack.i.b16 %v965_v13, %v963_v11  ;;  %v979_v17 = vshrl.u32 %v965_v13, 16  ;;  %v1048_v21 = vcombine.high %v972_v12, %v4565_v54  ;;  %v996_v23 = vrot.slane %v982_v14, %v4567_v58 }
 0x351   : >> { %v1055_v27 = vrot.slane %v972_v12, %v4567_v58 }
 0x352   : >> { %v997_v19 = vcombine.high %v976_v15, %v4565_v54  ;;  %v1004_v20 = vrot.slane %v976_v15, %v4567_v58  ;;  %v980_v22 = vpack.i.b16 %v979_v17, %v978_v16  ;;  %v1062_v34 = vrot.slane %v1048_v21, %v4567_v58 }
 0x354   : >> { %v1011_v24 = vrot.slane %v997_v19, %v4567_v58  ;;  %v1012_v25 = vcombine.low %v989_v18, %v1004_v20  ;;  %v1013_v26 = vcombine.high %v989_v18, %v1004_v20  ;;  %v1063_v28 = vcombine.high %v980_v22, %v4565_v54 }
 0x355   : >> { %v1070_v29 = vrot.slane %v980_v22, %v4567_v58 }
 0x356   : >> { %v1020_v30 = vrot.slane %v1012_v25, %v4571_v3  ;;  %v1027_v31 = vrot.slane %v1013_v26, %v4571_v3  ;;  %v1028_v32 = vcombine.low %v996_v23, %v1011_v24  ;;  %v1029_v33 = vcombine.high %v996_v23, %v1011_v24 }
 0x357   : >> { %v1077_v35 = vrot.slane %v1063_v28, %v4567_v58  ;;  %v1078_v36 = vcombine.low %v1055_v27, %v1070_v29  ;;  %v1079_v37 = vcombine.high %v1055_v27, %v1070_v29 }
 0x358   : >> { %v1036_v38 = vrot.slane %v1028_v32, %v4571_v3  ;;  %v1043_v39 = vrot.slane %v1029_v33, %v4571_v3  ;;  %v1114_v40 = vcombine.low %v1020_v30, %v1027_v31  ;;  %v3244_v54 = vcombine.high %v1020_v30, %v1027_v31 }
 0x359   : >> { %v1086_v41 = vrot.slane %v1078_v36, %v4571_v3  ;;  %v1093_v42 = vrot.slane %v1079_v37, %v4571_v3  ;;  %v1094_v43 = vcombine.low %v1062_v34, %v1077_v35  ;;  %v1095_v44 = vcombine.high %v1062_v34, %v1077_v35 }
 0x35a   : >> { %v1121_v45 = vrot.slane %v1114_v40, %v4567_v58  ;;  %v1129_v46 = vrot.slane %v3244_v54, %v4567_v58  ;;  %v1130_v47 = vcombine.low %v1036_v38, %v1043_v39  ;;  %v3245_v48 = vcombine.high %v1036_v38, %v1043_v39 }
 0x35b   : >> { %v1102_v49 = vrot.slane %v1094_v43, %v4571_v3  ;;  %v1109_v50 = vrot.slane %v1095_v44, %v4571_v3  ;;  %v1164_v51 = vcombine.low %v1086_v41, %v1093_v42  ;;  %v3246_v52 = vcombine.high %v1086_v41, %v1093_v42 }
 0x35c   : >> { %v1137_v53 = vrot.slane %v1130_v47, %v4567_v58  ;;  %v1145_v55 = vrot.slane %v3245_v48, %v4567_v58  ;;  %v1146_v56 = vcombine.low %v1121_v45, %v1129_v46 }
 0x35d   : >> { %v1171_v57 = vrot.slane %v1164_v51, %v4567_v58  ;;  %v1179_v59 = vrot.slane %v3246_v52, %v4567_v58  ;;  %v1180_v60 = vcombine.low %v1102_v49, %v1109_v50  ;;  %v3247_v61 = vcombine.high %v1102_v49, %v1109_v50 }
 0x35e   : >> { %v1154_v62 = vcombine.low %v1137_v53, %v1145_v55  ;;  %v1153_v2 = vrot.slane %v1146_v56, %v4571_v3 }
 0x35f   : >> { %v1187_v63 = vrot.slane %v1180_v60, %v4567_v58  ;;  %v1195_v0 = vrot.slane %v3247_v61, %v4567_v58  ;;  %v1196_v1 = vcombine.low %v1171_v57, %v1179_v59 }
 0x360   : >> { %v1161_v4 = vrot.slane %v1154_v62, %v4571_v3 }
 0x361   : >> { %v1204_v5 = vcombine.low %v1187_v63, %v1195_v0  ;;  %v1203_v8 = vrot.slane %v1196_v1, %v4571_v3 }
 0x362   : >> { %v1162_v6 = vcombine.low %v1153_v2, %v1161_v4  ;;  %v1163_v7 = vcombine.high %v1153_v2, %v1161_v4 }
 0x363   : >> { %v1211_v9 = vrot.slane %v1204_v5, %v4571_v3 }
 0x364   : >> { %v1218_v12 = vshrl.u32 %v1162_v6, 16  ;;  %v1226_v13 = vshrl.u32 %v1163_v7, 16 }
 0x365   : >> { %v1212_v10 = vcombine.low %v1203_v8, %v1211_v9  ;;  %v1213_v11 = vcombine.high %v1203_v8, %v1211_v9  ;;  %532 = sbr.rel (!%p530_p10) target bundleno = 74 (0x4a), region = 146 }
 0x367   : >> { %v1216_v14 = vpack.i.b16 %v1212_v10, %v1162_v6  ;;  %v1219_v15 = vshrl.u32 %v1212_v10, 16  ;;  %v1224_v58 = vpack.i.b16 %v1213_v11, %v1163_v7  ;;  %v1227_v16 = vshrl.u32 %v1213_v11, 16 }
 0x369   : >> { %v1220_v17 = vpack.i.b16 %v1219_v15, %v1218_v12  ;;  %v1228_v18 = vpack.i.b16 %v1227_v16, %v1226_v13  ;;  %1232 = vst.msk [vmem:[%s1231_s30] sm:$0xff] %vm953_vm2, %v1216_v14  ;;  %1234 = vst.msk [vmem:[%s1231_s30 + $0x20] sm:$0xff] %vm953_vm2, %v1224_v58 }
 0x36b   : >> { %1233 = vst.msk [vmem:[%s1231_s30 + $0x10] sm:$0xff] %vm953_vm2, %v1220_v17  ;;  %1235 = vst.msk [vmem:[%s1231_s30 + $0x30] sm:$0xff] %vm953_vm2, %v1228_v18 }
 0x36c PF: > { %v3851_v3 = vld [vmem:[%s5394_s3] sm:$0xff]   ;;  %v5420_v19 = vmov 0.0   ;;  %v3852_v20 = vld [vmem:[%s5394_s3 + $0x8] sm:$0xff]   ;;  %vm4307_vm3 = vmmov 0   ;;  %s3249_s23 = sshll.u32 %s4172_s21, 4  ;;  %v3853_v23 = vld [vmem:[%s5394_s3 + $0x10] sm:$0xff]   ;;  %v1363_v36 = vlaneseq }
 0x36d   : > { %3391 = vmatprep.subr.bf16.mxu0 %v5420_v19  ;;  %3399 = vmatprep.mubr.msk.bf16.mxu0 %vm4307_vm3, %v5420_v19  ;;  %s1237_s14 = scalar_lea.vmem %s4519_s28, %s3249_s23  ;;  %s1240_s27 = sshra.s32 %s3249_s23, 4  ;;  %v3854_v24 = vld [vmem:[%s5394_s3 + $0x18] sm:$0xff]   ;;  %vm1284_vm4 = vcmask 523264   ;;  %v3251_v26 = vld [vmem:[%s5395_s4] ss:$0 sm:$0xff]  ;;  %v4313_v41 = vmov 0  }
 0x36e   : > { %3392 = vmatpush3.bf16.msra.mxu0 %v3851_v3  ;;  %v4660_v21 = vld [vmem:[%s1237_s14] sm:$0xff]  ;;  %v4662_v22 = vld [vmem:[%s1237_s14 + $0x8] sm:$0xff]  ;;  %s3250_s30 = sshll.u32 %s1240_s27, 3  ;;  %s4308_s23 = smov 80   ;;  %v4311_v34 = vmov 1983009808   ;;  %v1354_v42 = vpack.i.b16 %v4313_v41, %v4313_v41 }
 0x36f   : > { %3393 = vmatprep.subr.bf16.mxu0 %v5420_v19  ;;  %s1243_s28 = scalar_lea.vmem [#allocation2], %s3250_s30  ;;  %s4309_s14 = smov 112   ;;  %v1361_v35 = vunpack.c.l.s4 %v4311_v34  ;;  %v1364_v38 = vshrl.u32 %v1363_v36, 7  ;;  %v4312_v39 = vmov 1934713408  }
 0x370   : > { %v1244_v25 = vld [vmem:[%s1243_s28] sm:$0xff]  ;;  %s4310_s27 = smov 96   ;;  %v1392_v40 = vunpack.c.l.s4 %v4312_v39  ;;  %s4776_s26 = smov 0  }
 0x371   : > { %v1362_v37 = vunpack.c.0.s8 %v1361_v35 }
 0x372   : > { %3394 = vmatpush3.bf16.msra.mxu0 %v3852_v20  ;;  %v1393_v48 = vunpack.c.0.s8 %v1392_v40 }
 0x373   : > { %3395 = vmatprep.subr.bf16.mxu0 %v5420_v19  ;;  %v4676_v47 = vsub.s32 %v1362_v37, %v1364_v38 }
 0x374   : > { %v4679_v57 = vsub.s32 %v1393_v48, %v1364_v38 }
 0x376   : > { %3396 = vmatpush3.bf16.msra.mxu0 %v3853_v23 }
 0x377   : > { %3397 = vmatprep.subr.bf16.mxu0 %v5420_v19 }
 0x37a   : > { %3398 = vmatpush3.bf16.msra.mxu0 %v3854_v24 }
 0x37d   : > { %3400 = vmatmul.mubr.msk.bf16.vlgmr.msra.gmra.mrb[0].mxu0 %vm1284_vm4, %v1244_v25 }
 0x450   : > { %v1322_v27 = vpop.f32.mrb[0].mxu0 }
 0x451   : > { %v3401_v28 = vpop.f32.mrb[1].mxu0  ;;  %v1323_v30 = vadd.f32 %v3251_v26, %v1322_v27 }
 0x452   : > { %v1325_v29 = vpop.f32.mrb[2].mxu0 }
 0x453   : > { %v1326_v31 = vadd.f32 %v3251_v26, %v1325_v29  ;;  %v3402_v32 = vpop.f32.mrb[3].mxu0 }
 0x455   : > { %v1329_v33 = vpack.c.bf16 %v1326_v31, %v1323_v30 }
 0x457   : > { %1335 = vrot.lane.b32.xlu1 %v1329_v33, %s4308_s23  ;;  %1331 = vrot.lane.b32.xlu0 %v1329_v33, %s4309_s14  ;;  %v1341_v45 = vshrl.u32 %v1329_v33, 16 }
 0x45b   : > { %1333 = vrot.lane.b32.xlu0 %v1329_v33, %s4310_s27 }
 0x4c9   : > { %v1332_v54 = vpop.permute.xlu0 %1331  ;;  %v1336_v46 = vpop.permute.xlu1 %1335 }
 0x4ca   : > { %v1339_v43 = vpack.i.b16 %v1332_v54, %v1329_v33  ;;  %v1342_v44 = vshrl.u32 %v1332_v54, 16  ;;  %v1350_v53 = vshrl.u32 %v1336_v46, 16 }
 0x4cc   : > { %v1343_v49 = vpack.i.b16 %v1342_v44, %v1341_v45  ;;  %v1359_v51 = vcombine.high %v1339_v43, %v1354_v42  ;;  %v1366_v56 = vrot.slane %v1339_v43, %v4676_v47 }
 0x4cd   : > { %v1334_v50 = vpop.permute.xlu0 %1333 }
 0x4ce   : > { %v1347_v52 = vpack.i.b16 %v1336_v46, %v1334_v50  ;;  %v1349_v55 = vshrl.u32 %v1334_v50, 16  ;;  %v1425_v61 = vcombine.high %v1343_v49, %v1354_v42  ;;  %v1373_v63 = vrot.slane %v1359_v51, %v4676_v47 }
 0x4cf   : > { %v1432_v4 = vrot.slane %v1343_v49, %v4676_v47 }
 0x4d0   : > { %v1374_v59 = vcombine.high %v1347_v52, %v1354_v42  ;;  %v1381_v60 = vrot.slane %v1347_v52, %v4676_v47  ;;  %v1351_v62 = vpack.i.b16 %v1350_v53, %v1349_v55  ;;  %v1439_v11 = vrot.slane %v1425_v61, %v4676_v47 }
 0x4d2   : > { %v1388_v0 = vrot.slane %v1374_v59, %v4676_v47  ;;  %v1389_v1 = vcombine.low %v1366_v56, %v1381_v60  ;;  %v1390_v2 = vcombine.high %v1366_v56, %v1381_v60  ;;  %v1440_v5 = vcombine.high %v1351_v62, %v1354_v42 }
 0x4d3   : > { %v1447_v6 = vrot.slane %v1351_v62, %v4676_v47 }
 0x4d4   : > { %v1397_v7 = vrot.slane %v1389_v1, %v4679_v57  ;;  %v1404_v8 = vrot.slane %v1390_v2, %v4679_v57  ;;  %v1405_v9 = vcombine.low %v1373_v63, %v1388_v0  ;;  %v1406_v10 = vcombine.high %v1373_v63, %v1388_v0 }
 0x4d5   : > { %v1454_v12 = vrot.slane %v1440_v5, %v4676_v47  ;;  %v1455_v13 = vcombine.low %v1432_v4, %v1447_v6  ;;  %v1456_v14 = vcombine.high %v1432_v4, %v1447_v6  ;;  %v4728_v63 = vmov 0.0  }
 0x4d6   : > { %v1413_v15 = vrot.slane %v1405_v9, %v4679_v57  ;;  %v1420_v58 = vrot.slane %v1406_v10, %v4679_v57  ;;  %v1491_v16 = vcombine.low %v1397_v7, %v1404_v8  ;;  %v3257_v17 = vcombine.high %v1397_v7, %v1404_v8 }
 0x4d7   : > { %v1463_v18 = vrot.slane %v1455_v13, %v4679_v57  ;;  %v1470_v3 = vrot.slane %v1456_v14, %v4679_v57  ;;  %v1471_v20 = vcombine.low %v1439_v11, %v1454_v12  ;;  %v1472_v23 = vcombine.high %v1439_v11, %v1454_v12 }
 0x4d8   : > { %v1498_v24 = vrot.slane %v1491_v16, %v4676_v47  ;;  %v1506_v25 = vrot.slane %v3257_v17, %v4676_v47  ;;  %v1507_v26 = vcombine.low %v1413_v15, %v1420_v58  ;;  %v3258_v27 = vcombine.high %v1413_v15, %v1420_v58 }
 0x4d9   : > { %v1479_v28 = vrot.slane %v1471_v20, %v4679_v57  ;;  %v1486_v29 = vrot.slane %v1472_v23, %v4679_v57  ;;  %v1541_v30 = vcombine.low %v1463_v18, %v1470_v3  ;;  %v3259_v31 = vcombine.high %v1463_v18, %v1470_v3 }
 0x4da   : > { %v1514_v32 = vrot.slane %v1507_v26, %v4676_v47  ;;  %v1522_v33 = vrot.slane %v3258_v27, %v4676_v47  ;;  %v1523_v34 = vcombine.low %v1498_v24, %v1506_v25  ;;  %v4730_v0 = vmov 0.0  }
 0x4db   : > { %v1548_v35 = vrot.slane %v1541_v30, %v4676_v47  ;;  %v1556_v36 = vrot.slane %v3259_v31, %v4676_v47  ;;  %v1557_v37 = vcombine.low %v1479_v28, %v1486_v29  ;;  %v3260_v38 = vcombine.high %v1479_v28, %v1486_v29 }
 0x4dc   : > { %v1531_v39 = vcombine.low %v1514_v32, %v1522_v33  ;;  %v1530_v42 = vrot.slane %v1523_v34, %v4679_v57  ;;  %v4732_v1 = vmov 0.0   ;;  %v4734_v2 = vmov 0.0  }
 0x4dd   : > { %v1564_v40 = vrot.slane %v1557_v37, %v4676_v47  ;;  %v1572_v54 = vrot.slane %v3260_v38, %v4676_v47  ;;  %v1573_v41 = vcombine.low %v1548_v35, %v1556_v36  ;;  %v4736_v4 = vmov 0.0  }
 0x4de   : > { %v1538_v43 = vrot.slane %v1531_v39, %v4679_v57  ;;  %v4738_v5 = vmov 0.0   ;;  %v4740_v6 = vmov 0.0   ;;  %v4742_v7 = vmov 0.0  }
 0x4df   : > { %v1581_v44 = vcombine.low %v1564_v40, %v1572_v54  ;;  %v1580_v48 = vrot.slane %v1573_v41, %v4679_v57  ;;  %v4744_v8 = vmov 0.0   ;;  %v4746_v9 = vmov 0.0  }
 0x4e0   : > { %v4706_v45 = vcombine.low %v1530_v42, %v1538_v43  ;;  %v4708_v46 = vcombine.high %v1530_v42, %v1538_v43  ;;  %v4748_v10 = vmov 0.0   ;;  %v4750_v11 = vmov 0.0  }
 0x4e1   : > { %v1588_v49 = vrot.slane %v1581_v44, %v4679_v57  ;;  %v4752_v12 = vmov 0.0   ;;  %v4754_v13 = vmov 0.0   ;;  %v4756_v14 = vmov 0.0  }
 0x4e2   : > { %v1594_v52 = vshrl.u32 %v4706_v45, 16  ;;  %v1600_v53 = vshrl.u32 %v4708_v46, 16  ;;  %v4758_v15 = vmov 0.0   ;;  %v4760_v58 = vmov -inf  }
 0x4e3   : > { %v4712_v50 = vcombine.low %v1580_v48, %v1588_v49  ;;  %v4714_v51 = vcombine.high %v1580_v48, %v1588_v49  ;;  %v4762_v16 = vmov -inf   ;;  %v4764_v17 = vmov -inf  }
 0x4e4   : > { %v4766_v18 = vmov -inf   ;;  %v4768_v3 = vmov -inf   ;;  %v4770_v20 = vmov -inf   ;;  %v4772_v23 = vmov -inf  }
 0x4e5   : > { %v1595_v56 = vshrl.u32 %v4712_v50, 16  ;;  %v1601_v60 = vshrl.u32 %v4714_v51, 16  ;;  %v4774_v24 = vmov -inf  }
 0x4e7   : > { %v4724_v61 = vpack.i.b16 %v1595_v56, %v1594_v52  ;;  %v4726_v62 = vpack.i.b16 %v1601_v60, %v1600_v53 }
 0x4e8 LB: >> { %v4314_v25 = vmov 0.0   ;;  %s3261_s18 = sshll.u32 %s4292_s26, 4  ;;  %vm4315_vm5 = vmmov 0   ;;  %vm1648_vm6 = vcmask 130048   ;;  %v5439_v55 = vpack.i.b16 %v4712_v50, %v4706_v45  ;;  %s1608_s26 = sadd.s32 1, %s4292_s26   ;;  %s4292_s26 = sphi %s4776_s26, %s1608_s26   ;;  %v4288_v24 = vphi %v4774_v24, %v5481_v24   ;;  %v4284_v23 = vphi %v4772_v23, %v5480_v23   ;;  %v4280_v20 = vphi %v4770_v20, %v5479_v20   ;;  %v4276_v3 = vphi %v4768_v3, %v5478_v3   ;;  %v4272_v18 = vphi %v4766_v18, %v5477_v18   ;;  %v4268_v17 = vphi %v4764_v17, %v5476_v17   ;;  %v4264_v16 = vphi %v4762_v16, %v5475_v16   ;;  %v4260_v58 = vphi %v4760_v58, %v5474_v58   ;;  %v4256_v15 = vphi %v4758_v15, %v5473_v15   ;;  %v4252_v14 = vphi %v4756_v14, %v5472_v14   ;;  %v4248_v13 = vphi %v4754_v13, %v5471_v13   ;;  %v4244_v12 = vphi %v4752_v12, %v5470_v12   ;;  %v4240_v11 = vphi %v4750_v11, %v5469_v11   ;;  %v4236_v10 = vphi %v4748_v10, %v5468_v10   ;;  %v4232_v9 = vphi %v4746_v9, %v5467_v9   ;;  %v4228_v8 = vphi %v4744_v8, %v5466_v8   ;;  %v4224_v7 = vphi %v4742_v7, %v5465_v7   ;;  %v4220_v6 = vphi %v4740_v6, %v5464_v6   ;;  %v4216_v5 = vphi %v4738_v5, %v5463_v5   ;;  %v4212_v4 = vphi %v4736_v4, %v5462_v4   ;;  %v4208_v2 = vphi %v4734_v2, %v5461_v2   ;;  %v4204_v1 = vphi %v4732_v1, %v5460_v1   ;;  %v4200_v0 = vphi %v4730_v0, %v5459_v0   ;;  %v4196_v63 = vphi %v4728_v63, %v5458_v63  }
 0x4e9   : >> { %3403 = vmatprep.subr.bf16.mxu0 %v4314_v25  ;;  %3409 = vmatprep.subr.bf16.mxu1 %v4314_v25  ;;  %s4860_s30 = sshra.s32 %s3261_s18, 4  ;;  %v5440_v59 = vpack.i.b16 %v4714_v51, %v4708_v46  ;;  %p5046_p12 = scmp.ge.s32.totalorder %s1608_s26, 2  }
 0x4ea   : >> { %3405 = vmatprep.mubr.msk.bf16.mxu0 %vm4315_vm5, %v4314_v25  ;;  %3411 = vmatprep.mubr.msk.bf16.mxu1 %vm4315_vm5, %v4314_v25  ;;  %s3262_s16 = sshll.u32 %s4860_s30, 3  ;;  %s4316_s12 = smov (%p5046_p12), 16   ;;  %vm2468_vm7 = vcmask (%p5046_p12), 261120   ;;  %vm2471_vm8 = vcmask (%p5046_p12), 392192  }
 0x4eb   : >> { %s1637_s29 = scalar_lea.vmem [#allocation3], %s3262_s16  ;;  %s4906_s28 = scalar_lea.vmem [#allocation4], %s3262_s16 }
 0x4ec   : >> { %v1638_v26 = vld [vmem:[%s1637_s29] sm:$0xff]  ;;  %v1639_v27 = vld [vmem:[%s1637_s29 + $0x10] sm:$0xff]  ;;  %s4317_s23 = smov (%p5046_p12), 48   ;;  %s4318_s14 = smov (%p5046_p12), 32  }
 0x4ed   : >> { %v1653_v28 = vsel %vm1648_vm6, %v1638_v26, 0  ;;  %v1700_v29 = vsel %vm1648_vm6, %v1639_v27, 0  ;;  %v1640_v30 = vld [vmem:[%s1637_s29 + $0x20] sm:$0xff]  ;;  %v1641_v31 = vld [vmem:[%s1637_s29 + $0x30] sm:$0xff]  ;;  %s5483_s26 = sld [smem:[#allocation18_spill]] (%p5046_p12)  ;;  %s3314_s16 = sshll.u32 (%p5046_p12), %s4172_s21, 1 }
 0x4ee   : >> { %3404 = vmatpush3.bf16.xpose.msra.mxu0 %v1653_v28  ;;  %3410 = vmatpush3.bf16.xpose.msra.mxu1 %v1700_v29  ;;  %v1747_v32 = vsel %vm1648_vm6, %v1640_v30, 0  ;;  %v1794_v33 = vsel %vm1648_vm6, %v1641_v31, 0  ;;  %s3315_s29 = sshll.u32 (%p5046_p12), %s4176_s22, 2  ;;  %s3030_s22 = sshll.u32 (%p5046_p12), %s4521_s24, 4  ;;  %s5330_s22 = int_to_ptr.vmem [resolvable:$true] %s3030_s22 }
 0x4ef   : >> { %3415 = vmatprep.subr.bf16.mxu0 %v4314_v25  ;;  %3421 = vmatprep.subr.bf16.mxu1 %v4314_v25  ;;  %s5485_s18 = sld [smem:[#allocation20_spill]] (%p5046_p12)  ;;  %s3986_s15 = scalar_lea.vmem (%p5046_p12), %s5330_s22, 256 }
 0x4f0   : > { %p3987_p0 = scmp.ne.s32.totalorder (%p5046_p12), %s5330_s22, %s3986_s15  ;;  %p5488_p2 = scmp.ne.s32.totalorder (%p5046_p12), %s5429_s17, 0 }
 0x4f2   : > { %p3988_p5 = pnand (%p5046_p12), %p3987_p0, %p5488_p2 }
 0x4f4   : > { %p3989_p6 = pneg (%p5046_p12), %p3988_p5 }
 0x4f5   : >> { %3406 = vmatmul.mubr.msk.bf16.vlgmr.msra.gmra.mrb[0].mxu0 %vm1648_vm6, %v5439_v55  ;;  %3412 = vmatmul.mubr.msk.bf16.vlgmr.msra.gmra.mrb[0].mxu1 %vm1648_vm6, %v4724_v61  ;;  %s5486_s30 = smov (%p5046_p12), %s5485_s18 }
 0x4f6   : >> { %3416 = vmatpush3.bf16.xpose.msra.mxu0 %v1747_v32  ;;  %3422 = vmatpush3.bf16.xpose.msra.mxu1 %v1794_v33  ;;  %v1644_v32 = vld [vmem:[%s4906_s28] sm:$0xff]  ;;  %v1645_v33 = vld [vmem:[%s4906_s28 + $0x10] sm:$0xff] }
 0x4f7   : >> { %3417 = vmatprep.mubr.msk.bf16.mxu0 %vm4315_vm5, %v4314_v25  ;;  %3423 = vmatprep.mubr.msk.bf16.mxu1 %vm4315_vm5, %v4314_v25 }
 0x4f8   : >> { %3427 = vmatprep.subr.bf16.mxu0 %v4314_v25  ;;  %3433 = vmatprep.subr.bf16.mxu1 %v4314_v25 }
 0x4fd   : >> { %3418 = vmatmul.mubr.msk.bf16.vlgmr.msra.gmra.mrb[4].mxu0 %vm1648_vm6, %v5440_v59  ;;  %3424 = vmatmul.mubr.msk.bf16.vlgmr.msra.gmra.mrb[4].mxu1 %vm1648_vm6, %v4726_v62 }
 0x4fe   : >> { %3429 = vmatprep.mubr.msk.bf16.mxu0 %vm4315_vm5, %v4314_v25  ;;  %3435 = vmatprep.mubr.msk.bf16.mxu1 %vm4315_vm5, %v4314_v25 }
 0x4ff   : >> { %3428 = vmatpush3.bf16.msra.mxu0 %v1644_v32  ;;  %3434 = vmatpush3.bf16.msra.mxu1 %v1645_v33 }
 0x500   : >> { %3439 = vmatprep.subr.bf16.mxu0 %v4314_v25  ;;  %3445 = vmatprep.subr.bf16.mxu1 %v4314_v25 }
 0x5c8   : >> { %v1689_v34 = vpop.f32.mrb[0].mxu0  ;;  %v1736_v35 = vpop.f32.mrb[0].mxu1 }
 0x5c9   : >> { %v3407_v36 = vpop.f32.mrb[1].mxu0  ;;  %v3413_v37 = vpop.f32.mrb[1].mxu1  ;;  %v1843_v38 = vsel %vm1648_vm6, %v1736_v35, -inf  ;;  %v1837_v39 = vsel %vm1648_vm6, %v1689_v34, -inf }
 0x5ca   : >> { %1844 = vmax.xlane.f32.xlu1 %v1843_v38  ;;  %v1739_v40 = vpop.f32.mrb[2].mxu1  ;;  %1838 = vmax.xlane.f32.xlu0 %v1837_v39  ;;  %v1692_v54 = vpop.f32.mrb[2].mxu0 }
 0x5cb   : >> { %v3408_v41 = vpop.f32.mrb[3].mxu0  ;;  %v3414_v42 = vpop.f32.mrb[3].mxu1  ;;  %v1846_v43 = vsel %vm1648_vm6, %v1739_v40, -inf  ;;  %v1840_v44 = vsel %vm1648_vm6, %v1692_v54, -inf }
 0x5ce   : >> { %1847 = vmax.xlane.f32.xlu1 %v1846_v43  ;;  %1841 = vmax.xlane.f32.xlu0 %v1840_v44 }
 0x5d0   : >> { %v1783_v48 = vpop.f32.mrb[4].mxu0  ;;  %v4897_v49 = vpop.f32.mrb[4].mxu1 }
 0x5d1   : >> { %v3419_v52 = vpop.f32.mrb[5].mxu0  ;;  %v1849_v53 = vsel %vm1648_vm6, %v1783_v48, -inf  ;;  %v3425_v56 = vpop.f32.mrb[5].mxu1  ;;  %v1855_v30 = vsel %vm1648_vm6, %v4897_v49, -inf }
 0x5d2   : >> { %1850 = vmax.xlane.f32.xlu0 %v1849_v53  ;;  %v1786_v60 = vpop.f32.mrb[6].mxu0  ;;  %v1833_v26 = vpop.f32.mrb[6].mxu1 }
 0x5d3   : >> { %v3420_v27 = vpop.f32.mrb[7].mxu0  ;;  %v1852_v28 = vsel %vm1648_vm6, %v1786_v60, -inf  ;;  %v3426_v29 = vpop.f32.mrb[7].mxu1  ;;  %v1858_v31 = vsel %vm1648_vm6, %v1833_v26, -inf }
 0x5d4   : >> { %1853 = vmax.xlane.f32.xlu1 %v1852_v28 }
 0x5d6   : >> { %1856 = vmax.xlane.f32.xlu0 %v1855_v30 }
 0x5d8   : >> { %1859 = vmax.xlane.f32.xlu1 %v1858_v31 }
 0x657   : >> { %v1845_v36 = vpop.xlane.xlu1 %1844  ;;  %v1839_v37 = vpop.xlane.xlu0 %1838 }
 0x658   : >> { %v4913_v38 = vmax.f32 %v4280_v20, %v1845_v36   ;;  %v4916_v39 = vmax.f32 %v4288_v24, %v1839_v37  }
 0x65a   : >> { %v1871_v41 = vsub.f32 %v4280_v20, %v4913_v38  ;;  %v1895_v42 = vsub.f32 %v1736_v35, %v4913_v38  ;;  %v1869_v43 = vsub.f32 %v4288_v24, %v4916_v39  ;;  %v1893_v44 = vsub.f32 %v1689_v34, %v4916_v39 }
 0x65b   : >> { %v1848_v52 = vpop.xlane.xlu1 %1847  ;;  %v1842_v53 = vpop.xlane.xlu0 %1841 }
 0x65c   : >> { %v4925_v56 = vmax.f32 %v4276_v3, %v1848_v52   ;;  %v1901_v27 = vmul.f32 1.442695, %v1893_v44  ;;  %v4928_v28 = vmax.f32 %v4284_v23, %v1842_v53   ;;  %v1905_v29 = vmul.f32 1.442695, %v1895_v42 }
 0x65e   : >> { %v1872_v30 = vsub.f32 %v4276_v3, %v4925_v56  ;;  %v1896_v35 = vsub.f32 %v1739_v40, %v4925_v56  ;;  %v1870_v31 = vsub.f32 %v4284_v23, %v4928_v28  ;;  %v1894_v34 = vsub.f32 %v1692_v54, %v4928_v28 }
 0x65f   : >> { %v1851_v32 = vpop.xlane.xlu0 %1850  ;;  %3855 = vpow2.f32 %v1901_v27 }
 0x660   : >> { %v1907_v33 = vmul.f32 1.442695, %v1896_v35  ;;  %v4937_v36 = vmax.f32 %v4272_v18, %v1851_v32   ;;  %v1903_v37 = vmul.f32 1.442695, %v1894_v34  ;;  %3857 = vpow2.f32 %v1905_v29 }
 0x661   : >> { %v1854_v44 = vpop.xlane.xlu1 %1853 }
 0x662   : >> { %v1873_v42 = vsub.f32 %v4272_v18, %v4937_v36  ;;  %v1897_v52 = vsub.f32 %v1783_v48, %v4937_v36  ;;  %v4943_v40 = vmax.f32 %v4268_v17, %v1854_v44   ;;  %3859 = vpow2.f32 %v1907_v33 }
 0x663   : >> { %v1857_v53 = vpop.xlane.xlu0 %1856  ;;  %3861 = vpow2.f32 %v1903_v37 }
 0x664   : >> { %v1909_v54 = vmul.f32 1.442695, %v1897_v52  ;;  %v1874_v35 = vsub.f32 %v4268_v17, %v4943_v40  ;;  %v1898_v27 = vsub.f32 %v1786_v60, %v4943_v40  ;;  %v4949_v34 = vmax.f32 %v4264_v16, %v1857_v53  }
 0x665   : >> { %v1860_v29 = vpop.xlane.xlu1 %1859  ;;  %v1885_v24 = vmul.f32 1.442695, %v1873_v42 }
 0x666   : >> { %v4952_v32 = vmax.f32 %v4260_v58, %v1860_v29   ;;  %3863 = vpow2.f32 %v1909_v54  ;;  %v1911_v48 = vmul.f32 1.442695, %v1898_v27  ;;  %v1875_v33 = vsub.f32 %v4264_v16, %v4949_v34 }
 0x667   : >> { %v1899_v44 = vsub.f32 %v4897_v49, %v4949_v34  ;;  %v1647_v49 = vld [vmem:[%s4906_s28 + $0x30] sm:$0xff]  ;;  %v1887_v20 = vmul.f32 1.442695, %v1874_v35 }
 0x668   : >> { %v1876_v37 = vsub.f32 %v4260_v58, %v4952_v32  ;;  %v1900_v60 = vsub.f32 %v1833_v26, %v4952_v32  ;;  %3865 = vpow2.f32 %v1911_v48  ;;  %v1646_v48 = vld [vmem:[%s4906_s28 + $0x20] sm:$0xff] }
 0x669   : >> { %v1913_v52 = vmul.f32 1.442695, %v1899_v44  ;;  %v3856_v29 = vpop.eup %3855 }
 0x66a   : >> { %v1915_v53 = vmul.f32 1.442695, %v1900_v60  ;;  %v3858_v55 = vpop.eup %3857  ;;  %v1925_v54 = vsel %vm1648_vm6, %v3856_v29, 0.0  ;;  %v1891_v23 = vmul.f32 1.442695, %v1876_v37 }
 0x66b   : >> { %3867 = vpow2.f32 %v1913_v52  ;;  %1926 = vadd.xlane.f32.xlu0 %v1925_v54  ;;  %v1931_v58 = vsel %vm1648_vm6, %v3858_v55, 0.0 }
 0x66c   : >> { %v3860_v27 = vpop.eup %3859  ;;  %3869 = vpow2.f32 %v1915_v53 }
 0x66d   : >> { %v1958_v16 = vpack.c.bf16 %v3860_v27, %v3858_v55  ;;  %v3862_v59 = vpop.eup %3861  ;;  %v1934_v53 = vsel %vm1648_vm6, %v3860_v27, 0.0 }
 0x66e   : >> { %v1928_v19 = vsel %vm1648_vm6, %v3862_v59, 0.0  ;;  %v1957_v26 = vpack.c.bf16 %v3862_v59, %v3856_v29 }
 0x66f   : >> { %3436 = vmatmul.mubr.msk.bf16.vlgmr.msra.gmra.mrb[8].mxu1 %vm1648_vm6, %v1958_v16  ;;  %1929 = vadd.xlane.f32.xlu1 %v1928_v19 }
 0x670   : >> { %v3864_v44 = vpop.eup %3863  ;;  %1932 = vadd.xlane.f32.xlu0 %v1931_v58  ;;  %3430 = vmatmul.mubr.msk.bf16.vlgmr.msra.gmra.mrb[8].mxu0 %vm1648_vm6, %v1957_v26  ;;  %v1879_v58 = vmul.f32 1.442695, %v1870_v31  ;;  %v1883_v26 = vmul.f32 1.442695, %v1872_v30 }
 0x671   : >> { %3446 = vmatpush3.bf16.msra.mxu1 %v1647_v49  ;;  %v1937_v60 = vsel %vm1648_vm6, %v3864_v44, 0.0  ;;  %3440 = vmatpush3.bf16.msra.mxu0 %v1646_v48  ;;  %v1881_v49 = vmul.f32 1.442695, %v1871_v41  ;;  %v1889_v41 = vmul.f32 1.442695, %v1875_v33 }
 0x672   : >> { %v3866_v52 = vpop.eup %3865  ;;  %3441 = vmatprep.mubr.msk.bf16.mxu0 %vm4315_vm5, %v4314_v25  ;;  %3447 = vmatprep.mubr.msk.bf16.mxu1 %vm4315_vm5, %v4314_v25  ;;  %v1877_v25 = vmul.f32 1.442695, %v1869_v43 }
 0x673   : >> { %v1959_v55 = vpack.c.bf16 %v3866_v52, %v3864_v44  ;;  %1935 = vadd.xlane.f32.xlu1 %v1934_v53  ;;  %v1940_v54 = vsel %vm1648_vm6, %v3866_v52, 0.0 }
 0x674   : >> { %1938 = vadd.xlane.f32.xlu0 %v1937_v60  ;;  %3871 = vpow2.f32 %v1877_v25 }
 0x675   : >> { %v3868_v19 = vpop.eup %3867  ;;  %3873 = vpow2.f32 %v1881_v49 }
 0x676   : >> { %v1943_v59 = vsel %vm1648_vm6, %v3868_v19, 0.0  ;;  %v3870_v29 = vpop.eup %3869  ;;  %3875 = vpow2.f32 %v1879_v58 }
 0x677   : >> { %1941 = vadd.xlane.f32.xlu1 %v1940_v54  ;;  %v1960_v16 = vpack.c.bf16 %v3870_v29, %v3868_v19  ;;  %v1946_v27 = vsel %vm1648_vm6, %v3870_v29, 0.0  ;;  %3877 = vpow2.f32 %v1883_v26 }
 0x678   : >> { %1944 = vadd.xlane.f32.xlu0 %v1943_v59  ;;  %3442 = vmatmul.mubr.msk.bf16.vlgmr.msra.gmra.mrb[12].mxu0 %vm1648_vm6, %v1959_v55  ;;  %3879 = vpow2.f32 %v1885_v24 }
 0x679   : >> { %3448 = vmatmul.mubr.msk.bf16.vlgmr.msra.gmra.mrb[12].mxu1 %vm1648_vm6, %v1960_v16  ;;  %3881 = vpow2.f32 %v1887_v20 }
 0x67a   : >> { %3883 = vpow2.f32 %v1889_v41 }
 0x67b   : >> { %1947 = vadd.xlane.f32.xlu1 %v1946_v27  ;;  %3885 = vpow2.f32 %v1891_v23 }
 0x67e   : >> { %v3872_v43 = vpop.eup %3871 }
 0x67f   : >> { %v3874_v31 = vpop.eup %3873  ;;  %v1917_v3 = vmul.f32 %v4256_v15, %v3872_v43 }
 0x680   : >> { %v3876_v30 = vpop.eup %3875  ;;  %v1919_v17 = vmul.f32 %v4248_v13, %v3874_v31 }
 0x681   : >> { %v3878_v18 = vpop.eup %3877  ;;  %v1918_v42 = vmul.f32 %v4252_v14, %v3876_v30 }
 0x682   : >> { %v3880_v35 = vpop.eup %3879  ;;  %v1920_v55 = vmul.f32 %v4244_v12, %v3878_v18 }
 0x683   : >> { %v3882_v53 = vpop.eup %3881  ;;  %v1921_v19 = vmul.f32 %v4240_v11, %v3880_v35 }
 0x684   : >> { %v3884_v59 = vpop.eup %3883  ;;  %v1922_v16 = vmul.f32 %v4236_v10, %v3882_v53 }
 0x685   : >> { %v1923_v25 = vmul.f32 %v4232_v9, %v3884_v59  ;;  %v3886_v49 = vpop.eup %3885 }
 0x6f8   : >> { %v1927_v48 = vpop.xlane.xlu0 %1926 }
 0x6f9   : >> { %v4998_v15 = vadd.f32 %v1927_v48, %v1917_v3   ;;  %v2140_v3 = vmul.f32 %v4212_v4, %v3878_v18 }
 0x6fb   : >> { %v5441_v44 = vmov %v4998_v15 }
 0x6fc   : >> { %v1930_v60 = vpop.xlane.xlu1 %1929  ;;  %3930 = vrcp.f32 (%p5046_p12), %v5441_v44 }
 0x6fd   : >> { %v1933_v33 = vpop.xlane.xlu0 %1932  ;;  %v5002_v14 = vadd.f32 %v1930_v60, %v1918_v42  }
 0x6fe   : >> { %v5004_v13 = vadd.f32 %v1933_v33, %v1919_v17  }
 0x6ff   : >> { %v5442_v52 = vmov %v5002_v14 }
 0x700   : >> { %v5443_v37 = vmov %v5004_v13  ;;  %v1936_v15 = vpop.xlane.xlu1 %1935  ;;  %v1924_v13 = vmul.f32 %v4228_v8, %v3886_v49  ;;  %3932 = vrcp.f32 (%p5046_p12), %v5442_v52 }
 0x701   : >> { %v1939_v29 = vpop.xlane.xlu0 %1938  ;;  %v5008_v12 = vadd.f32 %v1936_v15, %v1920_v55   ;;  %3934 = vrcp.f32 (%p5046_p12), %v5443_v37 }
 0x702   : >> { %v5010_v11 = vadd.f32 %v1939_v29, %v1921_v19   ;;  %v2143_v29 = vmul.f32 %v4200_v0, %v3884_v59 }
 0x703   : >> { %v5444_v54 = vmov %v5008_v12  ;;  %v2139_v12 = vmul.f32 %v4216_v5, %v3874_v31 }
 0x704   : >> { %v5445_v27 = vmov %v5010_v11  ;;  %v1942_v14 = vpop.xlane.xlu1 %1941  ;;  %v2137_v11 = vmul.f32 %v4224_v7, %v3872_v43  ;;  %v2141_v43 = vmul.f32 %v4208_v2, %v3880_v35  ;;  %3936 = vrcp.f32 (%p5046_p12), %v5444_v54 }
 0x705   : >> { %v1945_v58 = vpop.xlane.xlu0 %1944  ;;  %v5014_v10 = vadd.f32 %v1942_v14, %v1922_v16   ;;  %3938 = vrcp.f32 (%p5046_p12), %v5445_v27 }
 0x706   : >> { %v5016_v9 = vadd.f32 %v1945_v58, %v1923_v25   ;;  %v2144_v58 = vmul.f32 %v4196_v63, %v3886_v49  ;;  %v3931_v45 = vpop.eup (%p5046_p12), %3930 }
 0x707   : >> { %v5446_v26 = vmov %v5014_v10  ;;  %v2138_v10 = vmul.f32 %v4220_v6, %v3876_v30 }
 0x708   : >> { %v5447_v41 = vmov %v5016_v9  ;;  %v1948_v24 = vpop.xlane.xlu1 %1947  ;;  %3940 = vrcp.f32 (%p5046_p12), %v5446_v26 }
 0x709   : >> { %v5019_v8 = vadd.f32 %v1948_v24, %v1924_v13   ;;  %3942 = vrcp.f32 (%p5046_p12), %v5447_v41 }
 0x70a   : > { %v3933_v46 = vpop.eup (%p5046_p12), %3932 }
 0x70b   : >> { %v5448_v48 = vmov %v5019_v8  ;;  %v3935_v50 = vpop.eup (%p5046_p12), %3934 }
 0x70c   : > { %3944 = vrcp.f32 (%p5046_p12), %v5448_v48 }
 0x70e   : > { %v3937_v51 = vpop.eup (%p5046_p12), %3936 }
 0x70f   : > { %v3939_v62 = vpop.eup (%p5046_p12), %3938 }
 0x742   : >> { %v2042_v20 = vpop.f32.mrb[8].mxu1 }
 0x743   : >> { %v5023_v5 = vadd.f32 %v2139_v12, %v2042_v20   ;;  %v3437_v23 = vpop.f32.mrb[9].mxu1  ;;  %v1998_v17 = vpop.f32.mrb[8].mxu0  ;;  %v5470_v12 = vmov %v5444_v54  ;;  %v5479_v20 = vmov %v4913_v38  ;;  %v3902_v38 = vld [vmem:[#allocation5] sm:$0xff] (%p5046_p12)  }
 0x744   : >> { %v2045_v60 = vpop.f32.mrb[10].mxu1  ;;  %v5026_v7 = vadd.f32 %v2137_v11, %v1998_v17   ;;  %v3431_v9 = vpop.f32.mrb[9].mxu0  ;;  %v5469_v11 = vmov %v5445_v27  ;;  %v5476_v17 = vmov %v4943_v40  ;;  %v5480_v23 = vmov %v4928_v28 }
 0x745   : >> { %v5449_v42 = vmov %v5023_v5  ;;  %v5029_v4 = vadd.f32 %v2140_v3, %v2045_v60   ;;  %v3438_v8 = vpop.f32.mrb[11].mxu1  ;;  %v2001_v19 = vpop.f32.mrb[10].mxu0  ;;  %v5467_v9 = vmov %v5447_v41  ;;  %v5478_v3 = vmov %v4925_v56 }
 0x746   : >> { %v5450_v33 = vmov %v5026_v7  ;;  %v5031_v6 = vadd.f32 %v2138_v10, %v2001_v19   ;;  %v3432_v15 = vpop.f32.mrb[11].mxu0  ;;  %v2142_v7 = vmul.f32 %v4204_v1, %v3882_v53  ;;  %v5466_v8 = vmov %v5448_v48 }
 0x747   : >> { %v5451_v55 = vmov %v5029_v4  ;;  %v5468_v10 = vmov %v5446_v26  ;;  %v5473_v15 = vmov %v5441_v44  ;;  %v5482_v40 = vmov (%p5046_p12), 0.0  }
 0x748   : >> { %v5452_v31 = vmov %v5031_v6  ;;  %3451 = vmatprep.subr.bf16.mxu0 (%p5046_p12), %v5482_v40  ;;  %3459 = vmatprep.mubr.msk.bf16.mxu0 (%p5046_p12), %vm4307_vm3, %v5482_v40  ;;  %v2161_v61 = vmul.f32 (%p5046_p12), %v3931_v45, %v5450_v33  ;;  %v2164_v28 = vmul.f32 (%p5046_p12), %v3937_v51, %v5451_v55 }
 0x749   : > { %3463 = vmatprep.subr.bf16.mxu1 (%p5046_p12), %v5482_v40  ;;  %3471 = vmatprep.mubr.msk.bf16.mxu1 (%p5046_p12), %vm4307_vm3, %v5482_v40 }
 0x74a   : > { %3452 = vmatpush3.bf16.msra.mxu0 (%p5046_p12), %v3902_v38 }
 0x74b   : >> { %v2086_v5 = vpop.f32.mrb[12].mxu0  ;;  %3453 = vmatprep.subr.bf16.mxu0 (%p5046_p12), %v5482_v40 }
 0x74c   : >> { %v5035_v2 = vadd.f32 %v2141_v43, %v2086_v5   ;;  %v3443_v18 = vpop.f32.mrb[13].mxu0  ;;  %v2130_v16 = vpop.f32.mrb[12].mxu1  ;;  %v5463_v5 = vmov %v5449_v42  ;;  %1607 = sbr.rel (!%p5046_p12) target bundleno = 1256 (0x4e8), region = 157 }
 0x74d   : >> { %v2089_v14 = vpop.f32.mrb[14].mxu0  ;;  %v5038_v0 = vadd.f32 %v2143_v29, %v2130_v16   ;;  %v3449_v4 = vpop.f32.mrb[13].mxu1  ;;  %v5475_v16 = vmov %v4949_v34  ;;  %v5477_v18 = vmov %v4937_v36 }
 0x74e   : >> { %v5453_v25 = vmov %v5035_v2  ;;  %v5041_v1 = vadd.f32 %v2142_v7, %v2089_v14   ;;  %v3444_v6 = vpop.f32.mrb[15].mxu0  ;;  %v2133_v13 = vpop.f32.mrb[14].mxu1  ;;  %v5462_v4 = vmov %v5451_v55  ;;  %v5465_v7 = vmov %v5450_v33 }
 0x74f   : >> { %v5454_v30 = vmov %v5038_v0  ;;  %v5043_v63 = vadd.f32 %v2144_v58, %v2133_v13   ;;  %v3450_v24 = vpop.f32.mrb[15].mxu1  ;;  %v5461_v2 = vmov %v5453_v25  ;;  %v5464_v6 = vmov %v5452_v31 }
 0x750   : >> { %v5455_v60 = vmov %v5041_v1  ;;  %v5459_v0 = vmov %v5454_v30  ;;  %v5471_v13 = vmov %v5443_v37  ;;  %v5472_v14 = vmov %v5442_v52 }
 0x751   : >> { %v5456_v35 = vmov %v5043_v63  ;;  %v5460_v1 = vmov %v5455_v60  ;;  %v5474_v58 = vmov %v4952_v32  ;;  %v5481_v24 = vmov %v4916_v39  ;;  %v3903_v39 = vld [vmem:[#allocation5 + $0x8] sm:$0xff] (%p5046_p12)   ;;  %v3941_v0 = vpop.eup (%p5046_p12), %3940 }
 0x752   : >> { %v5458_v63 = vmov %v5456_v35  ;;  %3454 = vmatpush3.bf16.msra.mxu0 (%p5046_p12), %v3903_v39  ;;  %v2163_v1 = vmul.f32 (%p5046_p12), %v3935_v50, %v5449_v42  ;;  %v2165_v2 = vmul.f32 (%p5046_p12), %v3939_v62, %v5453_v25  ;;  %v3943_v56 = vpop.eup (%p5046_p12), %3942  ;;  %v2166_v36 = vmul.f32 (%p5046_p12), %v3941_v0, %v5455_v60  ;;  %v3904_v24 = vld [vmem:[#allocation5 + $0x10] sm:$0xff] (%p5046_p12)  }
 0x753   : > { %3455 = vmatprep.subr.bf16.mxu0 %v5482_v40  ;;  %v2162_v63 = vmul.f32 %v3933_v46, %v5452_v31  ;;  %v3945_v34 = vpop.eup %3944  ;;  %v2167_v32 = vmul.f32 %v3943_v56, %v5454_v30 }
 0x754   : > { %v2169_v44 = vcombine.low %v2161_v61, %v2165_v2  ;;  %v2170_v52 = vcombine.high %v2161_v61, %v2165_v2  ;;  %v2168_v37 = vmul.f32 %v3945_v34, %v5456_v35 }
 0x755   : > { %v2237_v53 = vcombine.low %v2162_v63, %v2166_v36  ;;  %v2238_v59 = vcombine.high %v2162_v63, %v2166_v36  ;;  %v2185_v49 = vcombine.low %v2163_v1, %v2167_v32  ;;  %v2186_v26 = vcombine.high %v2163_v1, %v2167_v32  ;;  %v3905_v32 = vld [vmem:[#allocation5 + $0x18] sm:$0xff]  }
 0x756   : > { %v2177_v54 = vrot.slane %v2169_v44, %v4676_v47  ;;  %v2184_v27 = vrot.slane %v2170_v52, %v4676_v47  ;;  %v2253_v12 = vcombine.low %v2164_v28, %v2168_v37  ;;  %v2254_v20 = vcombine.high %v2164_v28, %v2168_v37  ;;  %3456 = vmatpush3.bf16.msra.mxu0 %v3904_v24 }
 0x757   : > { %v2245_v41 = vrot.slane %v2237_v53, %v4676_v47  ;;  %v2252_v48 = vrot.slane %v2238_v59, %v4676_v47  ;;  %v2193_v11 = vrot.slane %v2185_v49, %v4676_v47  ;;  %v2200_v42 = vrot.slane %v2186_v26, %v4676_v47  ;;  %3457 = vmatprep.subr.bf16.mxu0 %v5482_v40 }
 0x758   : > { %v2261_v23 = vrot.slane %v2253_v12, %v4676_v47  ;;  %v2268_v3 = vrot.slane %v2254_v20, %v4676_v47 }
 0x759   : > { %v2201_v17 = vcombine.low %v2177_v54, %v2193_v11  ;;  %v2202_v33 = vcombine.high %v2177_v54, %v2193_v11  ;;  %v2217_v9 = vcombine.low %v2184_v27, %v2200_v42  ;;  %v2218_v10 = vcombine.high %v2184_v27, %v2200_v42 }
 0x75a   : > { %v2269_v55 = vcombine.low %v2245_v41, %v2261_v23  ;;  %v2270_v8 = vcombine.high %v2245_v41, %v2261_v23  ;;  %v2285_v19 = vcombine.low %v2252_v48, %v2268_v3  ;;  %v2286_v31 = vcombine.high %v2252_v48, %v2268_v3  ;;  %3458 = vmatpush3.bf16.msra.mxu0 %v3905_v32  ;;  %v3912_v32 = vld [vmem:[%s5402_s11 + $0x30] ss:$8 sps:$4 sm:$0xff]  }
 0x75b   : > { %v2209_v15 = vrot.slane %v2201_v17, %v4679_v57  ;;  %v2216_v43 = vrot.slane %v2202_v33, %v4679_v57  ;;  %v2225_v5 = vrot.slane %v2217_v9, %v4679_v57  ;;  %v2232_v29 = vrot.slane %v2218_v10, %v4679_v57  ;;  %3475 = vmatprep.subr.bf16.mxu0 %v5482_v40 }
 0x75c   : > { %v2277_v25 = vrot.slane %v2269_v55, %v4679_v57  ;;  %v2284_v18 = vrot.slane %v2270_v8, %v4679_v57  ;;  %v2293_v7 = vrot.slane %v2285_v19, %v4679_v57  ;;  %v2300_v16 = vrot.slane %v2286_v31, %v4679_v57 }
 0x75d   : > { %v2305_v14 = vcombine.low %v2209_v15, %v2216_v43  ;;  %v3272_v30 = vcombine.high %v2209_v15, %v2216_v43  ;;  %v2321_v4 = vcombine.low %v2225_v5, %v2232_v29  ;;  %v3273_v58 = vcombine.high %v2225_v5, %v2232_v29 }
 0x75e   : > { %v2373_v60 = vcombine.low %v2277_v25, %v2284_v18  ;;  %v3274_v6 = vcombine.high %v2277_v25, %v2284_v18  ;;  %v2389_v13 = vcombine.low %v2293_v7, %v2300_v16  ;;  %v3275_v35 = vcombine.high %v2293_v7, %v2300_v16 }
 0x75f   : > { %v2312_v38 = vrot.slane %v2305_v14, %v4676_v47  ;;  %v2320_v39 = vrot.slane %v3272_v30, %v4676_v47  ;;  %v2328_v45 = vrot.slane %v2321_v4, %v4676_v47  ;;  %v2336_v46 = vrot.slane %v3273_v58, %v4676_v47  ;;  %v3276_v14 = vld [vmem:[%s5399_s8] ss:$0 sm:$0xff] }
 0x760   : > { %v2380_v50 = vrot.slane %v2373_v60, %v4676_v47  ;;  %v2388_v51 = vrot.slane %v3274_v6, %v4676_v47  ;;  %v2396_v61 = vrot.slane %v2389_v13, %v4676_v47  ;;  %v2404_v62 = vrot.slane %v3275_v35, %v4676_v47 }
 0x761   : > { %v2337_v63 = vcombine.low %v2312_v38, %v2320_v39  ;;  %v2353_v0 = vcombine.low %v2328_v45, %v2336_v46  ;;  %v2338_v1 = vcombine.high %v2312_v38, %v2320_v39  ;;  %v2354_v2 = vcombine.high %v2328_v45, %v2336_v46 }
 0x762   : > { %v2405_v56 = vcombine.low %v2380_v50, %v2388_v51  ;;  %v2421_v28 = vcombine.low %v2396_v61, %v2404_v62  ;;  %v2406_v36 = vcombine.high %v2380_v50, %v2388_v51  ;;  %v2422_v34 = vcombine.high %v2396_v61, %v2404_v62 }
 0x763   : > { %v2345_v44 = vrot.slane %v2337_v63, %v4679_v57  ;;  %v2361_v52 = vrot.slane %v2353_v0, %v4679_v57  ;;  %v2352_v37 = vrot.slane %v2338_v1, %v4679_v57  ;;  %v2368_v47 = vrot.slane %v2354_v2, %v4679_v57  ;;  %v3906_v1 = vld [vmem:[%s5402_s11] ss:$8 sps:$4 sm:$0xff]   ;;  %v3907_v2 = vld [vmem:[%s5402_s11 + $0x4] ss:$8 sps:$4 sm:$0xff]  }
 0x764   : > { %v2413_v53 = vrot.slane %v2405_v56, %v4679_v57  ;;  %v2429_v59 = vrot.slane %v2421_v28, %v4679_v57  ;;  %v2420_v54 = vrot.slane %v2406_v36, %v4679_v57  ;;  %v2436_v27 = vrot.slane %v2422_v34, %v4679_v57  ;;  %3464 = vmatpush3.bf16.msra.mxu1 %v3906_v1  ;;  %v3908_v56 = vld [vmem:[%s5402_s11 + $0x10] ss:$8 sps:$4 sm:$0xff]   ;;  %v3909_v28 = vld [vmem:[%s5402_s11 + $0x14] ss:$8 sps:$4 sm:$0xff]   ;;  %v3910_v36 = vld [vmem:[%s5402_s11 + $0x20] ss:$8 sps:$4 sm:$0xff]  }
 0x765   : > { %v2370_v49 = vcombine.high %v2345_v44, %v2361_v52  ;;  %v2371_v26 = vcombine.low %v2352_v37, %v2368_v47  ;;  %v2372_v41 = vcombine.high %v2352_v37, %v2368_v47  ;;  %v2369_v48 = vcombine.low %v2345_v44, %v2361_v52  ;;  %3465 = vmatprep.subr.bf16.mxu1 %v5482_v40  ;;  %v3911_v34 = vld [vmem:[%s5402_s11 + $0x24] ss:$8 sps:$4 sm:$0xff]   ;;  %v3913_v44 = vld [vmem:[%s5402_s11 + $0x34] ss:$8 sps:$4 sm:$0xff]  }
 0x766   : > { %v2438_v12 = vcombine.high %v2413_v53, %v2429_v59  ;;  %v2439_v20 = vcombine.low %v2420_v54, %v2436_v27  ;;  %v2440_v11 = vcombine.high %v2420_v54, %v2436_v27  ;;  %v2437_v42 = vcombine.low %v2413_v53, %v2429_v59 }
 0x768   : > { %v3887_v23 = vpack.i.bf16 %v2438_v12, %v2370_v49  ;;  %v3897_v3 = vpack.i.bf16 %v2440_v11, %v2372_v41  ;;  %v3892_v17 = vpack.i.bf16 %v2439_v20, %v2371_v26  ;;  %3466 = vmatpush3.bf16.msra.mxu1 %v3908_v56  ;;  %v3282_v49 = vld [vmem:[%s5400_s9] ss:$0 sm:$0xff] }
 0x769   : > { %3467 = vmatprep.subr.bf16.mxu1 %v5482_v40  ;;  %v3283_v20 = vld [vmem:[%s5401_s10] ss:$0 sm:$0xff] }
 0x76a   : > { %3888 = vrot.lane.b32.xlu0 %v3887_v23, %s4316_s12  ;;  %3898 = vrot.lane.b32.xlu1 %v3897_v3, %s4317_s23  ;;  %v3914_v3 = vld [vmem:[%s5404_s13 + $0x40] sm:$0xff]   ;;  %s5484_s12 = sld [smem:[#allocation19_spill]]  ;;  %s3027_s23 = sadd.s32 %s3315_s29, %s3314_s16 }
 0x76b   : > { %s3316_s21 = sshll.u32 %s3027_s23, 7  ;;  %s5487_s29 = sand.u32 1, %s4164_s19  }
 0x76c   : > { %3468 = vmatpush3.bf16.msra.mxu1 %v3910_v36  ;;  %s5328_s16 = scalar_lea.hbm %s5485_s18, %s3316_s21  ;;  %s5339_s28 = scalar_lea.sflag [#allocation7], %s5487_s29 }
 0x76d   : > { %3469 = vmatprep.subr.bf16.mxu1 %v5482_v40 }
 0x76e   : > { %3893 = vrot.lane.b32.xlu0 %v3892_v17, %s4318_s14  ;;  %v3915_v17 = vld [vmem:[%s5404_s13] sm:$0xff]  }
 0x770   : > { %3470 = vmatpush3.bf16.msra.mxu1 %v3912_v32 }
 0x771   : > { %3487 = vmatprep.subr.bf16.mxu1 %v5482_v40 }
 0x7dc   : > { %v3889_v57 = vpop.permute.xlu0 %3888  ;;  %v3899_v33 = vpop.permute.xlu1 %3898 }
 0x7dd   : > { %v3891_v9 = vunpack.i.h.bf16 %v3889_v57  ;;  %v3890_v10 = vunpack.i.l.bf16 %v3889_v57  ;;  %v3901_v8 = vunpack.i.h.bf16 %v3899_v33  ;;  %v3900_v19 = vunpack.i.l.bf16 %v3899_v33  ;;  %v3916_v33 = vld [vmem:[%s5404_s13 + $0x48] sm:$0xff]  }
 0x7df   : > { %v2467_v43 = vsel %vm1648_vm6, %v2437_v42, %v3891_v9  ;;  %v2466_v5 = vsel %vm1648_vm6, %v2369_v48, %v3890_v10  ;;  %v3917_v9 = vld [vmem:[%s5404_s13 + $0x8] sm:$0xff]   ;;  %v3918_v10 = vld [vmem:[%s5404_s13 + $0x50] sm:$0xff]  }
 0x7e0   : > { %v3894_v55 = vpop.permute.xlu0 %3893 }
 0x7e1   : > { %v3896_v31 = vunpack.i.h.bf16 %v3894_v55  ;;  %v3895_v15 = vunpack.i.l.bf16 %v3894_v55  ;;  %v3919_v55 = vld [vmem:[%s5404_s13 + $0x10] sm:$0xff]  }
 0x7e3   : > { %v2469_v29 = vsel %vm2468_vm7, %v2466_v5, %v3895_v15  ;;  %v2470_v25 = vsel %vm2468_vm7, %v2467_v43, %v3896_v31  ;;  %v3922_v31 = vld [vmem:[%s5404_s13 + $0x60] sm:$0xff]   ;;  %v3924_v43 = vld [vmem:[%s5404_s13 + $0x68] sm:$0xff]  }
 0x7e4   : > { %v2472_v18 = vsel %vm2471_vm8, %v2469_v29, %v3900_v19  ;;  %v2473_v7 = vsel %vm2471_vm8, %v2470_v25, %v3901_v8  ;;  %v3920_v8 = vld [vmem:[%s5404_s13 + $0x58] sm:$0xff]   ;;  %v3923_v15 = vld [vmem:[%s5404_s13 + $0x20] sm:$0xff]   ;;  %v3925_v5 = vld [vmem:[%s5404_s13 + $0x28] sm:$0xff]  }
 0x7e5   : > { %v2474_v16 = vpack.c.bf16 %v2473_v7, %v2472_v18  ;;  %v3921_v19 = vld [vmem:[%s5404_s13 + $0x18] sm:$0xff]   ;;  %v3926_v29 = vld [vmem:[%s5404_s13 + $0x70] sm:$0xff]  }
 0x7e6   : > { %v3927_v25 = vld [vmem:[%s5404_s13 + $0x30] sm:$0xff]   ;;  %v3928_v18 = vld [vmem:[%s5404_s13 + $0x78] sm:$0xff]  }
 0x7e7   : > { %3460 = vmatmul.mubr.msk.bf16.vlgmr.msra.gmra.mrb[0].mxu0 %vm1284_vm4, %v2474_v16  ;;  %v3929_v7 = vld [vmem:[%s5404_s13 + $0x38] sm:$0xff]   ;;  %v3284_v16 = vld [vmem:[%s5483_s26] ss:$0 sm:$0xff] }
 0x7e8   : > { %3483 = vmatprep.mubr.msk.bf16.mxu0 %vm4307_vm3, %v5482_v40  ;;  %3476 = vmatpush3.bf16.msra.mxu0 %v3907_v2 }
 0x7e9   : > { %3477 = vmatprep.subr.bf16.mxu0 %v5482_v40 }
 0x7ec   : > { %3478 = vmatpush3.bf16.msra.mxu0 %v3909_v28 }
 0x7ed   : > { %3479 = vmatprep.subr.bf16.mxu0 %v5482_v40 }
 0x7f0   : > { %3480 = vmatpush3.bf16.msra.mxu0 %v3911_v34 }
 0x7f1   : > { %3481 = vmatprep.subr.bf16.mxu0 %v5482_v40 }
 0x7f4   : > { %3482 = vmatpush3.bf16.msra.mxu0 %v3913_v44 }
 0x7f5   : > { %3507 = vmatprep.subr.bf16.mxu0 %v5482_v40 }
 0x8ba   : > { %v2551_v30 = vpop.f32.mrb[0].mxu0 }
 0x8bb   : > { %v2552_v4 = vadd.f32 %v3276_v14, %v2551_v30  ;;  %v3461_v58 = vpop.f32.mrb[1].mxu0 }
 0x8bc   : > { %v2554_v60 = vpop.f32.mrb[2].mxu0 }
 0x8bd   : > { %v5193_v6 = vadd.f32 %v2552_v4, %v4660_v21  ;;  %v2555_v13 = vadd.f32 %v3276_v14, %v2554_v60  ;;  %v3462_v35 = vpop.f32.mrb[3].mxu0  ;;  %v3290_v14 = vld [vmem:[%s5483_s26 + $0x1] ss:$0 sm:$0xff] }
 0x8bf   : > { %v5196_v24 = vadd.f32 %v2555_v13, %v4662_v22  ;;  %v2562_v38 = vsel %vm1284_vm4, %v5193_v6, 0.0 }
 0x8c0   : > { %2563 = vadd.xlane.f32.xlu1 %v2562_v38 }
 0x8c1   : > { %v2565_v39 = vsel %vm1284_vm4, %v5196_v24, 0.0 }
 0x8c2   : > { %2566 = vadd.xlane.f32.xlu0 %v2565_v39 }
 0x94d   : > { %v2564_v45 = vpop.xlane.xlu1 %2563 }
 0x94e   : > { %v2569_v46 = vmul.f32 0.015625, %v2564_v45 }
 0x94f   : > { %v2567_v50 = vpop.xlane.xlu0 %2566 }
 0x950   : > { %v2571_v51 = vsub.f32 %v5193_v6, %v2569_v46  ;;  %v2570_v21 = vmul.f32 0.015625, %v2567_v50 }
 0x952   : > { %v2572_v61 = vsub.f32 %v5196_v24, %v2570_v21  ;;  %v2573_v62 = vmul.f32 %v2571_v51, %v2571_v51 }
 0x954   : > { %v2575_v22 = vsel %vm1284_vm4, %v2573_v62, 0.0  ;;  %v2574_v63 = vmul.f32 %v2572_v61, %v2572_v61 }
 0x955   : > { %2576 = vadd.xlane.f32.xlu0 %v2575_v22 }
 0x956   : > { %v2578_v0 = vsel %vm1284_vm4, %v2574_v63, 0.0 }
 0x957   : > { %2579 = vadd.xlane.f32.xlu1 %v2578_v0 }
 0x9e2   : > { %v2577_v52 = vpop.xlane.xlu0 %2576 }
 0x9e3   : > { %v2581_v37 = vmul.f32 0.015625, %v2577_v52 }
 0x9e4   : > { %v2580_v47 = vpop.xlane.xlu1 %2579 }
 0x9e5   : > { %v2583_v53 = vadd.f32 1e-05, %v2581_v37  ;;  %v2582_v59 = vmul.f32 0.015625, %v2580_v47 }
 0x9e7   : > { %3946 = vrsqrt.f32 %v2583_v53  ;;  %v2584_v54 = vadd.f32 1e-05, %v2582_v59 }
 0x9e9   : > { %3948 = vrsqrt.f32 %v2584_v54 }
 0x9f1   : > { %v3947_v27 = vpop.eup %3946 }
 0x9f2   : > { %v2587_v26 = vmul.f32 %v3947_v27, %v2571_v51 }
 0x9f3   : > { %v3949_v41 = vpop.eup %3948 }
 0x9f4   : > { %v2588_v48 = vmul.f32 %v3949_v41, %v2572_v61  ;;  %v2595_v12 = vmul.f32 %v3282_v49, %v2587_v26  ;;  %v3312_v41 = vld [vmem:[%s5484_s12] ss:$0 sm:$0xff]  ;;  %s4319_s12 = smov [#allocation8]  }
 0x9f5   : > { %s3990_s23 = sshll.u32 %s4319_s12, 4  ;;  %s3991_s23 = int_to_ptr.vmem [resolvable:$false] %s3990_s23 }
 0x9f6   : > { %v2596_v11 = vmul.f32 %v3282_v49, %v2588_v48  ;;  %v2603_v42 = vadd.f32 %v3283_v20, %v2595_v12  ;;  %s3992_s21 = scalar_lea.vmem %s3991_s23, 512  ;;  %p3993_p7 = scmp.lt.s32.totalorder %s5330_s22, %s3991_s23 }
 0x9f7   : > { %p3994_p9 = scmp.lt.s32.totalorder %s3992_s21, %s3986_s15 }
 0x9f8   : > { %v2604_v23 = vadd.f32 %v3283_v20, %v2596_v11 }
 0x9f9   : > { %p3995_p11 = por %p3994_p9, %p3993_p7 }
 0x9fa   : > { %v2605_v57 = vpack.c.bf16 %v2604_v23, %v2603_v42 }
 0x9fb   : > { %p3996_p13 = pnand %p3995_p11, %p3989_p6 }
 0x9fc   : > { %3472 = vmatmul.mubr.msk.bf16.vlgmr.msra.gmra.mrb[0].mxu1 %vm1284_vm4, %v2605_v57  ;;  %3484 = vmatmul.mubr.msk.bf16.vlgmr.msra.gmra.mrb[4].mxu0 %vm1284_vm4, %v2605_v57 }
 0x9fd   : > { %3488 = vmatpush3.bf16.msra.mxu1 %v3914_v3  ;;  %3508 = vmatpush3.bf16.msra.mxu0 %v3915_v17 }
 0x9fe   : > { %3489 = vmatprep.subr.bf16.mxu1 %v5482_v40  ;;  %3509 = vmatprep.subr.bf16.mxu0 %v5482_v40 }
 0x9ff   : > { %3503 = vmatprep.mubr.msk.bf16.mxu1 %vm4307_vm3, %v5482_v40  ;;  %3523 = vmatprep.mubr.msk.bf16.mxu0 %vm4307_vm3, %v5482_v40 }
 0xa01   : > { %3490 = vmatpush3.bf16.msra.mxu1 %v3916_v33  ;;  %3510 = vmatpush3.bf16.msra.mxu0 %v3917_v9 }
 0xa02   : > { %3491 = vmatprep.subr.bf16.mxu1 %v5482_v40  ;;  %3511 = vmatprep.subr.bf16.mxu0 %v5482_v40 }
 0xa05   : > { %3492 = vmatpush3.bf16.msra.mxu1 %v3918_v10  ;;  %3512 = vmatpush3.bf16.msra.mxu0 %v3919_v55 }
 0xa06   : > { %3493 = vmatprep.subr.bf16.mxu1 %v5482_v40  ;;  %3513 = vmatprep.subr.bf16.mxu0 %v5482_v40 }
 0xa09   : > { %3494 = vmatpush3.bf16.msra.mxu1 %v3920_v8  ;;  %3514 = vmatpush3.bf16.msra.mxu0 %v3921_v19 }
 0xa0a   : > { %3495 = vmatprep.subr.bf16.mxu1 %v5482_v40  ;;  %3515 = vmatprep.subr.bf16.mxu0 %v5482_v40 }
 0xa0d   : > { %3496 = vmatpush3.bf16.msra.mxu1 %v3922_v31  ;;  %3516 = vmatpush3.bf16.msra.mxu0 %v3923_v15 }
 0xa0e   : > { %3497 = vmatprep.subr.bf16.mxu1 %v5482_v40  ;;  %3517 = vmatprep.subr.bf16.mxu0 %v5482_v40 }
 0xa11   : > { %3498 = vmatpush3.bf16.msra.mxu1 %v3924_v43  ;;  %3518 = vmatpush3.bf16.msra.mxu0 %v3925_v5 }
 0xa12   : > { %3499 = vmatprep.subr.bf16.mxu1 %v5482_v40  ;;  %3519 = vmatprep.subr.bf16.mxu0 %v5482_v40 }
 0xa15   : > { %3500 = vmatpush3.bf16.msra.mxu1 %v3926_v29  ;;  %3520 = vmatpush3.bf16.msra.mxu0 %v3927_v25 }
 0xa16   : > { %3501 = vmatprep.subr.bf16.mxu1 %v5482_v40  ;;  %3521 = vmatprep.subr.bf16.mxu0 %v5482_v40 }
 0xa19   : > { %3502 = vmatpush3.bf16.msra.mxu1 %v3928_v18  ;;  %3522 = vmatpush3.bf16.msra.mxu0 %v3929_v7 }
 0xacf   : > { %v2682_v30 = vpop.f32.mrb[0].mxu1  ;;  %v2789_v40 = vpop.f32.mrb[4].mxu0 }
 0xad0   : > { %v2683_v4 = vadd.f32 %v3284_v16, %v2682_v30  ;;  %v2790_v58 = vadd.f32 %v3290_v14, %v2789_v40  ;;  %v3473_v60 = vpop.f32.mrb[1].mxu1  ;;  %v3485_v13 = vpop.f32.mrb[5].mxu0 }
 0xad1   : > { %v2685_v35 = vpop.f32.mrb[2].mxu1  ;;  %v2792_v38 = vpop.f32.mrb[6].mxu0 }
 0xad2   : > { %v2691_v39 = vmul.f32 0.70710677, %v2683_v4  ;;  %v2798_v45 = vmul.f32 0.70710677, %v2790_v58  ;;  %v2686_v46 = vadd.f32 %v3284_v16, %v2685_v35  ;;  %v2793_v50 = vadd.f32 %v3290_v14, %v2792_v38  ;;  %v3474_v51 = vpop.f32.mrb[3].mxu1  ;;  %v3486_v21 = vpop.f32.mrb[7].mxu0 }
 0xad3   : > { %v2689_v28 = vmul.f32 0.5, %v2683_v4  ;;  %v2796_v32 = vmul.f32 0.5, %v2790_v58 }
 0xad4   : > { %3950 = verf.f32 %v2691_v39  ;;  %v2692_v61 = vmul.f32 0.70710677, %v2686_v46  ;;  %v2799_v62 = vmul.f32 0.70710677, %v2793_v50  ;;  %v2690_v36 = vmul.f32 0.5, %v2686_v46 }
 0xad5   : > { %3952 = verf.f32 %v2798_v45  ;;  %v2797_v44 = vmul.f32 0.5, %v2793_v50 }
 0xad6   : > { %3954 = verf.f32 %v2692_v61 }
 0xad7   : > { %3956 = verf.f32 %v2799_v62 }
 0xade   : > { %v3951_v22 = vpop.eup %3950 }
 0xadf   : > { %v3953_v63 = vpop.eup %3952  ;;  %v2695_v0 = vadd.f32 1.0, %v3951_v22 }
 0xae0   : > { %v3955_v1 = vpop.eup %3954  ;;  %v2802_v2 = vadd.f32 1.0, %v3953_v63 }
 0xae1   : > { %v3957_v56 = vpop.eup %3956  ;;  %v2696_v34 = vadd.f32 1.0, %v3955_v1  ;;  %v2697_v37 = vmul.f32 %v2695_v0, %v2689_v28 }
 0xae2   : > { %v2803_v52 = vadd.f32 1.0, %v3957_v56  ;;  %v2804_v53 = vmul.f32 %v2802_v2, %v2796_v32 }
 0xae3   : > { %v2698_v47 = vmul.f32 %v2696_v34, %v2690_v36 }
 0xae4   : > { %v2805_v59 = vmul.f32 %v2803_v52, %v2797_v44 }
 0xae5   : > { %v2699_v54 = vpack.c.bf16 %v2698_v47, %v2697_v37 }
 0xae6   : > { %v2806_v27 = vpack.c.bf16 %v2805_v59, %v2804_v53 }
 0xae7   : > { %3524 = vmatmul.mubr.bf16.vlgmr.msra.gmra.mrb[8].mxu0 %v2699_v54 }
 0xae8   : > { %3504 = vmatmul.mubr.bf16.vlgmr.msra.gmra.mrb[4].mxu1 %v2806_v27 }
 0xbba   : > { %v2994_v49 = vpop.f32.mrb[8].mxu0 }
 0xbbb   : > { %v2905_v26 = vpop.f32.mrb[4].mxu1  ;;  %v3525_v48 = vpop.f32.mrb[9].mxu0 }
 0xbbc   : > { %v2995_v12 = vadd.f32 %v2994_v49, %v2905_v26  ;;  %v3505_v20 = vpop.f32.mrb[5].mxu1  ;;  %v2997_v11 = vpop.f32.mrb[10].mxu0 }
 0xbbd   : > { %v2908_v42 = vpop.f32.mrb[6].mxu1  ;;  %v3526_v23 = vpop.f32.mrb[11].mxu0 }
 0xbbe   : > { %v3008_v3 = vadd.f32 %v3312_v41, %v2995_v12  ;;  %v2998_v17 = vadd.f32 %v2997_v11, %v2908_v42  ;;  %v3506_v57 = vpop.f32.mrb[7].mxu1 }
 0xbc0   : > { %v3010_v33 = vadd.f32 %v3008_v3, %v5193_v6  ;;  %v3009_v9 = vadd.f32 %v3312_v41, %v2998_v17 }
 0xbc2   : > { %3012 = vst.msk [vmem:[%s4521_s24] sm:$0xff] %vm1284_vm4, %v3010_v33  ;;  %v3011_v10 = vadd.f32 %v3009_v9, %v5196_v24 }
 0xbc4   : > { %3013 = vst.msk [vmem:[%s4521_s24 + $0x8] sm:$0xff] %vm1284_vm4, %v3011_v10 }
 0xbc5   : > { %3999 = shalt.err (!%p3996_p13)
}
 0xbc6   : > { %s4000_s24 = scalar_lea.hbm %s5328_s16, 256  ;;  %s4004_s18 = scalar_lea.hbm %s5486_s30, 1024 }
 0xbc7   : > { %p4001_p1 = scmp.ne.s32.totalorder %s5328_s16, %s4000_s24  ;;  %p4005_p8 = scmp.lt.u32.totalorder %s5328_s16, %s5486_s30 }
 0xbc8   : > { %p4006_p10 = scmp.lt.u32.totalorder %s4004_s18, %s4000_s24  ;;  %p4008_p0 = scmp.lt.u32.totalorder %s4000_s24, %s5328_s16 }
 0xbc9   : > { %p4002_p4 = pnand %p4001_p1, %p5488_p2 }
 0xbca   : > { %p4007_p12 = por %p4006_p10, %p4005_p8 }
 0xbcb   : > { %p4003_p3 = pneg %p4002_p4 }
 0xbcc   : > { %p4009_p5 = por %p4008_p0, %p4007_p12 }
 0xbce   : > { %p4010_p6 = pnand %p4009_p5, %p4003_p3 }
 0xbd0   : > { %4013 = shalt.err (!%p4010_p6)
}
 0xbd1   : > { %s4320_s15 = smov 128   ;;  %s4321_s23 = smov 8  }
 0xbd2   : > { %3531 = dma.vmem_to_hbm [thread:$0]  (%p5488_p2), %s5330_s22, 256, %s5328_s16, %s5339_s28, %s4320_s15, %s4320_s15, %s4321_s23  }
 0xbd3 PF: > { %s5489_s21 = sld [smem:[#allocation11_spill]]  ;;  %s5490_s14 = sld [smem:[#allocation16_spill]] }
 0xbd4   : > { %p3543_p7 = scmp.ge.s32.totalorder %s4188_s25, 2 }
 0xbd9   : > { %s3045_s27 = sand.u32 1, %s5489_s21   ;;  %p5491_p9 = scmp.ne.s32.totalorder %s5490_s14, 0 }
 0xbda   : > { %s3046_s24 = scalar_lea.sflag [#allocation7], %s3045_s27 }
 0xbdb   : > { %p3538_p11 = pnand %p3543_p7, %p5491_p9 }
 0xbdd   : > { %4155 = dma.done.wait (!%p3538_p11), %s3046_s24, 256  }
 0xbde   : > { %4157 = vsyncadd (!%p3538_p11), %s3046_s24, 4294967040  ;;  %s29_s25 = sadd.s32 1, %s4188_s25   ;;  %s5492_s29 = sld [smem:[#allocation17_spill]] }
 0xbdf   : > { %p26_p13 = scmp.ge.s32.totalorder %s29_s25, 6   ;;  %s5493_s21 = sld [smem:[#allocation12_spill]] }
 0xbe0   : > { %s5494_s22 = sld [smem:[#allocation13_spill]]  ;;  %s5495_s23 = sld [smem:[#allocation14_spill]] }
 0xbe1   : > { %s5496_s24 = sld [smem:[#allocation15_spill]]  ;;  %s5497_s18 = smov %s4164_s19 }
 0xbe2   : > { %s5498_s19 = smov %s4168_s20  ;;  %28 = sbr.rel (!%p26_p13) target bundleno = 10 (0xa), region = 168 }
 0xbe4   : > { %s5499_s20 = smov %s5492_s29 }
 0xbe9   :  { %3051 = vsyncpa [#allocation6], 1 }
 0xbea   :  { %3053 = vsyncpa [#allocation6 + $0x1], 1 }
 0xbeb   :  { %3054 = vsyncpa [#allocation7], 1 }
 0xbec   :  { %3056 = vsyncpa [#allocation7 + $0x1], 1 }

// kernel: tpu_custom_call.1
= control target key start
LH: loop header
LB: loop body
LE: loop exit
PB: predicated region body
PF: predicated region fallthrough
CT: control target
= control target key end

     0   :  { %s5389_s0 = inlined_call_operand.vmem [shape: f32[2,32,64], index: 0, kind: input, shape index: {}]   ;;  %s5390_s1 = inlined_call_operand.vmem [shape: f32[1,64], index: 1, kind: input, shape index: {}]   ;;  %s5391_s2 = inlined_call_operand.vmem [shape: f32[1,64], index: 2, kind: input, shape index: {}]   ;;  %s5392_s3 = inlined_call_operand.vmem [shape: bf16[64,64], index: 3, kind: input, shape index: {}]   ;;  %s5393_s4 = inlined_call_operand.vmem [shape: f32[1,64], index: 4, kind: input, shape index: {}]   ;;  %s5394_s5 = inlined_call_operand.vmem [shape: bf16[64,128], index: 5, kind: input, shape index: {}]   ;;  %s5395_s6 = inlined_call_operand.vmem [shape: f32[1,128], index: 6, kind: input, shape index: {}]   ;;  %s5396_s7 = inlined_call_operand.hbm [shape: bf16[64,64], index: 7, kind: input, shape index: {}]   ;;  %s5397_s8 = inlined_call_operand.vmem [shape: f32[1,64], index: 8, kind: input, shape index: {}]   ;;  %s5398_s9 = inlined_call_operand.vmem [shape: f32[1,64], index: 9, kind: input, shape index: {}]   ;;  %s5399_s10 = inlined_call_operand.vmem [shape: f32[1,64], index: 10, kind: input, shape index: {}]   ;;  %s5400_s11 = inlined_call_operand.vmem [shape: bf16[64,256], index: 11, kind: input, shape index: {}]   ;;  %s5401_s12 = inlined_call_operand.vmem [shape: f32[1,256], index: 12, kind: input, shape index: {}]   ;;  %s5402_s13 = inlined_call_operand.vmem [shape: bf16[256,64], index: 13, kind: input, shape index: {}]   ;;  %s5403_s14 = inlined_call_operand.vmem [shape: f32[1,64], index: 14, kind: input, shape index: {}]   ;;  %s5404_s15 = inlined_call_operand.hbm [shape: f32[2,32,64], index: 15, kind: output, shape index: {}]  }
   0x1   :  { %5420 = sst [smem:[#allocation18_spill]] %s5401_s12 }
   0x2   :  { %5421 = sst [smem:[#allocation19_spill]] %s5403_s14 }
   0x3   :  { %5422 = sst [smem:[#allocation20_spill]] %s5404_s15 }
   0x4   :  { %20 = vsyncpa [#allocation6], 0 }
   0x5   :  { %21 = vsyncpa [#allocation7], 0 }
   0x6   :  { %23 = vsyncpa [#allocation7 + $0x1], 0  ;;  %s4400_s18 = smov 0   ;;  %s4402_s19 = smov 0  }
   0x7   :  { %s4404_s20 = smov 0   ;;  %s4406_s21 = smov 0  }
   0x8   :  { %s4408_s22 = smov 0   ;;  %s4410_s23 = smov 0  }
   0x9   :  { %s4412_s24 = smov 0   ;;  %s4414_s25 = smov 0  }
   0xa LB: > { %5423 = sst [smem:[#allocation11_spill]] %s4158_s18  ;;  %s3216_s26 = sadd.s32 4294967295, %s4186_s25   ;;  %s4186_s25 = sphi %s4414_s25, %s29_s25   ;;  %s4182_s24 = sphi %s4412_s24, %s5494_s24   ;;  %s4178_s23 = sphi %s4410_s23, %s5493_s23   ;;  %s4174_s22 = sphi %s4408_s22, %s5492_s22   ;;  %s4170_s21 = sphi %s4406_s21, %s5491_s21   ;;  %s4166_s20 = sphi %s4404_s20, %s5497_s20   ;;  %s4162_s19 = sphi %s4402_s19, %s5496_s19   ;;  %s4158_s18 = sphi %s4400_s18, %s5495_s18  }
   0xb   : > { %5424 = sst [smem:[#allocation12_spill]] %s4178_s23  ;;  %s3217_s27 = sadd.s32 4294967294, %s4186_s25  }
   0xc   : > { %5425 = sst [smem:[#allocation13_spill]] %s4182_s24  ;;  %s38_s28 = sadd.s32 1, %s4178_s23 }
   0xd   : > { %s41_s29 = sadd.s32 1, %s4182_s24  ;;  %p39_p0 = scmp.ge.s32.totalorder %s38_s28, 2 }
   0xe   : > { %s370_s30 = sadd.s32 1, %s4166_s20  ;;  %p380_p1 = scmp.ne.s32.totalorder %s4166_s20, %s4162_s19 }
   0xf   : > { %p381_p2 = scmp.eq.s32.totalorder %s3216_s26, 3  ;;  %s5499_s28 = smov (%p39_p0, %s38_s28), 0 }
  0x10   : > { %5426 = sst [smem:[#allocation14_spill]] %s5499_s28  ;;  %s5501_s29 = smov (!%p39_p0, %s41_s29), %s4182_s24 }
  0x11   : > { %s366_s16 = ssub.s32 %s4178_s23, %s5499_s28  ;;  %p4452_p3 = por %p381_p2, %p380_p1 }
  0x12   : > { %p43_p4 = scmp.ge.s32.totalorder %s5501_s29, 2  ;;  %p386_p5 = scmp.ne.s32.totalorder %s4162_s19, %s4158_s18 }
  0x13   : > { %s5427_s17 = scalar_select %p4452_p3, 1, 0 }
  0x14   : > { %p387_p6 = scmp.eq.s32.totalorder %s3217_s27, 3  ;;  %p3218_p7 = scmp.ge.s32.totalorder %s4186_s25, 1 }
  0x15   : > { %s5503_s29 = smov (%p43_p4, %s5501_s29), 0  ;;  %p394_p9 = scmp.lt.s32.totalorder %s4186_s25, 5 }
  0x16   : > { %5428 = sst [smem:[#allocation15_spill]] %s5503_s29  ;;  %p4461_p8 = por %p387_p6, %p386_p5 }
  0x17   : > { %s365_s14 = ssub.s32 %s4182_s24, %s5503_s29  ;;  %p4468_p10 = pnand %p3218_p7, %p394_p9 }
  0x18   : > { %s5429_s15 = scalar_select %p4461_p8, 1, 0 }
  0x19   : > { %s367_s12 = sor.u32 %s366_s16, %s365_s14  ;;  %p4472_p12 = scmp.eq.s32.totalorder %s3216_s26, 0 }
  0x1a   : > { %5430 = sst [smem:[#allocation16_spill]] %s5429_s15  ;;  %p368_p11 = scmp.eq.s32.totalorder %s367_s12, 0 }
  0x1b   : > { %s5431_s28 = scalar_select %p4468_p10, 1, 0 }
  0x1c   : > { %s5432_s23 = scalar_select %p4472_p12, 1, 0 }
  0x1d   : > { %p3531_p13 = pneg %p4468_p10  ;;  %s4292_s18 = smov [#allocation5]  }
  0x1e   : > { %s4479_s27 = scalar_select %p368_p11, %s4166_s20, %s370_s30  }
  0x1f   : > { %s424_s15 = sshll.u32 %s4292_s18, 4  ;;  %p4483_p0 = pnand %p4472_p12, %p3531_p13  ;;  %s425_s15 = int_to_ptr.vmem [resolvable:$true] %s424_s15 }
  0x20   : > { %5433 = sst [smem:[#allocation17_spill]] %s4479_s27  ;;  %s3956_s26 = scalar_lea.hbm %s5396_s7, 512 }
  0x21   : > { %p3957_p1 = scmp.ne.s32.totalorder %s5396_s7, %s3956_s26  ;;  %p3958_p2 = pneg %p4483_p0 }
  0x22   : > { %p3963_p6 = scmp.lt.u32.totalorder %s3956_s26, %s5396_s7 }
  0x23   : > { %p3959_p4 = pnand %p3958_p2, %p3957_p1 }
  0x25   : > { %p3960_p5 = pneg %p3959_p4 }
  0x27   : > { %p3965_p7 = pnand %p3963_p6, %p3960_p5 }
  0x29   : > { %3968 = shalt.err (!%p3965_p7)
}
  0x2a   : > { %s3969_s27 = scalar_lea.vmem %s425_s15, 512  ;;  %p3977_p8 = scmp.lt.s32.totalorder %s425_s15, %s425_s15 }
  0x2b   : > { %p3970_p9 = scmp.ne.s32.totalorder %s425_s15, %s3969_s27  ;;  %p3978_p3 = scmp.lt.s32.totalorder %s3969_s27, %s3969_s27 }
  0x2d   : > { %p3972_p11 = pnand %p3970_p9, %p3958_p2  ;;  %p3979_p12 = por %p3978_p3, %p3977_p8 }
  0x2f   : > { %p3973_p13 = pneg %p3972_p11 }
  0x31   : > { %p3980_p10 = pnand %p3979_p12, %p3973_p13 }
  0x33   : > { %3983 = shalt.err (!%p3980_p10)
}
  0x34   : > { %s4293_s24 = smov 64   ;;  %s4294_s29 = smov 4  }
  0x35   : > { %3534 = dma.hbm_to_vmem [thread:$0]  (!%p4483_p0), %s5396_s7, 512, %s425_s15, [#allocation6], %s4293_s24, %s4293_s24, %s4294_s29  }
  0x36   : > { %p5435_p1 = scmp.ne.s32.totalorder %s5431_s28, 0 }
  0x37   : > { %p5436_p4 = scmp.ne.s32.totalorder (!%p5435_p1), %s5432_s23, 0 }
  0x38   : > { %469 = sbr.rel (%p5435_p1) target bundleno = 3027 (0xbd3), region = 80 }
  0x3f   : > { %4149 = dma.done.wait (%p5436_p4), [#allocation6], 512  }
  0x40   : > { %4151 = vsyncadd (%p5436_p4), [#allocation6], 4294966784  ;;  %s5417_s27 = sand.u32 1, %s4162_s19   ;;  %p517_p3 = scmp.lt.s32.totalorder %s4174_s22, 1 }
  0x41   : > { %s3223_s14 = sshll.u32 %s5417_s27, 4  ;;  %p3226_p8 = scmp.ne.s32.totalorder %s4170_s21, 0 }
  0x42   : > { %s518_s26 = scalar_select %p517_p3, %s4174_s22, 1 }
  0x43   : > { %s4519_s24 = scalar_lea.vmem [#allocation8], %s3223_s14  ;;  %527 = sbr.rel (%p3226_p8) target bundleno = 876 (0x36c), region = 88 }
  0x44   : > { %s3317_s18 = sshll.u32 %s518_s26, 5  ;;  %s4522_s23 = smov (!%p3226_p8), 0  }
  0x45   : > { %s4517_s28 = scalar_lea.vmem %s5389_s0, %s3317_s18 }
  0x4a LB: >> { %s3227_s29 = sshll.u32 %s4190_s23, 4  ;;  %vm540_vm0 = vcmask 523264   ;;  %v3841_v14 = vld [vmem:[%s5394_s5] sm:$0xff]   ;;  %v4295_v15 = vmov 0.0   ;;  %v3842_v16 = vld [vmem:[%s5394_s5 + $0x8] sm:$0xff]   ;;  %v3843_v17 = vld [vmem:[%s5394_s5 + $0x10] sm:$0xff]   ;;  %v707_v46 = vlaneseq  ;;  %s4190_s23 = sphi %s4522_s23, %s533_s23  }
  0x4b   : >> { %s535_s16 = scalar_lea.vmem %s4517_s28, %s3227_s29  ;;  %3377 = vmatprep.subr.bf16.mxu0 %v4295_v15  ;;  %v3844_v18 = vld [vmem:[%s5394_s5 + $0x18] sm:$0xff]   ;;  %vm4296_vm1 = vmmov 0   ;;  %v3228_v27 = vld [vmem:[%s5390_s1] ss:$0 sm:$0xff]  ;;  %s585_s27 = sshra.s32 %s3227_s29, 4  ;;  %v4303_v53 = vmov 0  }
  0x4c   : >> { %v536_v0 = vld [vmem:[%s535_s16] sm:$0xff]  ;;  %v537_v1 = vld [vmem:[%s535_s16 + $0x8] sm:$0xff]  ;;  %3378 = vmatpush3.bf16.msra.mxu0 %v3841_v14  ;;  %3385 = vmatprep.mubr.msk.bf16.mxu0 %vm4296_vm1, %v4295_v15  ;;  %s4555_s15 = sshll.u32 %s585_s27, 3  ;;  %s4297_s12 = smov 96   ;;  %v4301_v44 = vmov 1983009808   ;;  %v4563_v54 = vpack.i.b16 %v4303_v53, %v4303_v53 }
  0x4d   : >> { %v541_v2 = vsel %vm540_vm0, %v536_v0, 0.0  ;;  %v544_v3 = vsel %vm540_vm0, %v537_v1, 0.0  ;;  %3379 = vmatprep.subr.bf16.mxu0 %v4295_v15  ;;  %v3229_v31 = vld [vmem:[%s5391_s2] ss:$0 sm:$0xff]  ;;  %s588_s30 = scalar_lea.vmem [#allocation2], %s4555_s15  ;;  %s4298_s14 = smov 112   ;;  %v705_v45 = vunpack.c.l.s4 %v4301_v44 }
  0x4e   : >> { %542 = vadd.xlane.f32.xlu0 %v541_v2  ;;  %v3231_v36 = vld [vmem:[%s5395_s6] ss:$0 sm:$0xff]  ;;  %s4299_s27 = smov 80   ;;  %s4300_s26 = smov 64   ;;  %v708_v48 = vshrl.u32 %v707_v46, 7  ;;  %vm953_vm2 = vcmask 130048  }
  0x4f   : >> { %v706_v47 = vunpack.c.0.s8 %v705_v45  ;;  %v4302_v49 = vmov 1934713408   ;;  %s952_s18 = scalar_lea.vmem [#allocation3], %s4555_s15  ;;  %s533_s23 = sadd.s32 1, %s4190_s23  }
  0x50   : >> { %3380 = vmatpush3.bf16.msra.mxu0 %v3842_v16  ;;  %v736_v50 = vunpack.c.l.s4 %v4302_v49  ;;  %p530_p10 = scmp.ge.s32.totalorder %s533_s23, 2  }
  0x51   : >> { %3381 = vmatprep.subr.bf16.mxu0 %v4295_v15  ;;  %v4565_v58 = vsub.s32 %v706_v47, %v708_v48 }
  0x52   : >> { %545 = vadd.xlane.f32.xlu0 %v544_v3  ;;  %v737_v59 = vunpack.c.0.s8 %v736_v50 }
  0x54   : >> { %3382 = vmatpush3.bf16.msra.mxu0 %v3843_v17  ;;  %v4569_v3 = vsub.s32 %v737_v59, %v708_v48 }
  0x55   : >> { %3383 = vmatprep.subr.bf16.mxu0 %v4295_v15 }
  0x58   : >> { %3384 = vmatpush3.bf16.msra.mxu0 %v3844_v18 }
  0xdb   : >> { %v543_v4 = vpop.xlane.xlu0 %542 }
  0xdc   : >> { %v548_v5 = vmul.f32 0.015625, %v543_v4 }
  0xde   : >> { %v550_v6 = vsub.f32 %v536_v0, %v548_v5 }
  0xdf   : >> { %v546_v7 = vpop.xlane.xlu0 %545 }
  0xe0   : >> { %v549_v8 = vmul.f32 0.015625, %v546_v7  ;;  %v552_v9 = vmul.f32 %v550_v6, %v550_v6 }
  0xe2   : >> { %v551_v10 = vsub.f32 %v537_v1, %v549_v8  ;;  %v554_v11 = vsel %vm540_vm0, %v552_v9, 0.0 }
  0xe3   : >> { %555 = vadd.xlane.f32.xlu1 %v554_v11 }
  0xe4   : >> { %v553_v12 = vmul.f32 %v551_v10, %v551_v10 }
  0xe6   : >> { %v557_v13 = vsel %vm540_vm0, %v553_v12, 0.0 }
  0xe7   : >> { %558 = vadd.xlane.f32.xlu1 %v557_v13 }
 0x170   : >> { %v556_v19 = vpop.xlane.xlu1 %555 }
 0x171   : >> { %v560_v20 = vmul.f32 0.015625, %v556_v19 }
 0x173   : >> { %v562_v21 = vadd.f32 1e-05, %v560_v20 }
 0x174   : >> { %v559_v22 = vpop.xlane.xlu1 %558 }
 0x175   : >> { %3845 = vrsqrt.f32 %v562_v21  ;;  %v561_v23 = vmul.f32 0.015625, %v559_v22 }
 0x177   : >> { %v563_v24 = vadd.f32 1e-05, %v561_v23 }
 0x179   : >> { %3847 = vrsqrt.f32 %v563_v24 }
 0x17f   : >> { %v3846_v25 = vpop.eup %3845 }
 0x180   : >> { %v566_v26 = vmul.f32 %v3846_v25, %v550_v6 }
 0x182   : >> { %v574_v30 = vmul.f32 %v3228_v27, %v566_v26 }
 0x183   : >> { %v3848_v28 = vpop.eup %3847 }
 0x184   : >> { %v567_v29 = vmul.f32 %v3848_v28, %v551_v10  ;;  %v582_v33 = vadd.f32 %v3229_v31, %v574_v30 }
 0x186   : >> { %v575_v32 = vmul.f32 %v3228_v27, %v567_v29 }
 0x188   : >> { %v583_v34 = vadd.f32 %v3229_v31, %v575_v32 }
 0x18a   : >> { %v584_v35 = vpack.c.bf16 %v583_v34, %v582_v33 }
 0x18c   : >> { %589 = vst.msk [vmem:[%s588_s30] sm:$0xff] %vm540_vm0, %v584_v35  ;;  %3386 = vmatmul.mubr.msk.bf16.vlgmr.msra.gmra.mrb[0].mxu0 %vm540_vm0, %v584_v35  ;;  %s1231_s30 = scalar_lea.vmem [#allocation4], %s4555_s15 }
 0x25f   : >> { %v666_v37 = vpop.f32.mrb[0].mxu0 }
 0x260   : >> { %v3387_v38 = vpop.f32.mrb[1].mxu0  ;;  %v667_v40 = vadd.f32 %v3231_v36, %v666_v37 }
 0x261   : >> { %v669_v39 = vpop.f32.mrb[2].mxu0 }
 0x262   : >> { %v670_v41 = vadd.f32 %v3231_v36, %v669_v39  ;;  %v3388_v42 = vpop.f32.mrb[3].mxu0 }
 0x264   : >> { %v673_v43 = vpack.c.bf16 %v670_v41, %v667_v40 }
 0x266   : >> { %677 = vrot.lane.b32.xlu1 %v673_v43, %s4297_s12  ;;  %675 = vrot.lane.b32.xlu0 %v673_v43, %s4298_s14  ;;  %v685_v57 = vshrl.u32 %v673_v43, 16 }
 0x26a   : >> { %679 = vrot.lane.b32.xlu1 %v673_v43, %s4299_s27 }
 0x26e   : >> { %958 = vrot.lane.b32.xlu1 %v673_v43, %s4300_s26 }
 0x2d8   : >> { %v678_v51 = vpop.permute.xlu1 %677  ;;  %v676_v52 = vpop.permute.xlu0 %675 }
 0x2d9   : >> { %v683_v55 = vpack.i.b16 %v676_v52, %v673_v43  ;;  %v686_v56 = vshrl.u32 %v676_v52, 16  ;;  %962 = vrot.lane.b32.xlu1 %v678_v51, %s4300_s26  ;;  %960 = vrot.lane.b32.xlu0 %v676_v52, %s4300_s26  ;;  %v693_v0 = vshrl.u32 %v678_v51, 16 }
 0x2db   : >> { %v687_v60 = vpack.i.b16 %v686_v56, %v685_v57  ;;  %v703_v62 = vcombine.high %v683_v55, %v4563_v54  ;;  %v710_v2 = vrot.slane %v683_v55, %v4565_v58 }
 0x2dc   : >> { %v680_v61 = vpop.permute.xlu1 %679 }
 0x2dd   : >> { %v691_v63 = vpack.i.b16 %v680_v61, %v678_v51  ;;  %964 = vrot.lane.b32.xlu0 %v680_v61, %s4300_s26  ;;  %v694_v1 = vshrl.u32 %v680_v61, 16  ;;  %v769_v6 = vcombine.high %v687_v60, %v4563_v54  ;;  %v717_v8 = vrot.slane %v703_v62, %v4565_v58 }
 0x2de   : >> { %v776_v12 = vrot.slane %v687_v60, %v4565_v58 }
 0x2df   : >> { %v718_v4 = vcombine.high %v691_v63, %v4563_v54  ;;  %v725_v5 = vrot.slane %v691_v63, %v4565_v58  ;;  %v695_v7 = vpack.i.b16 %v694_v1, %v693_v0  ;;  %v783_v19 = vrot.slane %v769_v6, %v4565_v58 }
 0x2e0   : >> { %v959_v6 = vpop.permute.xlu1 %958 }
 0x2e1   : >> { %v732_v9 = vrot.slane %v718_v4, %v4565_v58  ;;  %v733_v10 = vcombine.low %v710_v2, %v725_v5  ;;  %v734_v11 = vcombine.high %v710_v2, %v725_v5  ;;  %v784_v13 = vcombine.high %v695_v7, %v4563_v54 }
 0x2e2   : >> { %v791_v14 = vrot.slane %v695_v7, %v4565_v58 }
 0x2e3   : >> { %v741_v15 = vrot.slane %v733_v10, %v4569_v3  ;;  %v748_v16 = vrot.slane %v734_v11, %v4569_v3  ;;  %v749_v17 = vcombine.low %v717_v8, %v732_v9  ;;  %v750_v18 = vcombine.high %v717_v8, %v732_v9 }
 0x2e4   : >> { %v798_v20 = vrot.slane %v784_v13, %v4565_v58  ;;  %v799_v21 = vcombine.low %v776_v12, %v791_v14  ;;  %v800_v22 = vcombine.high %v776_v12, %v791_v14  ;;  %v970_v10 = vshrl.u32 %v959_v6, 16 }
 0x2e5   : >> { %v757_v23 = vrot.slane %v749_v17, %v4569_v3  ;;  %v764_v24 = vrot.slane %v750_v18, %v4569_v3  ;;  %v835_v25 = vcombine.low %v741_v15, %v748_v16  ;;  %v3237_v26 = vcombine.high %v741_v15, %v748_v16 }
 0x2e6   : >> { %v807_v27 = vrot.slane %v799_v21, %v4569_v3  ;;  %v814_v28 = vrot.slane %v800_v22, %v4569_v3  ;;  %v815_v29 = vcombine.low %v783_v19, %v798_v20  ;;  %v816_v30 = vcombine.high %v783_v19, %v798_v20 }
 0x2e7   : >> { %v842_v31 = vrot.slane %v835_v25, %v4565_v58  ;;  %v850_v32 = vrot.slane %v3237_v26, %v4565_v58  ;;  %v851_v33 = vcombine.low %v757_v23, %v764_v24  ;;  %v3238_v34 = vcombine.high %v757_v23, %v764_v24 }
 0x2e8   : >> { %v823_v35 = vrot.slane %v815_v29, %v4569_v3  ;;  %v830_v36 = vrot.slane %v816_v30, %v4569_v3  ;;  %v885_v37 = vcombine.low %v807_v27, %v814_v28  ;;  %v3239_v38 = vcombine.high %v807_v27, %v814_v28 }
 0x2e9   : >> { %v858_v39 = vrot.slane %v851_v33, %v4565_v58  ;;  %v866_v40 = vrot.slane %v3238_v34, %v4565_v58  ;;  %v867_v41 = vcombine.low %v842_v31, %v850_v32 }
 0x2ea   : >> { %v892_v42 = vrot.slane %v885_v37, %v4565_v58  ;;  %v900_v43 = vrot.slane %v3239_v38, %v4565_v58  ;;  %v901_v44 = vcombine.low %v823_v35, %v830_v36  ;;  %v3240_v45 = vcombine.high %v823_v35, %v830_v36 }
 0x2eb   : >> { %v875_v46 = vcombine.low %v858_v39, %v866_v40  ;;  %v874_v50 = vrot.slane %v867_v41, %v4569_v3 }
 0x2ec   : >> { %v908_v47 = vrot.slane %v901_v44, %v4565_v58  ;;  %v916_v48 = vrot.slane %v3240_v45, %v4565_v58  ;;  %v917_v49 = vcombine.low %v892_v42, %v900_v43 }
 0x2ed   : >> { %v882_v51 = vrot.slane %v875_v46, %v4569_v3 }
 0x2ee   : >> { %v925_v52 = vcombine.low %v908_v47, %v916_v48  ;;  %v924_v56 = vrot.slane %v917_v49, %v4569_v3 }
 0x2ef   : >> { %v883_v53 = vcombine.low %v874_v50, %v882_v51  ;;  %v884_v55 = vcombine.high %v874_v50, %v882_v51 }
 0x2f0   : >> { %v932_v57 = vrot.slane %v925_v52, %v4569_v3 }
 0x2f1   : >> { %v939_v61 = vshrl.u32 %v883_v53, 16  ;;  %v947_v62 = vshrl.u32 %v884_v55, 16 }
 0x2f2   : >> { %v933_v59 = vcombine.low %v924_v56, %v932_v57  ;;  %v934_v60 = vcombine.high %v924_v56, %v932_v57 }
 0x2f4   : >> { %v937_v63 = vpack.i.b16 %v933_v59, %v883_v53  ;;  %v940_v0 = vshrl.u32 %v933_v59, 16  ;;  %v945_v1 = vpack.i.b16 %v934_v60, %v884_v55  ;;  %v948_v2 = vshrl.u32 %v934_v60, 16 }
 0x2f6   : >> { %v941_v4 = vpack.i.b16 %v940_v0, %v939_v61  ;;  %v949_v5 = vpack.i.b16 %v948_v2, %v947_v62  ;;  %954 = vst.msk [vmem:[%s952_s18] sm:$0xff] %vm953_vm2, %v937_v63  ;;  %956 = vst.msk [vmem:[%s952_s18 + $0x20] sm:$0xff] %vm953_vm2, %v945_v1 }
 0x2f8   : >> { %955 = vst.msk [vmem:[%s952_s18 + $0x10] sm:$0xff] %vm953_vm2, %v941_v4  ;;  %957 = vst.msk [vmem:[%s952_s18 + $0x30] sm:$0xff] %vm953_vm2, %v949_v5 }
 0x34b   : >> { %v961_v7 = vpop.permute.xlu0 %960  ;;  %v963_v11 = vpop.permute.xlu1 %962 }
 0x34c   : >> { %v968_v8 = vpack.i.b16 %v961_v7, %v959_v6  ;;  %v971_v9 = vshrl.u32 %v961_v7, 16  ;;  %v978_v16 = vshrl.u32 %v963_v11, 16 }
 0x34e   : >> { %v972_v12 = vpack.i.b16 %v971_v9, %v970_v10  ;;  %v982_v14 = vcombine.high %v968_v8, %v4563_v54  ;;  %v989_v18 = vrot.slane %v968_v8, %v4565_v58 }
 0x34f   : >> { %v965_v13 = vpop.permute.xlu0 %964 }
 0x350   : >> { %v976_v15 = vpack.i.b16 %v965_v13, %v963_v11  ;;  %v979_v17 = vshrl.u32 %v965_v13, 16  ;;  %v1048_v21 = vcombine.high %v972_v12, %v4563_v54  ;;  %v996_v23 = vrot.slane %v982_v14, %v4565_v58 }
 0x351   : >> { %v1055_v27 = vrot.slane %v972_v12, %v4565_v58 }
 0x352   : >> { %v997_v19 = vcombine.high %v976_v15, %v4563_v54  ;;  %v1004_v20 = vrot.slane %v976_v15, %v4565_v58  ;;  %v980_v22 = vpack.i.b16 %v979_v17, %v978_v16  ;;  %v1062_v34 = vrot.slane %v1048_v21, %v4565_v58 }
 0x354   : >> { %v1011_v24 = vrot.slane %v997_v19, %v4565_v58  ;;  %v1012_v25 = vcombine.low %v989_v18, %v1004_v20  ;;  %v1013_v26 = vcombine.high %v989_v18, %v1004_v20  ;;  %v1063_v28 = vcombine.high %v980_v22, %v4563_v54 }
 0x355   : >> { %v1070_v29 = vrot.slane %v980_v22, %v4565_v58 }
 0x356   : >> { %v1020_v30 = vrot.slane %v1012_v25, %v4569_v3  ;;  %v1027_v31 = vrot.slane %v1013_v26, %v4569_v3  ;;  %v1028_v32 = vcombine.low %v996_v23, %v1011_v24  ;;  %v1029_v33 = vcombine.high %v996_v23, %v1011_v24 }
 0x357   : >> { %v1077_v35 = vrot.slane %v1063_v28, %v4565_v58  ;;  %v1078_v36 = vcombine.low %v1055_v27, %v1070_v29  ;;  %v1079_v37 = vcombine.high %v1055_v27, %v1070_v29 }
 0x358   : >> { %v1036_v38 = vrot.slane %v1028_v32, %v4569_v3  ;;  %v1043_v39 = vrot.slane %v1029_v33, %v4569_v3  ;;  %v1114_v40 = vcombine.low %v1020_v30, %v1027_v31  ;;  %v3242_v54 = vcombine.high %v1020_v30, %v1027_v31 }
 0x359   : >> { %v1086_v41 = vrot.slane %v1078_v36, %v4569_v3  ;;  %v1093_v42 = vrot.slane %v1079_v37, %v4569_v3  ;;  %v1094_v43 = vcombine.low %v1062_v34, %v1077_v35  ;;  %v1095_v44 = vcombine.high %v1062_v34, %v1077_v35 }
 0x35a   : >> { %v1121_v45 = vrot.slane %v1114_v40, %v4565_v58  ;;  %v1129_v46 = vrot.slane %v3242_v54, %v4565_v58  ;;  %v1130_v47 = vcombine.low %v1036_v38, %v1043_v39  ;;  %v3243_v48 = vcombine.high %v1036_v38, %v1043_v39 }
 0x35b   : >> { %v1102_v49 = vrot.slane %v1094_v43, %v4569_v3  ;;  %v1109_v50 = vrot.slane %v1095_v44, %v4569_v3  ;;  %v1164_v51 = vcombine.low %v1086_v41, %v1093_v42  ;;  %v3244_v52 = vcombine.high %v1086_v41, %v1093_v42 }
 0x35c   : >> { %v1137_v53 = vrot.slane %v1130_v47, %v4565_v58  ;;  %v1145_v55 = vrot.slane %v3243_v48, %v4565_v58  ;;  %v1146_v56 = vcombine.low %v1121_v45, %v1129_v46 }
 0x35d   : >> { %v1171_v57 = vrot.slane %v1164_v51, %v4565_v58  ;;  %v1179_v59 = vrot.slane %v3244_v52, %v4565_v58  ;;  %v1180_v60 = vcombine.low %v1102_v49, %v1109_v50  ;;  %v3245_v61 = vcombine.high %v1102_v49, %v1109_v50 }
 0x35e   : >> { %v1154_v62 = vcombine.low %v1137_v53, %v1145_v55  ;;  %v1153_v2 = vrot.slane %v1146_v56, %v4569_v3 }
 0x35f   : >> { %v1187_v63 = vrot.slane %v1180_v60, %v4565_v58  ;;  %v1195_v0 = vrot.slane %v3245_v61, %v4565_v58  ;;  %v1196_v1 = vcombine.low %v1171_v57, %v1179_v59 }
 0x360   : >> { %v1161_v4 = vrot.slane %v1154_v62, %v4569_v3 }
 0x361   : >> { %v1204_v5 = vcombine.low %v1187_v63, %v1195_v0  ;;  %v1203_v8 = vrot.slane %v1196_v1, %v4569_v3 }
 0x362   : >> { %v1162_v6 = vcombine.low %v1153_v2, %v1161_v4  ;;  %v1163_v7 = vcombine.high %v1153_v2, %v1161_v4 }
 0x363   : >> { %v1211_v9 = vrot.slane %v1204_v5, %v4569_v3 }
 0x364   : >> { %v1218_v12 = vshrl.u32 %v1162_v6, 16  ;;  %v1226_v13 = vshrl.u32 %v1163_v7, 16 }
 0x365   : >> { %v1212_v10 = vcombine.low %v1203_v8, %v1211_v9  ;;  %v1213_v11 = vcombine.high %v1203_v8, %v1211_v9  ;;  %532 = sbr.rel (!%p530_p10) target bundleno = 74 (0x4a), region = 146 }
 0x367   : >> { %v1216_v14 = vpack.i.b16 %v1212_v10, %v1162_v6  ;;  %v1219_v15 = vshrl.u32 %v1212_v10, 16  ;;  %v1224_v58 = vpack.i.b16 %v1213_v11, %v1163_v7  ;;  %v1227_v16 = vshrl.u32 %v1213_v11, 16 }
 0x369   : >> { %v1220_v17 = vpack.i.b16 %v1219_v15, %v1218_v12  ;;  %v1228_v18 = vpack.i.b16 %v1227_v16, %v1226_v13  ;;  %1232 = vst.msk [vmem:[%s1231_s30] sm:$0xff] %vm953_vm2, %v1216_v14  ;;  %1234 = vst.msk [vmem:[%s1231_s30 + $0x20] sm:$0xff] %vm953_vm2, %v1224_v58 }
 0x36b   : >> { %1233 = vst.msk [vmem:[%s1231_s30 + $0x10] sm:$0xff] %vm953_vm2, %v1220_v17  ;;  %1235 = vst.msk [vmem:[%s1231_s30 + $0x30] sm:$0xff] %vm953_vm2, %v1228_v18 }
 0x36c PF: > { %v3849_v3 = vld [vmem:[%s5392_s3] sm:$0xff]   ;;  %v5418_v19 = vmov 0.0   ;;  %v3850_v20 = vld [vmem:[%s5392_s3 + $0x8] sm:$0xff]   ;;  %vm4305_vm3 = vmmov 0   ;;  %s3247_s23 = sshll.u32 %s4170_s21, 4  ;;  %v3851_v23 = vld [vmem:[%s5392_s3 + $0x10] sm:$0xff]   ;;  %v1363_v36 = vlaneseq }
 0x36d   : > { %3389 = vmatprep.subr.bf16.mxu0 %v5418_v19  ;;  %3397 = vmatprep.mubr.msk.bf16.mxu0 %vm4305_vm3, %v5418_v19  ;;  %s1237_s14 = scalar_lea.vmem %s4517_s28, %s3247_s23  ;;  %s1240_s27 = sshra.s32 %s3247_s23, 4  ;;  %v3852_v24 = vld [vmem:[%s5392_s3 + $0x18] sm:$0xff]   ;;  %vm1284_vm4 = vcmask 523264   ;;  %v3249_v26 = vld [vmem:[%s5393_s4] ss:$0 sm:$0xff]  ;;  %v4311_v41 = vmov 0  }
 0x36e   : > { %3390 = vmatpush3.bf16.msra.mxu0 %v3849_v3  ;;  %v4658_v21 = vld [vmem:[%s1237_s14] sm:$0xff]  ;;  %v4660_v22 = vld [vmem:[%s1237_s14 + $0x8] sm:$0xff]  ;;  %s3248_s30 = sshll.u32 %s1240_s27, 3  ;;  %s4306_s23 = smov 80   ;;  %v4309_v34 = vmov 1983009808   ;;  %v1354_v42 = vpack.i.b16 %v4311_v41, %v4311_v41 }
 0x36f   : > { %3391 = vmatprep.subr.bf16.mxu0 %v5418_v19  ;;  %s1243_s28 = scalar_lea.vmem [#allocation2], %s3248_s30  ;;  %s4307_s14 = smov 112   ;;  %v1361_v35 = vunpack.c.l.s4 %v4309_v34  ;;  %v1364_v38 = vshrl.u32 %v1363_v36, 7  ;;  %v4310_v39 = vmov 1934713408  }
 0x370   : > { %v1244_v25 = vld [vmem:[%s1243_s28] sm:$0xff]  ;;  %s4308_s27 = smov 96   ;;  %v1392_v40 = vunpack.c.l.s4 %v4310_v39  ;;  %s4774_s26 = smov 0  }
 0x371   : > { %v1362_v37 = vunpack.c.0.s8 %v1361_v35 }
 0x372   : > { %3392 = vmatpush3.bf16.msra.mxu0 %v3850_v20  ;;  %v1393_v48 = vunpack.c.0.s8 %v1392_v40 }
 0x373   : > { %3393 = vmatprep.subr.bf16.mxu0 %v5418_v19  ;;  %v4674_v47 = vsub.s32 %v1362_v37, %v1364_v38 }
 0x374   : > { %v4677_v57 = vsub.s32 %v1393_v48, %v1364_v38 }
 0x376   : > { %3394 = vmatpush3.bf16.msra.mxu0 %v3851_v23 }
 0x377   : > { %3395 = vmatprep.subr.bf16.mxu0 %v5418_v19 }
 0x37a   : > { %3396 = vmatpush3.bf16.msra.mxu0 %v3852_v24 }
 0x37d   : > { %3398 = vmatmul.mubr.msk.bf16.vlgmr.msra.gmra.mrb[0].mxu0 %vm1284_vm4, %v1244_v25 }
 0x450   : > { %v1322_v27 = vpop.f32.mrb[0].mxu0 }
 0x451   : > { %v3399_v28 = vpop.f32.mrb[1].mxu0  ;;  %v1323_v30 = vadd.f32 %v3249_v26, %v1322_v27 }
 0x452   : > { %v1325_v29 = vpop.f32.mrb[2].mxu0 }
 0x453   : > { %v1326_v31 = vadd.f32 %v3249_v26, %v1325_v29  ;;  %v3400_v32 = vpop.f32.mrb[3].mxu0 }
 0x455   : > { %v1329_v33 = vpack.c.bf16 %v1326_v31, %v1323_v30 }
 0x457   : > { %1335 = vrot.lane.b32.xlu1 %v1329_v33, %s4306_s23  ;;  %1331 = vrot.lane.b32.xlu0 %v1329_v33, %s4307_s14  ;;  %v1341_v45 = vshrl.u32 %v1329_v33, 16 }
 0x45b   : > { %1333 = vrot.lane.b32.xlu0 %v1329_v33, %s4308_s27 }
 0x4c9   : > { %v1332_v54 = vpop.permute.xlu0 %1331  ;;  %v1336_v46 = vpop.permute.xlu1 %1335 }
 0x4ca   : > { %v1339_v43 = vpack.i.b16 %v1332_v54, %v1329_v33  ;;  %v1342_v44 = vshrl.u32 %v1332_v54, 16  ;;  %v1350_v53 = vshrl.u32 %v1336_v46, 16 }
 0x4cc   : > { %v1343_v49 = vpack.i.b16 %v1342_v44, %v1341_v45  ;;  %v1359_v51 = vcombine.high %v1339_v43, %v1354_v42  ;;  %v1366_v56 = vrot.slane %v1339_v43, %v4674_v47 }
 0x4cd   : > { %v1334_v50 = vpop.permute.xlu0 %1333 }
 0x4ce   : > { %v1347_v52 = vpack.i.b16 %v1336_v46, %v1334_v50  ;;  %v1349_v55 = vshrl.u32 %v1334_v50, 16  ;;  %v1425_v61 = vcombine.high %v1343_v49, %v1354_v42  ;;  %v1373_v63 = vrot.slane %v1359_v51, %v4674_v47 }
 0x4cf   : > { %v1432_v4 = vrot.slane %v1343_v49, %v4674_v47 }
 0x4d0   : > { %v1374_v59 = vcombine.high %v1347_v52, %v1354_v42  ;;  %v1381_v60 = vrot.slane %v1347_v52, %v4674_v47  ;;  %v1351_v62 = vpack.i.b16 %v1350_v53, %v1349_v55  ;;  %v1439_v11 = vrot.slane %v1425_v61, %v4674_v47 }
 0x4d2   : > { %v1388_v0 = vrot.slane %v1374_v59, %v4674_v47  ;;  %v1389_v1 = vcombine.low %v1366_v56, %v1381_v60  ;;  %v1390_v2 = vcombine.high %v1366_v56, %v1381_v60  ;;  %v1440_v5 = vcombine.high %v1351_v62, %v1354_v42 }
 0x4d3   : > { %v1447_v6 = vrot.slane %v1351_v62, %v4674_v47 }
 0x4d4   : > { %v1397_v7 = vrot.slane %v1389_v1, %v4677_v57  ;;  %v1404_v8 = vrot.slane %v1390_v2, %v4677_v57  ;;  %v1405_v9 = vcombine.low %v1373_v63, %v1388_v0  ;;  %v1406_v10 = vcombine.high %v1373_v63, %v1388_v0 }
 0x4d5   : > { %v1454_v12 = vrot.slane %v1440_v5, %v4674_v47  ;;  %v1455_v13 = vcombine.low %v1432_v4, %v1447_v6  ;;  %v1456_v14 = vcombine.high %v1432_v4, %v1447_v6  ;;  %v4726_v63 = vmov 0.0  }
 0x4d6   : > { %v1413_v15 = vrot.slane %v1405_v9, %v4677_v57  ;;  %v1420_v58 = vrot.slane %v1406_v10, %v4677_v57  ;;  %v1491_v16 = vcombine.low %v1397_v7, %v1404_v8  ;;  %v3255_v17 = vcombine.high %v1397_v7, %v1404_v8 }
 0x4d7   : > { %v1463_v18 = vrot.slane %v1455_v13, %v4677_v57  ;;  %v1470_v3 = vrot.slane %v1456_v14, %v4677_v57  ;;  %v1471_v20 = vcombine.low %v1439_v11, %v1454_v12  ;;  %v1472_v23 = vcombine.high %v1439_v11, %v1454_v12 }
 0x4d8   : > { %v1498_v24 = vrot.slane %v1491_v16, %v4674_v47  ;;  %v1506_v25 = vrot.slane %v3255_v17, %v4674_v47  ;;  %v1507_v26 = vcombine.low %v1413_v15, %v1420_v58  ;;  %v3256_v27 = vcombine.high %v1413_v15, %v1420_v58 }
 0x4d9   : > { %v1479_v28 = vrot.slane %v1471_v20, %v4677_v57  ;;  %v1486_v29 = vrot.slane %v1472_v23, %v4677_v57  ;;  %v1541_v30 = vcombine.low %v1463_v18, %v1470_v3  ;;  %v3257_v31 = vcombine.high %v1463_v18, %v1470_v3 }
 0x4da   : > { %v1514_v32 = vrot.slane %v1507_v26, %v4674_v47  ;;  %v1522_v33 = vrot.slane %v3256_v27, %v4674_v47  ;;  %v1523_v34 = vcombine.low %v1498_v24, %v1506_v25  ;;  %v4728_v0 = vmov 0.0  }
 0x4db   : > { %v1548_v35 = vrot.slane %v1541_v30, %v4674_v47  ;;  %v1556_v36 = vrot.slane %v3257_v31, %v4674_v47  ;;  %v1557_v37 = vcombine.low %v1479_v28, %v1486_v29  ;;  %v3258_v38 = vcombine.high %v1479_v28, %v1486_v29 }
 0x4dc   : > { %v1531_v39 = vcombine.low %v1514_v32, %v1522_v33  ;;  %v1530_v42 = vrot.slane %v1523_v34, %v4677_v57  ;;  %v4730_v1 = vmov 0.0   ;;  %v4732_v2 = vmov 0.0  }
 0x4dd   : > { %v1564_v40 = vrot.slane %v1557_v37, %v4674_v47  ;;  %v1572_v54 = vrot.slane %v3258_v38, %v4674_v47  ;;  %v1573_v41 = vcombine.low %v1548_v35, %v1556_v36  ;;  %v4734_v4 = vmov 0.0  }
 0x4de   : > { %v1538_v43 = vrot.slane %v1531_v39, %v4677_v57  ;;  %v4736_v5 = vmov 0.0   ;;  %v4738_v6 = vmov 0.0   ;;  %v4740_v7 = vmov 0.0  }
 0x4df   : > { %v1581_v44 = vcombine.low %v1564_v40, %v1572_v54  ;;  %v1580_v48 = vrot.slane %v1573_v41, %v4677_v57  ;;  %v4742_v8 = vmov 0.0   ;;  %v4744_v9 = vmov 0.0  }
 0x4e0   : > { %v4704_v45 = vcombine.low %v1530_v42, %v1538_v43  ;;  %v4706_v46 = vcombine.high %v1530_v42, %v1538_v43  ;;  %v4746_v10 = vmov 0.0   ;;  %v4748_v11 = vmov 0.0  }
 0x4e1   : > { %v1588_v49 = vrot.slane %v1581_v44, %v4677_v57  ;;  %v4750_v12 = vmov 0.0   ;;  %v4752_v13 = vmov 0.0   ;;  %v4754_v14 = vmov 0.0  }
 0x4e2   : > { %v1594_v52 = vshrl.u32 %v4704_v45, 16  ;;  %v1600_v53 = vshrl.u32 %v4706_v46, 16  ;;  %v4756_v15 = vmov 0.0   ;;  %v4758_v58 = vmov -inf  }
 0x4e3   : > { %v4710_v50 = vcombine.low %v1580_v48, %v1588_v49  ;;  %v4712_v51 = vcombine.high %v1580_v48, %v1588_v49  ;;  %v4760_v16 = vmov -inf   ;;  %v4762_v17 = vmov -inf  }
 0x4e4   : > { %v4764_v18 = vmov -inf   ;;  %v4766_v3 = vmov -inf   ;;  %v4768_v20 = vmov -inf   ;;  %v4770_v23 = vmov -inf  }
 0x4e5   : > { %v1595_v56 = vshrl.u32 %v4710_v50, 16  ;;  %v1601_v60 = vshrl.u32 %v4712_v51, 16  ;;  %v4772_v24 = vmov -inf  }
 0x4e7   : > { %v4722_v61 = vpack.i.b16 %v1595_v56, %v1594_v52  ;;  %v4724_v62 = vpack.i.b16 %v1601_v60, %v1600_v53 }
 0x4e8 LB: >> { %v4312_v25 = vmov 0.0   ;;  %s3259_s18 = sshll.u32 %s4290_s26, 4  ;;  %vm4313_vm5 = vmmov 0   ;;  %vm1648_vm6 = vcmask 130048   ;;  %v5437_v55 = vpack.i.b16 %v4710_v50, %v4704_v45  ;;  %s1608_s26 = sadd.s32 1, %s4290_s26   ;;  %s4290_s26 = sphi %s4774_s26, %s1608_s26   ;;  %v4286_v24 = vphi %v4772_v24, %v5479_v24   ;;  %v4282_v23 = vphi %v4770_v23, %v5478_v23   ;;  %v4278_v20 = vphi %v4768_v20, %v5477_v20   ;;  %v4274_v3 = vphi %v4766_v3, %v5476_v3   ;;  %v4270_v18 = vphi %v4764_v18, %v5475_v18   ;;  %v4266_v17 = vphi %v4762_v17, %v5474_v17   ;;  %v4262_v16 = vphi %v4760_v16, %v5473_v16   ;;  %v4258_v58 = vphi %v4758_v58, %v5472_v58   ;;  %v4254_v15 = vphi %v4756_v15, %v5471_v15   ;;  %v4250_v14 = vphi %v4754_v14, %v5470_v14   ;;  %v4246_v13 = vphi %v4752_v13, %v5469_v13   ;;  %v4242_v12 = vphi %v4750_v12, %v5468_v12   ;;  %v4238_v11 = vphi %v4748_v11, %v5467_v11   ;;  %v4234_v10 = vphi %v4746_v10, %v5466_v10   ;;  %v4230_v9 = vphi %v4744_v9, %v5465_v9   ;;  %v4226_v8 = vphi %v4742_v8, %v5464_v8   ;;  %v4222_v7 = vphi %v4740_v7, %v5463_v7   ;;  %v4218_v6 = vphi %v4738_v6, %v5462_v6   ;;  %v4214_v5 = vphi %v4736_v5, %v5461_v5   ;;  %v4210_v4 = vphi %v4734_v4, %v5460_v4   ;;  %v4206_v2 = vphi %v4732_v2, %v5459_v2   ;;  %v4202_v1 = vphi %v4730_v1, %v5458_v1   ;;  %v4198_v0 = vphi %v4728_v0, %v5457_v0   ;;  %v4194_v63 = vphi %v4726_v63, %v5456_v63  }
 0x4e9   : >> { %3401 = vmatprep.subr.bf16.mxu0 %v4312_v25  ;;  %3407 = vmatprep.subr.bf16.mxu1 %v4312_v25  ;;  %s4858_s30 = sshra.s32 %s3259_s18, 4  ;;  %v5438_v59 = vpack.i.b16 %v4712_v51, %v4706_v46  ;;  %p5044_p12 = scmp.ge.s32.totalorder %s1608_s26, 2  }
 0x4ea   : >> { %3403 = vmatprep.mubr.msk.bf16.mxu0 %vm4313_vm5, %v4312_v25  ;;  %3409 = vmatprep.mubr.msk.bf16.mxu1 %vm4313_vm5, %v4312_v25  ;;  %s3260_s16 = sshll.u32 %s4858_s30, 3  ;;  %s4314_s12 = smov (%p5044_p12), 16   ;;  %vm2468_vm7 = vcmask (%p5044_p12), 261120   ;;  %vm2471_vm8 = vcmask (%p5044_p12), 392192  }
 0x4eb   : >> { %s1637_s29 = scalar_lea.vmem [#allocation3], %s3260_s16  ;;  %s4904_s28 = scalar_lea.vmem [#allocation4], %s3260_s16 }
 0x4ec   : >> { %v1638_v26 = vld [vmem:[%s1637_s29] sm:$0xff]  ;;  %v1639_v27 = vld [vmem:[%s1637_s29 + $0x10] sm:$0xff]  ;;  %s4315_s23 = smov (%p5044_p12), 48   ;;  %s4316_s14 = smov (%p5044_p12), 32  }
 0x4ed   : >> { %v1653_v28 = vsel %vm1648_vm6, %v1638_v26, 0  ;;  %v1700_v29 = vsel %vm1648_vm6, %v1639_v27, 0  ;;  %v1640_v30 = vld [vmem:[%s1637_s29 + $0x20] sm:$0xff]  ;;  %v1641_v31 = vld [vmem:[%s1637_s29 + $0x30] sm:$0xff]  ;;  %s5481_s26 = sld [smem:[#allocation18_spill]] (%p5044_p12)  ;;  %s3312_s16 = sshll.u32 (%p5044_p12), %s4170_s21, 1 }
 0x4ee   : >> { %3402 = vmatpush3.bf16.xpose.msra.mxu0 %v1653_v28  ;;  %3408 = vmatpush3.bf16.xpose.msra.mxu1 %v1700_v29  ;;  %v1747_v32 = vsel %vm1648_vm6, %v1640_v30, 0  ;;  %v1794_v33 = vsel %vm1648_vm6, %v1641_v31, 0  ;;  %s3313_s29 = sshll.u32 (%p5044_p12), %s4174_s22, 2  ;;  %s3030_s22 = sshll.u32 (%p5044_p12), %s4519_s24, 4  ;;  %s5328_s22 = int_to_ptr.vmem [resolvable:$true] %s3030_s22 }
 0x4ef   : >> { %3413 = vmatprep.subr.bf16.mxu0 %v4312_v25  ;;  %3419 = vmatprep.subr.bf16.mxu1 %v4312_v25  ;;  %s5483_s18 = sld [smem:[#allocation20_spill]] (%p5044_p12)  ;;  %s3984_s15 = scalar_lea.vmem (%p5044_p12), %s5328_s22, 256 }
 0x4f0   : > { %p3985_p0 = scmp.ne.s32.totalorder (%p5044_p12), %s5328_s22, %s3984_s15  ;;  %p5486_p2 = scmp.ne.s32.totalorder (%p5044_p12), %s5427_s17, 0 }
 0x4f2   : > { %p3986_p5 = pnand (%p5044_p12), %p3985_p0, %p5486_p2 }
 0x4f4   : > { %p3987_p6 = pneg (%p5044_p12), %p3986_p5 }
 0x4f5   : >> { %3404 = vmatmul.mubr.msk.bf16.vlgmr.msra.gmra.mrb[0].mxu0 %vm1648_vm6, %v5437_v55  ;;  %3410 = vmatmul.mubr.msk.bf16.vlgmr.msra.gmra.mrb[0].mxu1 %vm1648_vm6, %v4722_v61  ;;  %s5484_s30 = smov (%p5044_p12), %s5483_s18 }
 0x4f6   : >> { %3414 = vmatpush3.bf16.xpose.msra.mxu0 %v1747_v32  ;;  %3420 = vmatpush3.bf16.xpose.msra.mxu1 %v1794_v33  ;;  %v1644_v32 = vld [vmem:[%s4904_s28] sm:$0xff]  ;;  %v1645_v33 = vld [vmem:[%s4904_s28 + $0x10] sm:$0xff] }
 0x4f7   : >> { %3415 = vmatprep.mubr.msk.bf16.mxu0 %vm4313_vm5, %v4312_v25  ;;  %3421 = vmatprep.mubr.msk.bf16.mxu1 %vm4313_vm5, %v4312_v25 }
 0x4f8   : >> { %3425 = vmatprep.subr.bf16.mxu0 %v4312_v25  ;;  %3431 = vmatprep.subr.bf16.mxu1 %v4312_v25 }
 0x4fd   : >> { %3416 = vmatmul.mubr.msk.bf16.vlgmr.msra.gmra.mrb[4].mxu0 %vm1648_vm6, %v5438_v59  ;;  %3422 = vmatmul.mubr.msk.bf16.vlgmr.msra.gmra.mrb[4].mxu1 %vm1648_vm6, %v4724_v62 }
 0x4fe   : >> { %3427 = vmatprep.mubr.msk.bf16.mxu0 %vm4313_vm5, %v4312_v25  ;;  %3433 = vmatprep.mubr.msk.bf16.mxu1 %vm4313_vm5, %v4312_v25 }
 0x4ff   : >> { %3426 = vmatpush3.bf16.msra.mxu0 %v1644_v32  ;;  %3432 = vmatpush3.bf16.msra.mxu1 %v1645_v33 }
 0x500   : >> { %3437 = vmatprep.subr.bf16.mxu0 %v4312_v25  ;;  %3443 = vmatprep.subr.bf16.mxu1 %v4312_v25 }
 0x5c8   : >> { %v1689_v34 = vpop.f32.mrb[0].mxu0  ;;  %v1736_v35 = vpop.f32.mrb[0].mxu1 }
 0x5c9   : >> { %v3405_v36 = vpop.f32.mrb[1].mxu0  ;;  %v3411_v37 = vpop.f32.mrb[1].mxu1  ;;  %v1843_v38 = vsel %vm1648_vm6, %v1736_v35, -inf  ;;  %v1837_v39 = vsel %vm1648_vm6, %v1689_v34, -inf }
 0x5ca   : >> { %1844 = vmax.xlane.f32.xlu1 %v1843_v38  ;;  %v1739_v40 = vpop.f32.mrb[2].mxu1  ;;  %1838 = vmax.xlane.f32.xlu0 %v1837_v39  ;;  %v1692_v54 = vpop.f32.mrb[2].mxu0 }
 0x5cb   : >> { %v3406_v41 = vpop.f32.mrb[3].mxu0  ;;  %v3412_v42 = vpop.f32.mrb[3].mxu1  ;;  %v1846_v43 = vsel %vm1648_vm6, %v1739_v40, -inf  ;;  %v1840_v44 = vsel %vm1648_vm6, %v1692_v54, -inf }
 0x5ce   : >> { %1847 = vmax.xlane.f32.xlu1 %v1846_v43  ;;  %1841 = vmax.xlane.f32.xlu0 %v1840_v44 }
 0x5d0   : >> { %v1783_v48 = vpop.f32.mrb[4].mxu0  ;;  %v4895_v49 = vpop.f32.mrb[4].mxu1 }
 0x5d1   : >> { %v3417_v52 = vpop.f32.mrb[5].mxu0  ;;  %v1849_v53 = vsel %vm1648_vm6, %v1783_v48, -inf  ;;  %v3423_v56 = vpop.f32.mrb[5].mxu1  ;;  %v1855_v30 = vsel %vm1648_vm6, %v4895_v49, -inf }
 0x5d2   : >> { %1850 = vmax.xlane.f32.xlu0 %v1849_v53  ;;  %v1786_v60 = vpop.f32.mrb[6].mxu0  ;;  %v1833_v26 = vpop.f32.mrb[6].mxu1 }
 0x5d3   : >> { %v3418_v27 = vpop.f32.mrb[7].mxu0  ;;  %v1852_v28 = vsel %vm1648_vm6, %v1786_v60, -inf  ;;  %v3424_v29 = vpop.f32.mrb[7].mxu1  ;;  %v1858_v31 = vsel %vm1648_vm6, %v1833_v26, -inf }
 0x5d4   : >> { %1853 = vmax.xlane.f32.xlu1 %v1852_v28 }
 0x5d6   : >> { %1856 = vmax.xlane.f32.xlu0 %v1855_v30 }
 0x5d8   : >> { %1859 = vmax.xlane.f32.xlu1 %v1858_v31 }
 0x657   : >> { %v1845_v36 = vpop.xlane.xlu1 %1844  ;;  %v1839_v37 = vpop.xlane.xlu0 %1838 }
 0x658   : >> { %v4911_v38 = vmax.f32 %v4278_v20, %v1845_v36   ;;  %v4914_v39 = vmax.f32 %v4286_v24, %v1839_v37  }
 0x65a   : >> { %v1871_v41 = vsub.f32 %v4278_v20, %v4911_v38  ;;  %v1895_v42 = vsub.f32 %v1736_v35, %v4911_v38  ;;  %v1869_v43 = vsub.f32 %v4286_v24, %v4914_v39  ;;  %v1893_v44 = vsub.f32 %v1689_v34, %v4914_v39 }
 0x65b   : >> { %v1848_v52 = vpop.xlane.xlu1 %1847  ;;  %v1842_v53 = vpop.xlane.xlu0 %1841 }
 0x65c   : >> { %v4923_v56 = vmax.f32 %v4274_v3, %v1848_v52   ;;  %v1901_v27 = vmul.f32 1.442695, %v1893_v44  ;;  %v4926_v28 = vmax.f32 %v4282_v23, %v1842_v53   ;;  %v1905_v29 = vmul.f32 1.442695, %v1895_v42 }
 0x65e   : >> { %v1872_v30 = vsub.f32 %v4274_v3, %v4923_v56  ;;  %v1896_v35 = vsub.f32 %v1739_v40, %v4923_v56  ;;  %v1870_v31 = vsub.f32 %v4282_v23, %v4926_v28  ;;  %v1894_v34 = vsub.f32 %v1692_v54, %v4926_v28 }
 0x65f   : >> { %v1851_v32 = vpop.xlane.xlu0 %1850  ;;  %3853 = vpow2.f32 %v1901_v27 }
 0x660   : >> { %v1907_v33 = vmul.f32 1.442695, %v1896_v35  ;;  %v4935_v36 = vmax.f32 %v4270_v18, %v1851_v32   ;;  %v1903_v37 = vmul.f32 1.442695, %v1894_v34  ;;  %3855 = vpow2.f32 %v1905_v29 }
 0x661   : >> { %v1854_v44 = vpop.xlane.xlu1 %1853 }
 0x662   : >> { %v1873_v42 = vsub.f32 %v4270_v18, %v4935_v36  ;;  %v1897_v52 = vsub.f32 %v1783_v48, %v4935_v36  ;;  %v4941_v40 = vmax.f32 %v4266_v17, %v1854_v44   ;;  %3857 = vpow2.f32 %v1907_v33 }
 0x663   : >> { %v1857_v53 = vpop.xlane.xlu0 %1856  ;;  %3859 = vpow2.f32 %v1903_v37 }
 0x664   : >> { %v1909_v54 = vmul.f32 1.442695, %v1897_v52  ;;  %v1874_v35 = vsub.f32 %v4266_v17, %v4941_v40  ;;  %v1898_v27 = vsub.f32 %v1786_v60, %v4941_v40  ;;  %v4947_v34 = vmax.f32 %v4262_v16, %v1857_v53  }
 0x665   : >> { %v1860_v29 = vpop.xlane.xlu1 %1859  ;;  %v1885_v24 = vmul.f32 1.442695, %v1873_v42 }
 0x666   : >> { %v4950_v32 = vmax.f32 %v4258_v58, %v1860_v29   ;;  %3861 = vpow2.f32 %v1909_v54  ;;  %v1911_v48 = vmul.f32 1.442695, %v1898_v27  ;;  %v1875_v33 = vsub.f32 %v4262_v16, %v4947_v34 }
 0x667   : >> { %v1899_v44 = vsub.f32 %v4895_v49, %v4947_v34  ;;  %v1647_v49 = vld [vmem:[%s4904_s28 + $0x30] sm:$0xff]  ;;  %v1887_v20 = vmul.f32 1.442695, %v1874_v35 }
 0x668   : >> { %v1876_v37 = vsub.f32 %v4258_v58, %v4950_v32  ;;  %v1900_v60 = vsub.f32 %v1833_v26, %v4950_v32  ;;  %3863 = vpow2.f32 %v1911_v48  ;;  %v1646_v48 = vld [vmem:[%s4904_s28 + $0x20] sm:$0xff] }
 0x669   : >> { %v1913_v52 = vmul.f32 1.442695, %v1899_v44  ;;  %v3854_v29 = vpop.eup %3853 }
 0x66a   : >> { %v1915_v53 = vmul.f32 1.442695, %v1900_v60  ;;  %v3856_v55 = vpop.eup %3855  ;;  %v1925_v54 = vsel %vm1648_vm6, %v3854_v29, 0.0  ;;  %v1891_v23 = vmul.f32 1.442695, %v1876_v37 }
 0x66b   : >> { %3865 = vpow2.f32 %v1913_v52  ;;  %1926 = vadd.xlane.f32.xlu0 %v1925_v54  ;;  %v1931_v58 = vsel %vm1648_vm6, %v3856_v55, 0.0 }
 0x66c   : >> { %v3858_v27 = vpop.eup %3857  ;;  %3867 = vpow2.f32 %v1915_v53 }
 0x66d   : >> { %v1958_v16 = vpack.c.bf16 %v3858_v27, %v3856_v55  ;;  %v3860_v59 = vpop.eup %3859  ;;  %v1934_v53 = vsel %vm1648_vm6, %v3858_v27, 0.0 }
 0x66e   : >> { %v1928_v19 = vsel %vm1648_vm6, %v3860_v59, 0.0  ;;  %v1957_v26 = vpack.c.bf16 %v3860_v59, %v3854_v29 }
 0x66f   : >> { %3434 = vmatmul.mubr.msk.bf16.vlgmr.msra.gmra.mrb[8].mxu1 %vm1648_vm6, %v1958_v16  ;;  %1929 = vadd.xlane.f32.xlu1 %v1928_v19 }
 0x670   : >> { %v3862_v44 = vpop.eup %3861  ;;  %1932 = vadd.xlane.f32.xlu0 %v1931_v58  ;;  %3428 = vmatmul.mubr.msk.bf16.vlgmr.msra.gmra.mrb[8].mxu0 %vm1648_vm6, %v1957_v26  ;;  %v1879_v58 = vmul.f32 1.442695, %v1870_v31  ;;  %v1883_v26 = vmul.f32 1.442695, %v1872_v30 }
 0x671   : >> { %3444 = vmatpush3.bf16.msra.mxu1 %v1647_v49  ;;  %v1937_v60 = vsel %vm1648_vm6, %v3862_v44, 0.0  ;;  %3438 = vmatpush3.bf16.msra.mxu0 %v1646_v48  ;;  %v1881_v49 = vmul.f32 1.442695, %v1871_v41  ;;  %v1889_v41 = vmul.f32 1.442695, %v1875_v33 }
 0x672   : >> { %v3864_v52 = vpop.eup %3863  ;;  %3439 = vmatprep.mubr.msk.bf16.mxu0 %vm4313_vm5, %v4312_v25  ;;  %3445 = vmatprep.mubr.msk.bf16.mxu1 %vm4313_vm5, %v4312_v25  ;;  %v1877_v25 = vmul.f32 1.442695, %v1869_v43 }
 0x673   : >> { %v1959_v55 = vpack.c.bf16 %v3864_v52, %v3862_v44  ;;  %1935 = vadd.xlane.f32.xlu1 %v1934_v53  ;;  %v1940_v54 = vsel %vm1648_vm6, %v3864_v52, 0.0 }
 0x674   : >> { %1938 = vadd.xlane.f32.xlu0 %v1937_v60  ;;  %3869 = vpow2.f32 %v1877_v25 }
 0x675   : >> { %v3866_v19 = vpop.eup %3865  ;;  %3871 = vpow2.f32 %v1881_v49 }
 0x676   : >> { %v1943_v59 = vsel %vm1648_vm6, %v3866_v19, 0.0  ;;  %v3868_v29 = vpop.eup %3867  ;;  %3873 = vpow2.f32 %v1879_v58 }
 0x677   : >> { %1941 = vadd.xlane.f32.xlu1 %v1940_v54  ;;  %v1960_v16 = vpack.c.bf16 %v3868_v29, %v3866_v19  ;;  %v1946_v27 = vsel %vm1648_vm6, %v3868_v29, 0.0  ;;  %3875 = vpow2.f32 %v1883_v26 }
 0x678   : >> { %1944 = vadd.xlane.f32.xlu0 %v1943_v59  ;;  %3440 = vmatmul.mubr.msk.bf16.vlgmr.msra.gmra.mrb[12].mxu0 %vm1648_vm6, %v1959_v55  ;;  %3877 = vpow2.f32 %v1885_v24 }
 0x679   : >> { %3446 = vmatmul.mubr.msk.bf16.vlgmr.msra.gmra.mrb[12].mxu1 %vm1648_vm6, %v1960_v16  ;;  %3879 = vpow2.f32 %v1887_v20 }
 0x67a   : >> { %3881 = vpow2.f32 %v1889_v41 }
 0x67b   : >> { %1947 = vadd.xlane.f32.xlu1 %v1946_v27  ;;  %3883 = vpow2.f32 %v1891_v23 }
 0x67e   : >> { %v3870_v43 = vpop.eup %3869 }
 0x67f   : >> { %v3872_v31 = vpop.eup %3871  ;;  %v1917_v3 = vmul.f32 %v4254_v15, %v3870_v43 }
 0x680   : >> { %v3874_v30 = vpop.eup %3873  ;;  %v1919_v17 = vmul.f32 %v4246_v13, %v3872_v31 }
 0x681   : >> { %v3876_v18 = vpop.eup %3875  ;;  %v1918_v42 = vmul.f32 %v4250_v14, %v3874_v30 }
 0x682   : >> { %v3878_v35 = vpop.eup %3877  ;;  %v1920_v55 = vmul.f32 %v4242_v12, %v3876_v18 }
 0x683   : >> { %v3880_v53 = vpop.eup %3879  ;;  %v1921_v19 = vmul.f32 %v4238_v11, %v3878_v35 }
 0x684   : >> { %v3882_v59 = vpop.eup %3881  ;;  %v1922_v16 = vmul.f32 %v4234_v10, %v3880_v53 }
 0x685   : >> { %v1923_v25 = vmul.f32 %v4230_v9, %v3882_v59  ;;  %v3884_v49 = vpop.eup %3883 }
 0x6f8   : >> { %v1927_v48 = vpop.xlane.xlu0 %1926 }
 0x6f9   : >> { %v4996_v15 = vadd.f32 %v1927_v48, %v1917_v3   ;;  %v2140_v3 = vmul.f32 %v4210_v4, %v3876_v18 }
 0x6fb   : >> { %v5439_v44 = vmov %v4996_v15 }
 0x6fc   : >> { %v1930_v60 = vpop.xlane.xlu1 %1929  ;;  %3928 = vrcp.f32 (%p5044_p12), %v5439_v44 }
 0x6fd   : >> { %v1933_v33 = vpop.xlane.xlu0 %1932  ;;  %v5000_v14 = vadd.f32 %v1930_v60, %v1918_v42  }
 0x6fe   : >> { %v5002_v13 = vadd.f32 %v1933_v33, %v1919_v17  }
 0x6ff   : >> { %v5440_v52 = vmov %v5000_v14 }
 0x700   : >> { %v5441_v37 = vmov %v5002_v13  ;;  %v1936_v15 = vpop.xlane.xlu1 %1935  ;;  %v1924_v13 = vmul.f32 %v4226_v8, %v3884_v49  ;;  %3930 = vrcp.f32 (%p5044_p12), %v5440_v52 }
 0x701   : >> { %v1939_v29 = vpop.xlane.xlu0 %1938  ;;  %v5006_v12 = vadd.f32 %v1936_v15, %v1920_v55   ;;  %3932 = vrcp.f32 (%p5044_p12), %v5441_v37 }
 0x702   : >> { %v5008_v11 = vadd.f32 %v1939_v29, %v1921_v19   ;;  %v2143_v29 = vmul.f32 %v4198_v0, %v3882_v59 }
 0x703   : >> { %v5442_v54 = vmov %v5006_v12  ;;  %v2139_v12 = vmul.f32 %v4214_v5, %v3872_v31 }
 0x704   : >> { %v5443_v27 = vmov %v5008_v11  ;;  %v1942_v14 = vpop.xlane.xlu1 %1941  ;;  %v2137_v11 = vmul.f32 %v4222_v7, %v3870_v43  ;;  %v2141_v43 = vmul.f32 %v4206_v2, %v3878_v35  ;;  %3934 = vrcp.f32 (%p5044_p12), %v5442_v54 }
 0x705   : >> { %v1945_v58 = vpop.xlane.xlu0 %1944  ;;  %v5012_v10 = vadd.f32 %v1942_v14, %v1922_v16   ;;  %3936 = vrcp.f32 (%p5044_p12), %v5443_v27 }
 0x706   : >> { %v5014_v9 = vadd.f32 %v1945_v58, %v1923_v25   ;;  %v2144_v58 = vmul.f32 %v4194_v63, %v3884_v49  ;;  %v3929_v45 = vpop.eup (%p5044_p12), %3928 }
 0x707   : >> { %v5444_v26 = vmov %v5012_v10  ;;  %v2138_v10 = vmul.f32 %v4218_v6, %v3874_v30 }
 0x708   : >> { %v5445_v41 = vmov %v5014_v9  ;;  %v1948_v24 = vpop.xlane.xlu1 %1947  ;;  %3938 = vrcp.f32 (%p5044_p12), %v5444_v26 }
 0x709   : >> { %v5017_v8 = vadd.f32 %v1948_v24, %v1924_v13   ;;  %3940 = vrcp.f32 (%p5044_p12), %v5445_v41 }
 0x70a   : > { %v3931_v46 = vpop.eup (%p5044_p12), %3930 }
 0x70b   : >> { %v5446_v48 = vmov %v5017_v8  ;;  %v3933_v50 = vpop.eup (%p5044_p12), %3932 }
 0x70c   : > { %3942 = vrcp.f32 (%p5044_p12), %v5446_v48 }
 0x70e   : > { %v3935_v51 = vpop.eup (%p5044_p12), %3934 }
 0x70f   : > { %v3937_v62 = vpop.eup (%p5044_p12), %3936 }
 0x742   : >> { %v2042_v20 = vpop.f32.mrb[8].mxu1 }
 0x743   : >> { %v5021_v5 = vadd.f32 %v2139_v12, %v2042_v20   ;;  %v3435_v23 = vpop.f32.mrb[9].mxu1  ;;  %v1998_v17 = vpop.f32.mrb[8].mxu0  ;;  %v5468_v12 = vmov %v5442_v54  ;;  %v5477_v20 = vmov %v4911_v38  ;;  %v3900_v38 = vld [vmem:[#allocation5] sm:$0xff] (%p5044_p12)  }
 0x744   : >> { %v2045_v60 = vpop.f32.mrb[10].mxu1  ;;  %v5024_v7 = vadd.f32 %v2137_v11, %v1998_v17   ;;  %v3429_v9 = vpop.f32.mrb[9].mxu0  ;;  %v5467_v11 = vmov %v5443_v27  ;;  %v5474_v17 = vmov %v4941_v40  ;;  %v5478_v23 = vmov %v4926_v28 }
 0x745   : >> { %v5447_v42 = vmov %v5021_v5  ;;  %v5027_v4 = vadd.f32 %v2140_v3, %v2045_v60   ;;  %v3436_v8 = vpop.f32.mrb[11].mxu1  ;;  %v2001_v19 = vpop.f32.mrb[10].mxu0  ;;  %v5465_v9 = vmov %v5445_v41  ;;  %v5476_v3 = vmov %v4923_v56 }
 0x746   : >> { %v5448_v33 = vmov %v5024_v7  ;;  %v5029_v6 = vadd.f32 %v2138_v10, %v2001_v19   ;;  %v3430_v15 = vpop.f32.mrb[11].mxu0  ;;  %v2142_v7 = vmul.f32 %v4202_v1, %v3880_v53  ;;  %v5464_v8 = vmov %v5446_v48 }
 0x747   : >> { %v5449_v55 = vmov %v5027_v4  ;;  %v5466_v10 = vmov %v5444_v26  ;;  %v5471_v15 = vmov %v5439_v44  ;;  %v5480_v40 = vmov (%p5044_p12), 0.0  }
 0x748   : >> { %v5450_v31 = vmov %v5029_v6  ;;  %3449 = vmatprep.subr.bf16.mxu0 (%p5044_p12), %v5480_v40  ;;  %3457 = vmatprep.mubr.msk.bf16.mxu0 (%p5044_p12), %vm4305_vm3, %v5480_v40  ;;  %v2161_v61 = vmul.f32 (%p5044_p12), %v3929_v45, %v5448_v33  ;;  %v2164_v28 = vmul.f32 (%p5044_p12), %v3935_v51, %v5449_v55 }
 0x749   : > { %3461 = vmatprep.subr.bf16.mxu1 (%p5044_p12), %v5480_v40  ;;  %3469 = vmatprep.mubr.msk.bf16.mxu1 (%p5044_p12), %vm4305_vm3, %v5480_v40 }
 0x74a   : > { %3450 = vmatpush3.bf16.msra.mxu0 (%p5044_p12), %v3900_v38 }
 0x74b   : >> { %v2086_v5 = vpop.f32.mrb[12].mxu0  ;;  %3451 = vmatprep.subr.bf16.mxu0 (%p5044_p12), %v5480_v40 }
 0x74c   : >> { %v5033_v2 = vadd.f32 %v2141_v43, %v2086_v5   ;;  %v3441_v18 = vpop.f32.mrb[13].mxu0  ;;  %v2130_v16 = vpop.f32.mrb[12].mxu1  ;;  %v5461_v5 = vmov %v5447_v42  ;;  %1607 = sbr.rel (!%p5044_p12) target bundleno = 1256 (0x4e8), region = 157 }
 0x74d   : >> { %v2089_v14 = vpop.f32.mrb[14].mxu0  ;;  %v5036_v0 = vadd.f32 %v2143_v29, %v2130_v16   ;;  %v3447_v4 = vpop.f32.mrb[13].mxu1  ;;  %v5473_v16 = vmov %v4947_v34  ;;  %v5475_v18 = vmov %v4935_v36 }
 0x74e   : >> { %v5451_v25 = vmov %v5033_v2  ;;  %v5039_v1 = vadd.f32 %v2142_v7, %v2089_v14   ;;  %v3442_v6 = vpop.f32.mrb[15].mxu0  ;;  %v2133_v13 = vpop.f32.mrb[14].mxu1  ;;  %v5460_v4 = vmov %v5449_v55  ;;  %v5463_v7 = vmov %v5448_v33 }
 0x74f   : >> { %v5452_v30 = vmov %v5036_v0  ;;  %v5041_v63 = vadd.f32 %v2144_v58, %v2133_v13   ;;  %v3448_v24 = vpop.f32.mrb[15].mxu1  ;;  %v5459_v2 = vmov %v5451_v25  ;;  %v5462_v6 = vmov %v5450_v31 }
 0x750   : >> { %v5453_v60 = vmov %v5039_v1  ;;  %v5457_v0 = vmov %v5452_v30  ;;  %v5469_v13 = vmov %v5441_v37  ;;  %v5470_v14 = vmov %v5440_v52 }
 0x751   : >> { %v5454_v35 = vmov %v5041_v63  ;;  %v5458_v1 = vmov %v5453_v60  ;;  %v5472_v58 = vmov %v4950_v32  ;;  %v5479_v24 = vmov %v4914_v39  ;;  %v3901_v39 = vld [vmem:[#allocation5 + $0x8] sm:$0xff] (%p5044_p12)   ;;  %v3939_v0 = vpop.eup (%p5044_p12), %3938 }
 0x752   : >> { %v5456_v63 = vmov %v5454_v35  ;;  %3452 = vmatpush3.bf16.msra.mxu0 (%p5044_p12), %v3901_v39  ;;  %v2163_v1 = vmul.f32 (%p5044_p12), %v3933_v50, %v5447_v42  ;;  %v2165_v2 = vmul.f32 (%p5044_p12), %v3937_v62, %v5451_v25  ;;  %v3941_v56 = vpop.eup (%p5044_p12), %3940  ;;  %v2166_v36 = vmul.f32 (%p5044_p12), %v3939_v0, %v5453_v60  ;;  %v3902_v24 = vld [vmem:[#allocation5 + $0x10] sm:$0xff] (%p5044_p12)  }
 0x753   : > { %3453 = vmatprep.subr.bf16.mxu0 %v5480_v40  ;;  %v2162_v63 = vmul.f32 %v3931_v46, %v5450_v31  ;;  %v3943_v34 = vpop.eup %3942  ;;  %v2167_v32 = vmul.f32 %v3941_v56, %v5452_v30 }
 0x754   : > { %v2169_v44 = vcombine.low %v2161_v61, %v2165_v2  ;;  %v2170_v52 = vcombine.high %v2161_v61, %v2165_v2  ;;  %v2168_v37 = vmul.f32 %v3943_v34, %v5454_v35 }
 0x755   : > { %v2237_v53 = vcombine.low %v2162_v63, %v2166_v36  ;;  %v2238_v59 = vcombine.high %v2162_v63, %v2166_v36  ;;  %v2185_v49 = vcombine.low %v2163_v1, %v2167_v32  ;;  %v2186_v26 = vcombine.high %v2163_v1, %v2167_v32  ;;  %v3903_v32 = vld [vmem:[#allocation5 + $0x18] sm:$0xff]  }
 0x756   : > { %v2177_v54 = vrot.slane %v2169_v44, %v4674_v47  ;;  %v2184_v27 = vrot.slane %v2170_v52, %v4674_v47  ;;  %v2253_v12 = vcombine.low %v2164_v28, %v2168_v37  ;;  %v2254_v20 = vcombine.high %v2164_v28, %v2168_v37  ;;  %3454 = vmatpush3.bf16.msra.mxu0 %v3902_v24 }
 0x757   : > { %v2245_v41 = vrot.slane %v2237_v53, %v4674_v47  ;;  %v2252_v48 = vrot.slane %v2238_v59, %v4674_v47  ;;  %v2193_v11 = vrot.slane %v2185_v49, %v4674_v47  ;;  %v2200_v42 = vrot.slane %v2186_v26, %v4674_v47  ;;  %3455 = vmatprep.subr.bf16.mxu0 %v5480_v40 }
 0x758   : > { %v2261_v23 = vrot.slane %v2253_v12, %v4674_v47  ;;  %v2268_v3 = vrot.slane %v2254_v20, %v4674_v47 }
 0x759   : > { %v2201_v17 = vcombine.low %v2177_v54, %v2193_v11  ;;  %v2202_v33 = vcombine.high %v2177_v54, %v2193_v11  ;;  %v2217_v9 = vcombine.low %v2184_v27, %v2200_v42  ;;  %v2218_v10 = vcombine.high %v2184_v27, %v2200_v42 }
 0x75a   : > { %v2269_v55 = vcombine.low %v2245_v41, %v2261_v23  ;;  %v2270_v8 = vcombine.high %v2245_v41, %v2261_v23  ;;  %v2285_v19 = vcombine.low %v2252_v48, %v2268_v3  ;;  %v2286_v31 = vcombine.high %v2252_v48, %v2268_v3  ;;  %3456 = vmatpush3.bf16.msra.mxu0 %v3903_v32  ;;  %v3910_v32 = vld [vmem:[%s5400_s11 + $0x30] ss:$8 sps:$4 sm:$0xff]  }
 0x75b   : > { %v2209_v15 = vrot.slane %v2201_v17, %v4677_v57  ;;  %v2216_v43 = vrot.slane %v2202_v33, %v4677_v57  ;;  %v2225_v5 = vrot.slane %v2217_v9, %v4677_v57  ;;  %v2232_v29 = vrot.slane %v2218_v10, %v4677_v57  ;;  %3473 = vmatprep.subr.bf16.mxu0 %v5480_v40 }
 0x75c   : > { %v2277_v25 = vrot.slane %v2269_v55, %v4677_v57  ;;  %v2284_v18 = vrot.slane %v2270_v8, %v4677_v57  ;;  %v2293_v7 = vrot.slane %v2285_v19, %v4677_v57  ;;  %v2300_v16 = vrot.slane %v2286_v31, %v4677_v57 }
 0x75d   : > { %v2305_v14 = vcombine.low %v2209_v15, %v2216_v43  ;;  %v3270_v30 = vcombine.high %v2209_v15, %v2216_v43  ;;  %v2321_v4 = vcombine.low %v2225_v5, %v2232_v29  ;;  %v3271_v58 = vcombine.high %v2225_v5, %v2232_v29 }
 0x75e   : > { %v2373_v60 = vcombine.low %v2277_v25, %v2284_v18  ;;  %v3272_v6 = vcombine.high %v2277_v25, %v2284_v18  ;;  %v2389_v13 = vcombine.low %v2293_v7, %v2300_v16  ;;  %v3273_v35 = vcombine.high %v2293_v7, %v2300_v16 }
 0x75f   : > { %v2312_v38 = vrot.slane %v2305_v14, %v4674_v47  ;;  %v2320_v39 = vrot.slane %v3270_v30, %v4674_v47  ;;  %v2328_v45 = vrot.slane %v2321_v4, %v4674_v47  ;;  %v2336_v46 = vrot.slane %v3271_v58, %v4674_v47  ;;  %v3274_v14 = vld [vmem:[%s5397_s8] ss:$0 sm:$0xff] }
 0x760   : > { %v2380_v50 = vrot.slane %v2373_v60, %v4674_v47  ;;  %v2388_v51 = vrot.slane %v3272_v6, %v4674_v47  ;;  %v2396_v61 = vrot.slane %v2389_v13, %v4674_v47  ;;  %v2404_v62 = vrot.slane %v3273_v35, %v4674_v47 }
 0x761   : > { %v2337_v63 = vcombine.low %v2312_v38, %v2320_v39  ;;  %v2353_v0 = vcombine.low %v2328_v45, %v2336_v46  ;;  %v2338_v1 = vcombine.high %v2312_v38, %v2320_v39  ;;  %v2354_v2 = vcombine.high %v2328_v45, %v2336_v46 }
 0x762   : > { %v2405_v56 = vcombine.low %v2380_v50, %v2388_v51  ;;  %v2421_v28 = vcombine.low %v2396_v61, %v2404_v62  ;;  %v2406_v36 = vcombine.high %v2380_v50, %v2388_v51  ;;  %v2422_v34 = vcombine.high %v2396_v61, %v2404_v62 }
 0x763   : > { %v2345_v44 = vrot.slane %v2337_v63, %v4677_v57  ;;  %v2361_v52 = vrot.slane %v2353_v0, %v4677_v57  ;;  %v2352_v37 = vrot.slane %v2338_v1, %v4677_v57  ;;  %v2368_v47 = vrot.slane %v2354_v2, %v4677_v57  ;;  %v3904_v1 = vld [vmem:[%s5400_s11] ss:$8 sps:$4 sm:$0xff]   ;;  %v3905_v2 = vld [vmem:[%s5400_s11 + $0x4] ss:$8 sps:$4 sm:$0xff]  }
 0x764   : > { %v2413_v53 = vrot.slane %v2405_v56, %v4677_v57  ;;  %v2429_v59 = vrot.slane %v2421_v28, %v4677_v57  ;;  %v2420_v54 = vrot.slane %v2406_v36, %v4677_v57  ;;  %v2436_v27 = vrot.slane %v2422_v34, %v4677_v57  ;;  %3462 = vmatpush3.bf16.msra.mxu1 %v3904_v1  ;;  %v3906_v56 = vld [vmem:[%s5400_s11 + $0x10] ss:$8 sps:$4 sm:$0xff]   ;;  %v3907_v28 = vld [vmem:[%s5400_s11 + $0x14] ss:$8 sps:$4 sm:$0xff]   ;;  %v3908_v36 = vld [vmem:[%s5400_s11 + $0x20] ss:$8 sps:$4 sm:$0xff]  }
 0x765   : > { %v2370_v49 = vcombine.high %v2345_v44, %v2361_v52  ;;  %v2371_v26 = vcombine.low %v2352_v37, %v2368_v47  ;;  %v2372_v41 = vcombine.high %v2352_v37, %v2368_v47  ;;  %v2369_v48 = vcombine.low %v2345_v44, %v2361_v52  ;;  %3463 = vmatprep.subr.bf16.mxu1 %v5480_v40  ;;  %v3909_v34 = vld [vmem:[%s5400_s11 + $0x24] ss:$8 sps:$4 sm:$0xff]   ;;  %v3911_v44 = vld [vmem:[%s5400_s11 + $0x34] ss:$8 sps:$4 sm:$0xff]  }
 0x766   : > { %v2438_v12 = vcombine.high %v2413_v53, %v2429_v59  ;;  %v2439_v20 = vcombine.low %v2420_v54, %v2436_v27  ;;  %v2440_v11 = vcombine.high %v2420_v54, %v2436_v27  ;;  %v2437_v42 = vcombine.low %v2413_v53, %v2429_v59 }
 0x768   : > { %v3885_v23 = vpack.i.bf16 %v2438_v12, %v2370_v49  ;;  %v3895_v3 = vpack.i.bf16 %v2440_v11, %v2372_v41  ;;  %v3890_v17 = vpack.i.bf16 %v2439_v20, %v2371_v26  ;;  %3464 = vmatpush3.bf16.msra.mxu1 %v3906_v56  ;;  %v3280_v49 = vld [vmem:[%s5398_s9] ss:$0 sm:$0xff] }
 0x769   : > { %3465 = vmatprep.subr.bf16.mxu1 %v5480_v40  ;;  %v3281_v20 = vld [vmem:[%s5399_s10] ss:$0 sm:$0xff] }
 0x76a   : > { %3886 = vrot.lane.b32.xlu0 %v3885_v23, %s4314_s12  ;;  %3896 = vrot.lane.b32.xlu1 %v3895_v3, %s4315_s23  ;;  %v3912_v3 = vld [vmem:[%s5402_s13 + $0x40] sm:$0xff]   ;;  %s5482_s12 = sld [smem:[#allocation19_spill]]  ;;  %s3027_s23 = sadd.s32 %s3313_s29, %s3312_s16 }
 0x76b   : > { %s3314_s21 = sshll.u32 %s3027_s23, 7  ;;  %s5485_s29 = sand.u32 1, %s4162_s19  }
 0x76c   : > { %3466 = vmatpush3.bf16.msra.mxu1 %v3908_v36  ;;  %s5326_s16 = scalar_lea.hbm %s5483_s18, %s3314_s21  ;;  %s5337_s28 = scalar_lea.sflag [#allocation7], %s5485_s29 }
 0x76d   : > { %3467 = vmatprep.subr.bf16.mxu1 %v5480_v40 }
 0x76e   : > { %3891 = vrot.lane.b32.xlu0 %v3890_v17, %s4316_s14  ;;  %v3913_v17 = vld [vmem:[%s5402_s13] sm:$0xff]  }
 0x770   : > { %3468 = vmatpush3.bf16.msra.mxu1 %v3910_v32 }
 0x771   : > { %3485 = vmatprep.subr.bf16.mxu1 %v5480_v40 }
 0x7dc   : > { %v3887_v57 = vpop.permute.xlu0 %3886  ;;  %v3897_v33 = vpop.permute.xlu1 %3896 }
 0x7dd   : > { %v3889_v9 = vunpack.i.h.bf16 %v3887_v57  ;;  %v3888_v10 = vunpack.i.l.bf16 %v3887_v57  ;;  %v3899_v8 = vunpack.i.h.bf16 %v3897_v33  ;;  %v3898_v19 = vunpack.i.l.bf16 %v3897_v33  ;;  %v3914_v33 = vld [vmem:[%s5402_s13 + $0x48] sm:$0xff]  }
 0x7df   : > { %v2467_v43 = vsel %vm1648_vm6, %v2437_v42, %v3889_v9  ;;  %v2466_v5 = vsel %vm1648_vm6, %v2369_v48, %v3888_v10  ;;  %v3915_v9 = vld [vmem:[%s5402_s13 + $0x8] sm:$0xff]   ;;  %v3916_v10 = vld [vmem:[%s5402_s13 + $0x50] sm:$0xff]  }
 0x7e0   : > { %v3892_v55 = vpop.permute.xlu0 %3891 }
 0x7e1   : > { %v3894_v31 = vunpack.i.h.bf16 %v3892_v55  ;;  %v3893_v15 = vunpack.i.l.bf16 %v3892_v55  ;;  %v3917_v55 = vld [vmem:[%s5402_s13 + $0x10] sm:$0xff]  }
 0x7e3   : > { %v2469_v29 = vsel %vm2468_vm7, %v2466_v5, %v3893_v15  ;;  %v2470_v25 = vsel %vm2468_vm7, %v2467_v43, %v3894_v31  ;;  %v3920_v31 = vld [vmem:[%s5402_s13 + $0x60] sm:$0xff]   ;;  %v3922_v43 = vld [vmem:[%s5402_s13 + $0x68] sm:$0xff]  }
 0x7e4   : > { %v2472_v18 = vsel %vm2471_vm8, %v2469_v29, %v3898_v19  ;;  %v2473_v7 = vsel %vm2471_vm8, %v2470_v25, %v3899_v8  ;;  %v3918_v8 = vld [vmem:[%s5402_s13 + $0x58] sm:$0xff]   ;;  %v3921_v15 = vld [vmem:[%s5402_s13 + $0x20] sm:$0xff]   ;;  %v3923_v5 = vld [vmem:[%s5402_s13 + $0x28] sm:$0xff]  }
 0x7e5   : > { %v2474_v16 = vpack.c.bf16 %v2473_v7, %v2472_v18  ;;  %v3919_v19 = vld [vmem:[%s5402_s13 + $0x18] sm:$0xff]   ;;  %v3924_v29 = vld [vmem:[%s5402_s13 + $0x70] sm:$0xff]  }
 0x7e6   : > { %v3925_v25 = vld [vmem:[%s5402_s13 + $0x30] sm:$0xff]   ;;  %v3926_v18 = vld [vmem:[%s5402_s13 + $0x78] sm:$0xff]  }
 0x7e7   : > { %3458 = vmatmul.mubr.msk.bf16.vlgmr.msra.gmra.mrb[0].mxu0 %vm1284_vm4, %v2474_v16  ;;  %v3927_v7 = vld [vmem:[%s5402_s13 + $0x38] sm:$0xff]   ;;  %v3282_v16 = vld [vmem:[%s5481_s26] ss:$0 sm:$0xff] }
 0x7e8   : > { %3481 = vmatprep.mubr.msk.bf16.mxu0 %vm4305_vm3, %v5480_v40  ;;  %3474 = vmatpush3.bf16.msra.mxu0 %v3905_v2 }
 0x7e9   : > { %3475 = vmatprep.subr.bf16.mxu0 %v5480_v40 }
 0x7ec   : > { %3476 = vmatpush3.bf16.msra.mxu0 %v3907_v28 }
 0x7ed   : > { %3477 = vmatprep.subr.bf16.mxu0 %v5480_v40 }
 0x7f0   : > { %3478 = vmatpush3.bf16.msra.mxu0 %v3909_v34 }
 0x7f1   : > { %3479 = vmatprep.subr.bf16.mxu0 %v5480_v40 }
 0x7f4   : > { %3480 = vmatpush3.bf16.msra.mxu0 %v3911_v44 }
 0x7f5   : > { %3505 = vmatprep.subr.bf16.mxu0 %v5480_v40 }
 0x8ba   : > { %v2551_v30 = vpop.f32.mrb[0].mxu0 }
 0x8bb   : > { %v2552_v4 = vadd.f32 %v3274_v14, %v2551_v30  ;;  %v3459_v58 = vpop.f32.mrb[1].mxu0 }
 0x8bc   : > { %v2554_v60 = vpop.f32.mrb[2].mxu0 }
 0x8bd   : > { %v5191_v6 = vadd.f32 %v2552_v4, %v4658_v21  ;;  %v2555_v13 = vadd.f32 %v3274_v14, %v2554_v60  ;;  %v3460_v35 = vpop.f32.mrb[3].mxu0  ;;  %v3288_v14 = vld [vmem:[%s5481_s26 + $0x1] ss:$0 sm:$0xff] }
 0x8bf   : > { %v5194_v24 = vadd.f32 %v2555_v13, %v4660_v22  ;;  %v2562_v38 = vsel %vm1284_vm4, %v5191_v6, 0.0 }
 0x8c0   : > { %2563 = vadd.xlane.f32.xlu1 %v2562_v38 }
 0x8c1   : > { %v2565_v39 = vsel %vm1284_vm4, %v5194_v24, 0.0 }
 0x8c2   : > { %2566 = vadd.xlane.f32.xlu0 %v2565_v39 }
 0x94d   : > { %v2564_v45 = vpop.xlane.xlu1 %2563 }
 0x94e   : > { %v2569_v46 = vmul.f32 0.015625, %v2564_v45 }
 0x94f   : > { %v2567_v50 = vpop.xlane.xlu0 %2566 }
 0x950   : > { %v2571_v51 = vsub.f32 %v5191_v6, %v2569_v46  ;;  %v2570_v21 = vmul.f32 0.015625, %v2567_v50 }
 0x952   : > { %v2572_v61 = vsub.f32 %v5194_v24, %v2570_v21  ;;  %v2573_v62 = vmul.f32 %v2571_v51, %v2571_v51 }
 0x954   : > { %v2575_v22 = vsel %vm1284_vm4, %v2573_v62, 0.0  ;;  %v2574_v63 = vmul.f32 %v2572_v61, %v2572_v61 }
 0x955   : > { %2576 = vadd.xlane.f32.xlu0 %v2575_v22 }
 0x956   : > { %v2578_v0 = vsel %vm1284_vm4, %v2574_v63, 0.0 }
 0x957   : > { %2579 = vadd.xlane.f32.xlu1 %v2578_v0 }
 0x9e2   : > { %v2577_v52 = vpop.xlane.xlu0 %2576 }
 0x9e3   : > { %v2581_v37 = vmul.f32 0.015625, %v2577_v52 }
 0x9e4   : > { %v2580_v47 = vpop.xlane.xlu1 %2579 }
 0x9e5   : > { %v2583_v53 = vadd.f32 1e-05, %v2581_v37  ;;  %v2582_v59 = vmul.f32 0.015625, %v2580_v47 }
 0x9e7   : > { %3944 = vrsqrt.f32 %v2583_v53  ;;  %v2584_v54 = vadd.f32 1e-05, %v2582_v59 }
 0x9e9   : > { %3946 = vrsqrt.f32 %v2584_v54 }
 0x9f1   : > { %v3945_v27 = vpop.eup %3944 }
 0x9f2   : > { %v2587_v26 = vmul.f32 %v3945_v27, %v2571_v51 }
 0x9f3   : > { %v3947_v41 = vpop.eup %3946 }
 0x9f4   : > { %v2588_v48 = vmul.f32 %v3947_v41, %v2572_v61  ;;  %v2595_v12 = vmul.f32 %v3280_v49, %v2587_v26  ;;  %v3310_v41 = vld [vmem:[%s5482_s12] ss:$0 sm:$0xff]  ;;  %s4317_s12 = smov [#allocation8]  }
 0x9f5   : > { %s3988_s23 = sshll.u32 %s4317_s12, 4  ;;  %s3989_s23 = int_to_ptr.vmem [resolvable:$false] %s3988_s23 }
 0x9f6   : > { %v2596_v11 = vmul.f32 %v3280_v49, %v2588_v48  ;;  %v2603_v42 = vadd.f32 %v3281_v20, %v2595_v12  ;;  %s3990_s21 = scalar_lea.vmem %s3989_s23, 512  ;;  %p3991_p7 = scmp.lt.s32.totalorder %s5328_s22, %s3989_s23 }
 0x9f7   : > { %p3992_p9 = scmp.lt.s32.totalorder %s3990_s21, %s3984_s15 }
 0x9f8   : > { %v2604_v23 = vadd.f32 %v3281_v20, %v2596_v11 }
 0x9f9   : > { %p3993_p11 = por %p3992_p9, %p3991_p7 }
 0x9fa   : > { %v2605_v57 = vpack.c.bf16 %v2604_v23, %v2603_v42 }
 0x9fb   : > { %p3994_p13 = pnand %p3993_p11, %p3987_p6 }
 0x9fc   : > { %3470 = vmatmul.mubr.msk.bf16.vlgmr.msra.gmra.mrb[0].mxu1 %vm1284_vm4, %v2605_v57  ;;  %3482 = vmatmul.mubr.msk.bf16.vlgmr.msra.gmra.mrb[4].mxu0 %vm1284_vm4, %v2605_v57 }
 0x9fd   : > { %3486 = vmatpush3.bf16.msra.mxu1 %v3912_v3  ;;  %3506 = vmatpush3.bf16.msra.mxu0 %v3913_v17 }
 0x9fe   : > { %3487 = vmatprep.subr.bf16.mxu1 %v5480_v40  ;;  %3507 = vmatprep.subr.bf16.mxu0 %v5480_v40 }
 0x9ff   : > { %3501 = vmatprep.mubr.msk.bf16.mxu1 %vm4305_vm3, %v5480_v40  ;;  %3521 = vmatprep.mubr.msk.bf16.mxu0 %vm4305_vm3, %v5480_v40 }
 0xa01   : > { %3488 = vmatpush3.bf16.msra.mxu1 %v3914_v33  ;;  %3508 = vmatpush3.bf16.msra.mxu0 %v3915_v9 }
 0xa02   : > { %3489 = vmatprep.subr.bf16.mxu1 %v5480_v40  ;;  %3509 = vmatprep.subr.bf16.mxu0 %v5480_v40 }
 0xa05   : > { %3490 = vmatpush3.bf16.msra.mxu1 %v3916_v10  ;;  %3510 = vmatpush3.bf16.msra.mxu0 %v3917_v55 }
 0xa06   : > { %3491 = vmatprep.subr.bf16.mxu1 %v5480_v40  ;;  %3511 = vmatprep.subr.bf16.mxu0 %v5480_v40 }
 0xa09   : > { %3492 = vmatpush3.bf16.msra.mxu1 %v3918_v8  ;;  %3512 = vmatpush3.bf16.msra.mxu0 %v3919_v19 }
 0xa0a   : > { %3493 = vmatprep.subr.bf16.mxu1 %v5480_v40  ;;  %3513 = vmatprep.subr.bf16.mxu0 %v5480_v40 }
 0xa0d   : > { %3494 = vmatpush3.bf16.msra.mxu1 %v3920_v31  ;;  %3514 = vmatpush3.bf16.msra.mxu0 %v3921_v15 }
 0xa0e   : > { %3495 = vmatprep.subr.bf16.mxu1 %v5480_v40  ;;  %3515 = vmatprep.subr.bf16.mxu0 %v5480_v40 }
 0xa11   : > { %3496 = vmatpush3.bf16.msra.mxu1 %v3922_v43  ;;  %3516 = vmatpush3.bf16.msra.mxu0 %v3923_v5 }
 0xa12   : > { %3497 = vmatprep.subr.bf16.mxu1 %v5480_v40  ;;  %3517 = vmatprep.subr.bf16.mxu0 %v5480_v40 }
 0xa15   : > { %3498 = vmatpush3.bf16.msra.mxu1 %v3924_v29  ;;  %3518 = vmatpush3.bf16.msra.mxu0 %v3925_v25 }
 0xa16   : > { %3499 = vmatprep.subr.bf16.mxu1 %v5480_v40  ;;  %3519 = vmatprep.subr.bf16.mxu0 %v5480_v40 }
 0xa19   : > { %3500 = vmatpush3.bf16.msra.mxu1 %v3926_v18  ;;  %3520 = vmatpush3.bf16.msra.mxu0 %v3927_v7 }
 0xacf   : > { %v2682_v30 = vpop.f32.mrb[0].mxu1  ;;  %v2789_v40 = vpop.f32.mrb[4].mxu0 }
 0xad0   : > { %v2683_v4 = vadd.f32 %v3282_v16, %v2682_v30  ;;  %v2790_v58 = vadd.f32 %v3288_v14, %v2789_v40  ;;  %v3471_v60 = vpop.f32.mrb[1].mxu1  ;;  %v3483_v13 = vpop.f32.mrb[5].mxu0 }
 0xad1   : > { %v2685_v35 = vpop.f32.mrb[2].mxu1  ;;  %v2792_v38 = vpop.f32.mrb[6].mxu0 }
 0xad2   : > { %v2691_v39 = vmul.f32 0.70710677, %v2683_v4  ;;  %v2798_v45 = vmul.f32 0.70710677, %v2790_v58  ;;  %v2686_v46 = vadd.f32 %v3282_v16, %v2685_v35  ;;  %v2793_v50 = vadd.f32 %v3288_v14, %v2792_v38  ;;  %v3472_v51 = vpop.f32.mrb[3].mxu1  ;;  %v3484_v21 = vpop.f32.mrb[7].mxu0 }
 0xad3   : > { %v2689_v28 = vmul.f32 0.5, %v2683_v4  ;;  %v2796_v32 = vmul.f32 0.5, %v2790_v58 }
 0xad4   : > { %3948 = verf.f32 %v2691_v39  ;;  %v2692_v61 = vmul.f32 0.70710677, %v2686_v46  ;;  %v2799_v62 = vmul.f32 0.70710677, %v2793_v50  ;;  %v2690_v36 = vmul.f32 0.5, %v2686_v46 }
 0xad5   : > { %3950 = verf.f32 %v2798_v45  ;;  %v2797_v44 = vmul.f32 0.5, %v2793_v50 }
 0xad6   : > { %3952 = verf.f32 %v2692_v61 }
 0xad7   : > { %3954 = verf.f32 %v2799_v62 }
 0xade   : > { %v3949_v22 = vpop.eup %3948 }
 0xadf   : > { %v3951_v63 = vpop.eup %3950  ;;  %v2695_v0 = vadd.f32 1.0, %v3949_v22 }
 0xae0   : > { %v3953_v1 = vpop.eup %3952  ;;  %v2802_v2 = vadd.f32 1.0, %v3951_v63 }
 0xae1   : > { %v3955_v56 = vpop.eup %3954  ;;  %v2696_v34 = vadd.f32 1.0, %v3953_v1  ;;  %v2697_v37 = vmul.f32 %v2695_v0, %v2689_v28 }
 0xae2   : > { %v2803_v52 = vadd.f32 1.0, %v3955_v56  ;;  %v2804_v53 = vmul.f32 %v2802_v2, %v2796_v32 }
 0xae3   : > { %v2698_v47 = vmul.f32 %v2696_v34, %v2690_v36 }
 0xae4   : > { %v2805_v59 = vmul.f32 %v2803_v52, %v2797_v44 }
 0xae5   : > { %v2699_v54 = vpack.c.bf16 %v2698_v47, %v2697_v37 }
 0xae6   : > { %v2806_v27 = vpack.c.bf16 %v2805_v59, %v2804_v53 }
 0xae7   : > { %3522 = vmatmul.mubr.bf16.vlgmr.msra.gmra.mrb[8].mxu0 %v2699_v54 }
 0xae8   : > { %3502 = vmatmul.mubr.bf16.vlgmr.msra.gmra.mrb[4].mxu1 %v2806_v27 }
 0xbba   : > { %v2994_v49 = vpop.f32.mrb[8].mxu0 }
 0xbbb   : > { %v2905_v26 = vpop.f32.mrb[4].mxu1  ;;  %v3523_v48 = vpop.f32.mrb[9].mxu0 }
 0xbbc   : > { %v2995_v12 = vadd.f32 %v2994_v49, %v2905_v26  ;;  %v3503_v20 = vpop.f32.mrb[5].mxu1  ;;  %v2997_v11 = vpop.f32.mrb[10].mxu0 }
 0xbbd   : > { %v2908_v42 = vpop.f32.mrb[6].mxu1  ;;  %v3524_v23 = vpop.f32.mrb[11].mxu0 }
 0xbbe   : > { %v3008_v3 = vadd.f32 %v3310_v41, %v2995_v12  ;;  %v2998_v17 = vadd.f32 %v2997_v11, %v2908_v42  ;;  %v3504_v57 = vpop.f32.mrb[7].mxu1 }
 0xbc0   : > { %v3010_v33 = vadd.f32 %v3008_v3, %v5191_v6  ;;  %v3009_v9 = vadd.f32 %v3310_v41, %v2998_v17 }
 0xbc2   : > { %3012 = vst.msk [vmem:[%s4519_s24] sm:$0xff] %vm1284_vm4, %v3010_v33  ;;  %v3011_v10 = vadd.f32 %v3009_v9, %v5194_v24 }
 0xbc4   : > { %3013 = vst.msk [vmem:[%s4519_s24 + $0x8] sm:$0xff] %vm1284_vm4, %v3011_v10 }
 0xbc5   : > { %3997 = shalt.err (!%p3994_p13)
}
 0xbc6   : > { %s3998_s24 = scalar_lea.hbm %s5326_s16, 256  ;;  %s4002_s18 = scalar_lea.hbm %s5484_s30, 1024 }
 0xbc7   : > { %p3999_p1 = scmp.ne.s32.totalorder %s5326_s16, %s3998_s24  ;;  %p4003_p8 = scmp.lt.u32.totalorder %s5326_s16, %s5484_s30 }
 0xbc8   : > { %p4004_p10 = scmp.lt.u32.totalorder %s4002_s18, %s3998_s24  ;;  %p4006_p0 = scmp.lt.u32.totalorder %s3998_s24, %s5326_s16 }
 0xbc9   : > { %p4000_p4 = pnand %p3999_p1, %p5486_p2 }
 0xbca   : > { %p4005_p12 = por %p4004_p10, %p4003_p8 }
 0xbcb   : > { %p4001_p3 = pneg %p4000_p4 }
 0xbcc   : > { %p4007_p5 = por %p4006_p0, %p4005_p12 }
 0xbce   : > { %p4008_p6 = pnand %p4007_p5, %p4001_p3 }
 0xbd0   : > { %4011 = shalt.err (!%p4008_p6)
}
 0xbd1   : > { %s4318_s15 = smov 128   ;;  %s4319_s23 = smov 8  }
 0xbd2   : > { %3529 = dma.vmem_to_hbm [thread:$0]  (%p5486_p2), %s5328_s22, 256, %s5326_s16, %s5337_s28, %s4318_s15, %s4318_s15, %s4319_s23  }
 0xbd3 PF: > { %s5487_s21 = sld [smem:[#allocation11_spill]]  ;;  %s5488_s14 = sld [smem:[#allocation16_spill]] }
 0xbd4   : > { %p3541_p7 = scmp.ge.s32.totalorder %s4186_s25, 2 }
 0xbd9   : > { %s3045_s27 = sand.u32 1, %s5487_s21   ;;  %p5489_p9 = scmp.ne.s32.totalorder %s5488_s14, 0 }
 0xbda   : > { %s3046_s24 = scalar_lea.sflag [#allocation7], %s3045_s27 }
 0xbdb   : > { %p3536_p11 = pnand %p3541_p7, %p5489_p9 }
 0xbdd   : > { %4153 = dma.done.wait (!%p3536_p11), %s3046_s24, 256  }
 0xbde   : > { %4155 = vsyncadd (!%p3536_p11), %s3046_s24, 4294967040  ;;  %s29_s25 = sadd.s32 1, %s4186_s25   ;;  %s5490_s29 = sld [smem:[#allocation17_spill]] }
 0xbdf   : > { %p26_p13 = scmp.ge.s32.totalorder %s29_s25, 6   ;;  %s5491_s21 = sld [smem:[#allocation12_spill]] }
 0xbe0   : > { %s5492_s22 = sld [smem:[#allocation13_spill]]  ;;  %s5493_s23 = sld [smem:[#allocation14_spill]] }
 0xbe1   : > { %s5494_s24 = sld [smem:[#allocation15_spill]]  ;;  %s5495_s18 = smov %s4162_s19 }
 0xbe2   : > { %s5496_s19 = smov %s4166_s20  ;;  %28 = sbr.rel (!%p26_p13) target bundleno = 10 (0xa), region = 168 }
 0xbe4   : > { %s5497_s20 = smov %s5490_s29 }
 0xbe9   :  { %3051 = vsyncpa [#allocation6], 1 }
 0xbea   :  { %3053 = vsyncpa [#allocation6 + $0x1], 1 }
 0xbeb   :  { %3054 = vsyncpa [#allocation7], 1 }
 0xbec   :  { %3056 = vsyncpa [#allocation7 + $0x1], 1 }

</bundles_post_ra>
